<compile_context>
chip_gen: v5e
topology: v5e:2x2
jax: 0.10.0
libtpu: 0.0.40
codegen_flags: <defaults>
</compile_context>

<pallas_src>
import functools

import jax
import jax.numpy as jnp
import numpy as np
from jax import lax
from jax.experimental import pallas as pl
from jax.experimental.pallas import tpu as pltpu

EPS = 1e-5
OUT_PAD = 128          # final ConvT columns zero-padded 84 -> 128 (lane-dense)


def _round_up(x, m):
    return (x + m - 1) // m * m


# ----------------------------------------------------------------------------
# In-kernel helpers
# ----------------------------------------------------------------------------
def _dot(a, b):
    return jnp.dot(a, b, preferred_element_type=jnp.float32)


def _row_mask(rows, b_pad, b_valid):
    """(rows, 1) f32 mask selecting the first `b_valid` rows of every
    `b_pad`-row block; None when nothing is padded."""
    if b_valid == b_pad:
        return None
    r = lax.broadcasted_iota(jnp.int32, (rows, 1), 0)
    return ((r % b_pad) < b_valid).astype(jnp.float32)


def _msum(x, mask):
    if mask is not None:
        x = x * mask
    return jnp.sum(x, axis=0, keepdims=True)


def _bn_relu_blocks(blocks, gamma, beta, mask, inv_n):
    """Training-mode BatchNorm + ReLU with statistics shared across a list of
    row blocks (all blocks have the same column meaning)."""
    mean = sum(_msum(b, mask) for b in blocks) * inv_n
    ds = [b - mean for b in blocks]
    var = sum(_msum(d * d, mask) for d in ds) * inv_n
    scale = lax.rsqrt(var + EPS) * gamma
    return [jnp.maximum(d * scale + beta, 0.0) for d in ds]


# ----------------------------------------------------------------------------
# The fused kernel: one grid step == one (track, bar) BarGenerator call,
# including an in-kernel recompute of the chords/melody TemporalNetworks.
# ----------------------------------------------------------------------------
def _generator_kernel(
    chords_ref, style_ref, melody_ref, groove_ref,
    tcw1_ref, tcp1_ref, tcw2_ref, tcp2_ref,            # chords temporal net
    tmw1_ref, tmp1_ref, tmw2_ref, tmp2_ref,            # melody temporal nets (T)
    lw_ref, lp_ref,                                    # bargen Linear (4 K-slabs)
    c0w_ref, c0p_ref, c1w_ref, c1p_ref, c2w_ref, c2p_ref,
    c3w_ref, c3p_ref, proj_ref, c4w_ref, c4b_ref,
    o_ref,
    *, B, B_pad, H0, ht):
    trk = pl.program_id(0)
    bar = pl.program_id(1)
    bar0f = (bar == 0).astype(jnp.float32)             # 1.0 for bar 0, else 0.0

    mask0 = _row_mask(B_pad, B_pad, B)
    inv_2b = 1.0 / (2 * B)

    # ---- TemporalNetwork: ConvT(2,1)+BN+ReLU, ConvT(1,1)+BN+ReLU -------------
    def temporal(x, w1, pk1, w2, pk2):
        b1, g1, be1 = pk1[0], pk1[1], pk1[2]
        h = _dot(x, w1) + b1                           # (B_pad, 2*ht), pos-major
        s = _msum(h, mask0)
        s = s + pltpu.roll(s, ht, 1)                   # pool the 2 kernel positions
        mean = s * inv_2b
        d = h - mean
        q = _msum(d * d, mask0)
        q = q + pltpu.roll(q, ht, 1)
        hb = jnp.maximum(d * (lax.rsqrt(q * inv_2b + EPS) * g1) + be1, 0.0)

        b2, g2, be2 = pk2[0], pk2[1], pk2[2]
        y0 = _dot(hb, w2[0]) + b2                      # bar 0 output (B_pad, z)
        y1 = _dot(hb, w2[1]) + b2                      # bar 1 output
        mean2 = (_msum(y0, mask0) + _msum(y1, mask0)) * inv_2b
        d0, d1 = y0 - mean2, y1 - mean2
        var2 = (_msum(d0 * d0, mask0) + _msum(d1 * d1, mask0)) * inv_2b
        scale2 = lax.rsqrt(var2 + EPS) * g2
        d_sel = d0 * bar0f + d1 * (1.0 - bar0f)        # pick this step's bar
        return jnp.maximum(d_sel * scale2 + be2, 0.0)

    c_in = temporal(chords_ref[...], tcw1_ref[...], tcp1_ref[...],
                    tcw2_ref[...], tcp2_ref[...])
    m_in = temporal(melody_ref[trk], tmw1_ref[trk], tmp1_ref[trk],
                    tmw2_ref[trk], tmp2_ref[trk])

    # ---- BarGenerator: Linear(4z -> hf) + BN1d + ReLU -------------------------
    lw = lw_ref[trk]                                   # (4, z, hf) K-slabs
    lpk = lp_ref[trk]                                  # (3, 1, hf)
    y = (_dot(c_in, lw[0]) + _dot(style_ref[...], lw[1]) +
         _dot(m_in, lw[2]) + _dot(groove_ref[trk], lw[3]) + lpk[0])
    ya = _bn_relu_blocks([y], lpk[1], lpk[2], mask0, 1.0 / B)[0]   # (B_pad, hf)

    # ---- ConvT(2,1) x3: per-position weight slabs, sites folded into rows ----
    c0w, c0pk = c0w_ref[trk], c0p_ref[trk]             # (2*H0, hf, hc)
    blocks = [_dot(ya, c0w[j]) + c0pk[0] for j in range(2 * H0)]
    blocks = _bn_relu_blocks(blocks, c0pk[1], c0pk[2], mask0, 1.0 / (2 * H0 * B))
    x = jnp.concatenate(blocks, axis=0)                # (2*H0*B_pad, hc)

    c1w, c1pk = c1w_ref[trk], c1p_ref[trk]
    mask1 = _row_mask(2 * H0 * B_pad, B_pad, B)
    blocks = [_dot(x, c1w[q]) + c1pk[0] for q in range(2)]
    blocks = _bn_relu_blocks(blocks, c1pk[1], c1pk[2], mask1, 1.0 / (4 * H0 * B))
    x = jnp.concatenate(blocks, axis=0)                # (4*H0*B_pad, hc2)

    c2w, c2pk = c2w_ref[trk], c2p_ref[trk]
    mask2 = _row_mask(4 * H0 * B_pad, B_pad, B)
    blocks = [_dot(x, c2w[q]) + c2pk[0] for q in range(2)]
    blocks = _bn_relu_blocks(blocks, c2pk[1], c2pk[2], mask2, 1.0 / (8 * H0 * B))
    x = jnp.concatenate(blocks, axis=0)                # (8*H0*B_pad, hc2)

    # ---- ConvT(1,7) + BN + ReLU (7 positions folded in columns) --------------
    c3w, c3pk = c3w_ref[trk], c3p_ref[trk]
    mask3 = _row_mask(8 * H0 * B_pad, B_pad, B)
    y3 = _dot(x, c3w) + c3pk[0]                        # (rows, 7*hc2)
    inv3 = 1.0 / (8 * H0 * B * 7)
    proj = proj_ref[...]                               # per-channel pooling matmul
    mean3 = _dot(_msum(y3, mask3), proj) * inv3
    d3 = y3 - mean3
    var3 = _dot(_msum(d3 * d3, mask3), proj) * inv3
    h3 = jnp.maximum(d3 * (lax.rsqrt(var3 + EPS) * c3pk[1]) + c3pk[2], 0.0)

    # ---- final ConvT(1,12) as block-diagonal matmul, padded to 128 lanes -----
    o_ref[0, 0] = _dot(h3, c4w_ref[trk]) + c4b_ref[trk]


# ----------------------------------------------------------------------------
# pallas_call wrapper
# ----------------------------------------------------------------------------
def _const_spec(shape):
    zeros = (0,) * len(shape)
    return pl.BlockSpec(shape, lambda t, b, _z=zeros: _z)


def musegan_generator(prep, cfg, chords, style, melody, groove):
    z = cfg["z_dim"]
    ht = cfg["hid_chans"]
    hc = cfg["hid_chans"] // 2
    hf = cfg["hid_feats"]
    hc2 = hc // 2
    H0 = hf // hc
    T = cfg["n_tracks"]
    nb = cfg["n_bars"]
    n_steps = cfg["n_steps_per_bar"]
    n_pitches = cfg["n_pitches"]
    B = chords.shape[0]
    B_pad = max(8, _round_up(B, 8))

    def pad_b(a, axis):
        if B_pad == B:
            return a
        padw = [(0, 0)] * a.ndim
        padw[axis] = (0, B_pad - B)
        return jnp.pad(a, padw)

    chords_p = pad_b(chords, 0)
    style_p = pad_b(style, 0)
    melody_p = pad_b(jnp.transpose(melody, (1, 0, 2)), 1)   # (T, B_pad, z)
    groove_p = pad_b(jnp.transpose(groove, (1, 0, 2)), 1)   # (T, B_pad, z)

    w = prep
    inputs = (
        chords_p, style_p, melody_p, groove_p,
        w["tcw1"], w["tcp1"], w["tcw2"], w["tcp2"],
        w["tmw1"], w["tmp1"], w["tmw2"], w["tmp2"],
        w["lw"], w["lp"],
        w["c0w"], w["c0p"], w["c1w"], w["c1p"], w["c2w"], w["c2p"],
        w["c3w"], w["c3p"], w["proj"], w["c4w"], w["c4b"],
    )
    in_specs = [_const_spec(a.shape) for a in inputs]
    rows_out = n_steps * B_pad

    kern = functools.partial(_generator_kernel, B=B, B_pad=B_pad, H0=H0, ht=ht)

    def _mm(m, k, n):
        return 2 * m * k * n
    step_flops = (
        2 * (_mm(B_pad, z, 2 * ht) + 2 * _mm(B_pad, 2 * ht, z))     # 2 temporal nets
        + 4 * _mm(B_pad, z, hf)
        + 2 * H0 * _mm(B_pad, hf, hc)
        + 2 * _mm(2 * H0 * B_pad, hc, hc2)
        + 2 * _mm(4 * H0 * B_pad, hc2, hc2)
        + _mm(8 * H0 * B_pad, hc2, 7 * hc2)
        + _mm(8 * H0 * B_pad, 7 * hc2, OUT_PAD))
    flops = step_flops * T * nb
    trans = T * nb * (2 * (2 * ht + z) + hf + hc + 2 * hc2 + 7 * hc2)
    bytes_acc = sum(int(a.size) * 4 for a in inputs) + T * nb * rows_out * OUT_PAD * 4

    out = pl.pallas_call(
        kern,
        out_shape=jax.ShapeDtypeStruct((T, nb, rows_out, OUT_PAD), jnp.float32),
        grid=(T, nb),
        in_specs=in_specs,
        out_specs=pl.BlockSpec((1, 1, rows_out, OUT_PAD),
                               lambda t, b: (t, b, 0, 0)),
        compiler_params=pltpu.CompilerParams(
            dimension_semantics=("parallel", "parallel")),
        cost_estimate=pl.CostEstimate(
            flops=int(flops), transcendentals=int(trans),
            bytes_accessed=int(bytes_acc)),
    )(*inputs)

    # Kernel rows are H-site-block major; the site block order produced by the
    # concat-per-position refolds is a fixed digit-reversal-like permutation.
    order = list(range(2 * H0))
    for _ in range(2):                                    # conv1, conv2 refolds
        order = [2 * h for h in order] + [2 * h + 1 for h in order]
    perm = np.argsort(np.asarray(order)).astype(np.int32)  # step -> block index

    y = out.reshape(T, nb, n_steps, B_pad, OUT_PAD)
    y = jnp.take(y, jnp.asarray(perm), axis=2)
    y = y[:, :, :, :B, :n_pitches]
    return jnp.transpose(y, (3, 0, 1, 2, 4))   # (B, n_tracks, n_bars, steps, pitches)


def make_forward(cfg):
    @jax.jit
    def fwd(prep, chords, style, melody, groove):
        return musegan_generator(prep, cfg, chords, style, melody, groove)
    return fwd


# ----------------------------------------------------------------------------
# Weight plumbing: done ONCE at init (no per-forward weight reshapes).
# ----------------------------------------------------------------------------
def _convT_matrix(W):
    """Torch ConvTranspose2d weight (Cin, Cout, kH, kW) -> (Cin, kH*kW*Cout),
    column index = kernel_position*Cout + out_channel (position-major)."""
    Cin, Cout, kH, kW = W.shape
    return jnp.transpose(W, (0, 2, 3, 1)).reshape(Cin, kH * kW * Cout)


def _group_projector(cout, kpos):
    """(F,F) 0/1 matrix pooling/broadcasting per-channel BN stats on the
    folded (col = kpos*Cout + c) layout."""
    idx = np.arange(kpos * cout) % cout
    return jnp.asarray((idx[:, None] == idx[None, :]).astype(np.float32))


def _block_diag(block, n):
    cin, cw = block.shape
    out = jnp.zeros((n * cin, n * cw), dtype=block.dtype)
    for k in range(n):
        out = out.at[k * cin:(k + 1) * cin, k * cw:(k + 1) * cw].set(block)
    return out


def prepare_params(params, cfg):
    """Convert torch-layout parameters into the kernel-ready stacked tensors."""
    z = cfg["z_dim"]
    ht = cfg["hid_chans"]
    hc = cfg["hid_chans"] // 2
    hf = cfg["hid_feats"]
    hc2 = hc // 2
    H0 = hf // hc
    assert cfg["n_bars"] == 2, "kernel assumes n_bars == 2"
    assert cfg["out_chans"] == 1
    assert hf % hc == 0 and cfg["n_steps_per_bar"] == 8 * H0
    assert cfg["n_pitches"] == 84
    assert (2 * ht) % 128 == 0, "roll-based BN pooling wants a lane-aligned width"
    f32 = jnp.float32

    def temporal_prep(p):
        w1 = jnp.transpose(p["w1"][:, :, :, 0], (0, 2, 1)).reshape(z, 2 * ht)
        pk1 = jnp.stack([jnp.tile(p["b1"], 2)[None],
                         jnp.tile(p["g1"], 2)[None],
                         jnp.tile(p["be1"], 2)[None]])
        core = p["w2"][:, :, 0, 0]
        w2 = jnp.zeros((2, 2 * ht, z), f32)
        w2 = w2.at[0, :ht].set(core).at[1, ht:].set(core)
        pk2 = jnp.stack([p["b2"][None], p["g2"][None], p["be2"][None]])
        return w1, pk1, w2, pk2

    tcw1, tcp1, tcw2, tcp2 = temporal_prep(params["chords_net"])
    mel = [temporal_prep(p) for p in params["melody_nets"]]

    def pack(b, g, be):
        return jnp.stack([b[None], g[None], be[None]])

    lw, lp, c0w, c0p, c1w, c1p, c2w, c2p, c3w, c3p, c4w, c4b = ([] for _ in range(12))
    for p in params["bar_gens"]:
        lw.append(p["wl"].reshape(4, z, hf))
        lp.append(pack(p["bl"], p["gl"], p["bel"]))
        w0 = jnp.zeros((2 * H0, hf, hc), f32)
        for h0 in range(H0):
            for q in range(2):
                w0 = w0.at[2 * h0 + q, h0::H0, :].set(p["wc0"][:, :, q, 0])
        c0w.append(w0)
        c0p.append(pack(p["bc0"], p["gc0"], p["bec0"]))
        c1w.append(jnp.stack([p["wc1"][:, :, q, 0] for q in range(2)]))
        c1p.append(pack(p["bc1"], p["gc1"], p["bec1"]))
        c2w.append(jnp.stack([p["wc2"][:, :, q, 0] for q in range(2)]))
        c2p.append(pack(p["bc2"], p["gc2"], p["bec2"]))
        c3w.append(jnp.transpose(p["wc3"][:, :, 0, :], (0, 2, 1)).reshape(hc2, 7 * hc2))
        c3p.append(pack(jnp.tile(p["bc3"], 7), jnp.tile(p["gc3"], 7),
                        jnp.tile(p["bec3"], 7)))
        bd = _block_diag(p["wc4"][:, 0, 0, :], 7)               # (7*hc2, 84)
        c4w.append(jnp.pad(bd, ((0, 0), (0, OUT_PAD - 84))))
        c4b.append(jnp.pad(jnp.tile(p["bc4"], 7 * 12)[None],
                           ((0, 0), (0, OUT_PAD - 84))))

    return dict(
        tcw1=tcw1, tcp1=tcp1, tcw2=tcw2, tcp2=tcp2,
        tmw1=jnp.stack([m[0] for m in mel]), tmp1=jnp.stack([m[1] for m in mel]),
        tmw2=jnp.stack([m[2] for m in mel]), tmp2=jnp.stack([m[3] for m in mel]),
        lw=jnp.stack(lw), lp=jnp.stack(lp),
        c0w=jnp.stack(c0w), c0p=jnp.stack(c0p),
        c1w=jnp.stack(c1w), c1p=jnp.stack(c1p),
        c2w=jnp.stack(c2w), c2p=jnp.stack(c2p),
        c3w=jnp.stack(c3w), c3p=jnp.stack(c3p),
        proj=_group_projector(hc2, 7),
        c4w=jnp.stack(c4w), c4b=jnp.stack(c4b))


# ----------------------------------------------------------------------------
# Deterministic parameter initialization (torch weight layouts)
# ----------------------------------------------------------------------------
def _n(key, shape, std=0.1):
    return (std * jax.random.normal(key, shape)).astype(jnp.float32)


def init_temporal_params(key, z_dim, hid_chans, n_bars):
    assert n_bars == 2, "second ConvT reduces to 1x1 only for n_bars == 2"
    k = jax.random.split(key, 8)
    return dict(
        w1=_n(k[0], (z_dim, hid_chans, 2, 1)),
        b1=_n(k[1], (hid_chans,)),
        g1=(1.0 + _n(k[2], (hid_chans,))).astype(jnp.float32),
        be1=_n(k[3], (hid_chans,)),
        w2=_n(k[4], (hid_chans, z_dim, n_bars - 1, 1)),
        b2=_n(k[5], (z_dim,)),
        g2=(1.0 + _n(k[6], (z_dim,))).astype(jnp.float32),
        be2=_n(k[7], (z_dim,)),
    )


def init_bargen_params(key, z_dim, hid_chans, hid_feats, out_chans=1):
    keys = jax.random.split(key, 32)
    ki = iter(range(32))
    p = dict(hid_chans=hid_chans)
    p["wl"] = _n(keys[next(ki)], (4 * z_dim, hid_feats))
    p["bl"] = _n(keys[next(ki)], (hid_feats,))
    p["gl"] = (1.0 + _n(keys[next(ki)], (hid_feats,))).astype(jnp.float32)
    p["bel"] = _n(keys[next(ki)], (hid_feats,))
    chans = [
        (hid_chans, hid_chans),
        (hid_chans, hid_chans // 2),
        (hid_chans // 2, hid_chans // 2),
    ]
    for i, (ci, co) in enumerate(chans):
        p[f"wc{i}"] = _n(keys[next(ki)], (ci, co, 2, 1))
        p[f"bc{i}"] = _n(keys[next(ki)], (co,))
        p[f"gc{i}"] = (1.0 + _n(keys[next(ki)], (co,))).astype(jnp.float32)
        p[f"bec{i}"] = _n(keys[next(ki)], (co,))
    c = hid_chans // 2
    p["wc3"] = _n(keys[next(ki)], (c, c, 1, 7))
    p["bc3"] = _n(keys[next(ki)], (c,))
    p["gc3"] = (1.0 + _n(keys[next(ki)], (c,))).astype(jnp.float32)
    p["bec3"] = _n(keys[next(ki)], (c,))
    p["wc4"] = _n(keys[next(ki)], (c, out_chans, 1, 12))
    p["bc4"] = _n(keys[next(ki)], (out_chans,))
    return p


def init_generator_params(key, cfg):
    z_dim, hid_chans, hid_feats = cfg["z_dim"], cfg["hid_chans"], cfg["hid_feats"]
    n_tracks, n_bars = cfg["n_tracks"], cfg["n_bars"]
    keys = jax.random.split(key, 1 + 2 * n_tracks)
    return dict(
        chords_net=init_temporal_params(keys[0], z_dim, hid_chans, n_bars),
        melody_nets=[
            init_temporal_params(keys[1 + t], z_dim, hid_chans, n_bars)
            for t in range(n_tracks)
        ],
        bar_gens=[
            init_bargen_params(
                keys[1 + n_tracks + t], z_dim, hid_chans // 2, hid_feats,
                cfg["out_chans"])
            for t in range(n_tracks)
        ],
    )


# ----------------------------------------------------------------------------
# Pure-JAX reference (direct per-layer lowering of the torch module) used as
# an in-script numerical check of the fused Pallas pipeline.
# ----------------------------------------------------------------------------
def _ref_matmul_bias(x, w, b):
    return jnp.dot(x, w, precision=jax.lax.Precision.HIGHEST) + b


def _ref_bn_relu(x, gamma, beta):
    mean = jnp.mean(x, axis=0, keepdims=True)
    var = jnp.mean(jnp.square(x - mean), axis=0, keepdims=True)
    return jnp.maximum((x - mean) * jax.lax.rsqrt(var + EPS) * gamma + beta, 0.0)


def _ref_temporal(p, x):
    B, z = x.shape
    ct = p["w1"].shape[1]
    y = _ref_matmul_bias(x, _convT_matrix(p["w1"]), jnp.tile(p["b1"], 2))
    y = _ref_bn_relu(y.reshape(B * 2, ct), p["g1"], p["be1"])
    y = _ref_matmul_bias(y, _convT_matrix(p["w2"]), p["b2"])
    y = _ref_bn_relu(y, p["g2"], p["be2"])
    return y.reshape(B, 2, z)


def _ref_bargen(p, z):
    B = z.shape[0]
    hc = p["hid_chans"]
    y = _ref_bn_relu(_ref_matmul_bias(z, p["wl"], p["bl"]), p["gl"], p["bel"])
    F = y.shape[1]
    H = F // hc
    y = jnp.transpose(y.reshape(B, hc, H), (0, 2, 1)).reshape(B * H, hc)
    for i in range(3):
        cout = p[f"wc{i}"].shape[1]
        y = _ref_matmul_bias(y, _convT_matrix(p[f"wc{i}"]), jnp.tile(p[f"bc{i}"], 2))
        y = _ref_bn_relu(y.reshape(-1, cout), p[f"gc{i}"], p[f"bec{i}"])
        H *= 2
    cout = p["wc3"].shape[1]
    y = _ref_matmul_bias(y, _convT_matrix(p["wc3"]), jnp.tile(p["bc3"], 7))
    y = _ref_bn_relu(y.reshape(-1, cout), p["gc3"], p["bec3"])
    y = _ref_matmul_bias(y, _convT_matrix(p["wc4"]), jnp.tile(p["bc4"], 12))
    return y.reshape(B, H, 7 * 12)


def reference_forward(params, cfg, chords, style, melody, groove):
    n_tracks, n_bars = cfg["n_tracks"], cfg["n_bars"]
    chord_outs = _ref_temporal(params["chords_net"], chords)
    melody_outs = [_ref_temporal(params["melody_nets"][t], melody[:, t, :])
                   for t in range(n_tracks)]
    bar_outs = []
    for bar in range(n_bars):
        track_outs = []
        for track in range(n_tracks):
            zin = jnp.concatenate(
                [chord_outs[:, bar, :], style,
                 melody_outs[track][:, bar, :], groove[:, track, :]], axis=1)
            y = _ref_bargen(params["bar_gens"][track], zin)
            track_outs.append(y[:, None, None, :, :])
        bar_outs.append(jnp.concatenate(track_outs, axis=1))
    return jnp.concatenate(bar_outs, axis=2)


# ----------------------------------------------------------------------------
if __name__ == "__main__":
    # Small but structure-consistent config: hid_feats // (hid_chans // 2) == 2,
    # n_steps = 2 * 2**3 = 16, n_pitches = 7 * 12 = 84 (fixed by kernel sizes).
    cfg = dict(
        z_dim=16, hid_chans=64, hid_feats=64, out_chans=1,
        n_tracks=4, n_bars=2, n_steps_per_bar=16, n_pitches=84,
    )
    B = 2

    root = jax.random.PRNGKey(0)
    k_par, k_c, k_s, k_m, k_g = jax.random.split(root, 5)
    params = init_generator_params(k_par, cfg)
    prep = prepare_params(params, cfg)

    chords = jax.random.normal(k_c, (B, cfg["z_dim"]), dtype=jnp.float32)
    style = jax.random.normal(k_s, (B, cfg["z_dim"]), dtype=jnp.float32)
    melody = jax.random.normal(k_m, (B, cfg["n_tracks"], cfg["z_dim"]), dtype=jnp.float32)
    groove = jax.random.normal(k_g, (B, cfg["n_tracks"], cfg["z_dim"]), dtype=jnp.float32)

    fwd = make_forward(cfg)
    out = jax.block_until_ready(fwd(prep, chords, style, melody, groove))

    expected = (B, cfg["n_tracks"], cfg["n_bars"], cfg["n_steps_per_bar"], cfg["n_pitches"])
    assert out.shape == expected, (out.shape, expected)
    assert out.dtype == jnp.float32
    assert bool(jnp.all(jnp.isfinite(out)))

    # Numerical check of the fully fused pipeline against the plain-JAX
    # reference lowering of the same module (loose tol: default MXU precision).
    ref = jax.block_until_ready(
        reference_forward(params, cfg, chords, style, melody, groove))
    max_err = float(jnp.max(jnp.abs(out - ref)))
    assert max_err < 5e-2, f"mismatch vs reference: max_err={max_err}"

    print("KERNEL_OK")
</pallas_src>

<mosaic_0001>
module attributes {stable_mosaic.version = 11 : i64} {
  func.func @_generator_kernel(%arg0: i32, %arg1: i32, %arg2: memref<8x16xf32, #tpu.memory_space<vmem>>, %arg3: memref<8x16xf32, #tpu.memory_space<vmem>>, %arg4: memref<4x8x16xf32, #tpu.memory_space<vmem>>, %arg5: memref<4x8x16xf32, #tpu.memory_space<vmem>>, %arg6: memref<16x128xf32, #tpu.memory_space<vmem>>, %arg7: memref<3x1x128xf32, #tpu.memory_space<vmem>>, %arg8: memref<2x128x16xf32, #tpu.memory_space<vmem>>, %arg9: memref<3x1x16xf32, #tpu.memory_space<vmem>>, %arg10: memref<4x16x128xf32, #tpu.memory_space<vmem>>, %arg11: memref<4x3x1x128xf32, #tpu.memory_space<vmem>>, %arg12: memref<4x2x128x16xf32, #tpu.memory_space<vmem>>, %arg13: memref<4x3x1x16xf32, #tpu.memory_space<vmem>>, %arg14: memref<4x4x16x64xf32, #tpu.memory_space<vmem>>, %arg15: memref<4x3x1x64xf32, #tpu.memory_space<vmem>>, %arg16: memref<4x4x64x32xf32, #tpu.memory_space<vmem>>, %arg17: memref<4x3x1x32xf32, #tpu.memory_space<vmem>>, %arg18: memref<4x2x32x16xf32, #tpu.memory_space<vmem>>, %arg19: memref<4x3x1x16xf32, #tpu.memory_space<vmem>>, %arg20: memref<4x2x16x16xf32, #tpu.memory_space<vmem>>, %arg21: memref<4x3x1x16xf32, #tpu.memory_space<vmem>>, %arg22: memref<4x16x112xf32, #tpu.memory_space<vmem>>, %arg23: memref<4x3x1x112xf32, #tpu.memory_space<vmem>>, %arg24: memref<112x112xf32, #tpu.memory_space<vmem>>, %arg25: memref<4x112x128xf32, #tpu.memory_space<vmem>>, %arg26: memref<4x1x128xf32, #tpu.memory_space<vmem>>, %arg27: memref<1x1x128x128xf32, #tpu.memory_space<vmem>>) attributes {dimension_semantics = [#tpu.dimension_semantics<parallel>, #tpu.dimension_semantics<parallel>], iteration_bounds = array<i64: 4, 2>, scalar_prefetch = 0 : i64, scratch_operands = 0 : i64, tpu.core_type = #tpu.core_type<tc>, window_params = [{pipeline_mode = #tpu.pipeline_mode<synchronous>, transform_indices = @transform_0, window_bounds = array<i64: 8, 16>}, {pipeline_mode = #tpu.pipeline_mode<synchronous>, transform_indices = @transform_1, window_bounds = array<i64: 8, 16>}, {pipeline_mode = #tpu.pipeline_mode<synchronous>, transform_indices = @transform_2, window_bounds = array<i64: 4, 8, 16>}, {pipeline_mode = #tpu.pipeline_mode<synchronous>, transform_indices = @transform_3, window_bounds = array<i64: 4, 8, 16>}, {pipeline_mode = #tpu.pipeline_mode<synchronous>, transform_indices = @transform_4, window_bounds = array<i64: 16, 128>}, {pipeline_mode = #tpu.pipeline_mode<synchronous>, transform_indices = @transform_5, window_bounds = array<i64: 3, 1, 128>}, {pipeline_mode = #tpu.pipeline_mode<synchronous>, transform_indices = @transform_6, window_bounds = array<i64: 2, 128, 16>}, {pipeline_mode = #tpu.pipeline_mode<synchronous>, transform_indices = @transform_7, window_bounds = array<i64: 3, 1, 16>}, {pipeline_mode = #tpu.pipeline_mode<synchronous>, transform_indices = @transform_8, window_bounds = array<i64: 4, 16, 128>}, {pipeline_mode = #tpu.pipeline_mode<synchronous>, transform_indices = @transform_9, window_bounds = array<i64: 4, 3, 1, 128>}, {pipeline_mode = #tpu.pipeline_mode<synchronous>, transform_indices = @transform_10, window_bounds = array<i64: 4, 2, 128, 16>}, {pipeline_mode = #tpu.pipeline_mode<synchronous>, transform_indices = @transform_11, window_bounds = array<i64: 4, 3, 1, 16>}, {pipeline_mode = #tpu.pipeline_mode<synchronous>, transform_indices = @transform_12, window_bounds = array<i64: 4, 4, 16, 64>}, {pipeline_mode = #tpu.pipeline_mode<synchronous>, transform_indices = @transform_13, window_bounds = array<i64: 4, 3, 1, 64>}, {pipeline_mode = #tpu.pipeline_mode<synchronous>, transform_indices = @transform_14, window_bounds = array<i64: 4, 4, 64, 32>}, {pipeline_mode = #tpu.pipeline_mode<synchronous>, transform_indices = @transform_15, window_bounds = array<i64: 4, 3, 1, 32>}, {pipeline_mode = #tpu.pipeline_mode<synchronous>, transform_indices = @transform_16, window_bounds = array<i64: 4, 2, 32, 16>}, {pipeline_mode = #tpu.pipeline_mode<synchronous>, transform_indices = @transform_17, window_bounds = array<i64: 4, 3, 1, 16>}, {pipeline_mode = #tpu.pipeline_mode<synchronous>, transform_indices = @transform_18, window_bounds = array<i64: 4, 2, 16, 16>}, {pipeline_mode = #tpu.pipeline_mode<synchronous>, transform_indices = @transform_19, window_bounds = array<i64: 4, 3, 1, 16>}, {pipeline_mode = #tpu.pipeline_mode<synchronous>, transform_indices = @transform_20, window_bounds = array<i64: 4, 16, 112>}, {pipeline_mode = #tpu.pipeline_mode<synchronous>, transform_indices = @transform_21, window_bounds = array<i64: 4, 3, 1, 112>}, {pipeline_mode = #tpu.pipeline_mode<synchronous>, transform_indices = @transform_22, window_bounds = array<i64: 112, 112>}, {pipeline_mode = #tpu.pipeline_mode<synchronous>, transform_indices = @transform_23, window_bounds = array<i64: 4, 112, 128>}, {pipeline_mode = #tpu.pipeline_mode<synchronous>, transform_indices = @transform_24, window_bounds = array<i64: 4, 1, 128>}, {transform_indices = @transform_25, window_bounds = array<i64: 1, 1, 128, 128>}]} {
    %c0_i32 = arith.constant 0 : i32
    %0 = arith.cmpi eq, %arg1, %c0_i32 : i32
    %1 = arith.extui %0 : i1 to i32
    %2 = arith.sitofp %1 : i32 to f32
    %3 = tpu.iota {dimensions = array<i32: 0>} : vector<8x1xi32>
    %c8_i32 = arith.constant 8 : i32
    %c0_i32_0 = arith.constant 0 : i32
    %4 = arith.cmpi eq, %c8_i32, %c0_i32_0 : i32
    %c1_i32 = arith.constant 1 : i32
    %5 = arith.select %4, %c1_i32, %c8_i32 : i32
    %6 = vector.broadcast %5 : i32 to vector<8x1xi32>
    %7 = arith.remsi %3, %6 : vector<8x1xi32>
    %c0_i32_1 = arith.constant 0 : i32
    %8 = vector.broadcast %c0_i32_1 : i32 to vector<8x1xi32>
    %9 = arith.cmpi ne, %7, %8 : vector<8x1xi32>
    %c0_i32_2 = arith.constant 0 : i32
    %10 = vector.broadcast %c0_i32_2 : i32 to vector<8x1xi32>
    %11 = arith.cmpi slt, %7, %10 : vector<8x1xi32>
    %c0_i32_3 = arith.constant 0 : i32
    %12 = arith.cmpi slt, %5, %c0_i32_3 : i32
    %13 = vector.broadcast %12 : i1 to vector<8x1xi1>
    %14 = vector.broadcast %13 : vector<8x1xi1> to vector<8x1xi1>
    %15 = arith.xori %11, %14 : vector<8x1xi1>
    %16 = arith.andi %15, %9 : vector<8x1xi1>
    %17 = vector.broadcast %5 : i32 to vector<8x1xi32>
    %18 = arith.addi %7, %17 : vector<8x1xi32>
    %19 = arith.select %16, %18, %7 : vector<8x1xi1>, vector<8x1xi32>
    %c2_i32 = arith.constant 2 : i32
    %20 = vector.broadcast %c2_i32 : i32 to vector<8x1xi32>
    %21 = arith.cmpi slt, %19, %20 : vector<8x1xi32>
    %22 = arith.extui %21 : vector<8x1xi1> to vector<8x1xi32>
    %23 = arith.sitofp %22 : vector<8x1xi32> to vector<8x1xf32>
    %c0 = arith.constant 0 : index
    %c0_4 = arith.constant 0 : index
    %24 = vector.load %arg2[%c0, %c0_4] : memref<8x16xf32, #tpu.memory_space<vmem>>, vector<8x16xf32>
    %c0_5 = arith.constant 0 : index
    %c0_6 = arith.constant 0 : index
    %25 = vector.load %arg6[%c0_5, %c0_6] : memref<16x128xf32, #tpu.memory_space<vmem>>, vector<16x128xf32>
    %c0_7 = arith.constant 0 : index
    %c0_8 = arith.constant 0 : index
    %c0_9 = arith.constant 0 : index
    %26 = vector.load %arg7[%c0_7, %c0_8, %c0_9] : memref<3x1x128xf32, #tpu.memory_space<vmem>>, vector<3x1x128xf32>
    %c0_10 = arith.constant 0 : index
    %c0_11 = arith.constant 0 : index
    %c0_12 = arith.constant 0 : index
    %27 = vector.load %arg8[%c0_10, %c0_11, %c0_12] : memref<2x128x16xf32, #tpu.memory_space<vmem>>, vector<2x128x16xf32>
    %c0_13 = arith.constant 0 : index
    %c0_14 = arith.constant 0 : index
    %c0_15 = arith.constant 0 : index
    %28 = vector.load %arg9[%c0_13, %c0_14, %c0_15] : memref<3x1x16xf32, #tpu.memory_space<vmem>>, vector<3x1x16xf32>
    %29 = vector.extract_strided_slice %26 {offsets = [0, 0, 0], sizes = [1, 1, 128], strides = [1, 1, 1]} : vector<3x1x128xf32> to vector<1x1x128xf32>
    %30 = vector.shape_cast %29 : vector<1x1x128xf32> to vector<1x128xf32>
    %31 = vector.extract_strided_slice %26 {offsets = [1, 0, 0], sizes = [1, 1, 128], strides = [1, 1, 1]} : vector<3x1x128xf32> to vector<1x1x128xf32>
    %32 = vector.shape_cast %31 : vector<1x1x128xf32> to vector<1x128xf32>
    %33 = vector.extract_strided_slice %26 {offsets = [2, 0, 0], sizes = [1, 1, 128], strides = [1, 1, 1]} : vector<3x1x128xf32> to vector<1x1x128xf32>
    %34 = vector.shape_cast %33 : vector<1x1x128xf32> to vector<1x128xf32>
    %cst = arith.constant dense<0.000000e+00> : vector<8x128xf32>
    %35 = tpu.matmul %24, %25, %cst {dimension_numbers = #tpu.dot_dimension_numbers<[1], [0], [0], [1], [0, 0, 1, 1], [], []>} : vector<8x16xf32>, vector<16x128xf32>, vector<8x128xf32> -> vector<8x128xf32>
    %36 = vector.broadcast %30 : vector<1x128xf32> to vector<8x128xf32>
    %37 = arith.addf %35, %36 : vector<8x128xf32>
    %38 = vector.broadcast %23 : vector<8x1xf32> to vector<8x128xf32>
    %39 = arith.mulf %37, %38 : vector<8x128xf32>
    %cst_16 = arith.constant dense<0.000000e+00> : vector<128xf32>
    %40 = vector.multi_reduction <add>, %39, %cst_16 [0] : vector<8x128xf32> to vector<128xf32>
    %41 = vector.shape_cast %40 : vector<128xf32> to vector<1x128xf32>
    %c64_i32 = arith.constant 64 : i32
    %42 = tpu.dynamic_rotate %41 by %c64_i32 dim 1 : vector<1x128xf32>, i32 -> vector<1x128xf32>
    %43 = arith.addf %41, %42 : vector<1x128xf32>
    %cst_17 = arith.constant 2.500000e-01 : f32
    %44 = vector.broadcast %cst_17 : f32 to vector<1x128xf32>
    %45 = arith.mulf %43, %44 : vector<1x128xf32>
    %46 = vector.broadcast %45 : vector<1x128xf32> to vector<8x128xf32>
    %47 = arith.subf %37, %46 : vector<8x128xf32>
    %48 = arith.mulf %47, %47 : vector<8x128xf32>
    %49 = vector.broadcast %23 : vector<8x1xf32> to vector<8x128xf32>
    %50 = arith.mulf %48, %49 : vector<8x128xf32>
    %cst_18 = arith.constant dense<0.000000e+00> : vector<128xf32>
    %51 = vector.multi_reduction <add>, %50, %cst_18 [0] : vector<8x128xf32> to vector<128xf32>
    %52 = vector.shape_cast %51 : vector<128xf32> to vector<1x128xf32>
    %c64_i32_19 = arith.constant 64 : i32
    %53 = tpu.dynamic_rotate %52 by %c64_i32_19 dim 1 : vector<1x128xf32>, i32 -> vector<1x128xf32>
    %54 = arith.addf %52, %53 : vector<1x128xf32>
    %cst_20 = arith.constant 2.500000e-01 : f32
    %55 = vector.broadcast %cst_20 : f32 to vector<1x128xf32>
    %56 = arith.mulf %54, %55 : vector<1x128xf32>
    %cst_21 = arith.constant 9.99999974E-6 : f32
    %57 = vector.broadcast %cst_21 : f32 to vector<1x128xf32>
    %58 = arith.addf %56, %57 : vector<1x128xf32>
    %59 = math.rsqrt %58 : vector<1x128xf32>
    %60 = arith.mulf %59, %32 : vector<1x128xf32>
    %61 = vector.broadcast %60 : vector<1x128xf32> to vector<8x128xf32>
    %62 = arith.mulf %47, %61 : vector<8x128xf32>
    %63 = vector.broadcast %34 : vector<1x128xf32> to vector<8x128xf32>
    %64 = arith.addf %62, %63 : vector<8x128xf32>
    %cst_22 = arith.constant 0.000000e+00 : f32
    %65 = vector.broadcast %cst_22 : f32 to vector<8x128xf32>
    %66 = arith.maximumf %64, %65 : vector<8x128xf32>
    %67 = vector.extract_strided_slice %28 {offsets = [0, 0, 0], sizes = [1, 1, 16], strides = [1, 1, 1]} : vector<3x1x16xf32> to vector<1x1x16xf32>
    %68 = vector.shape_cast %67 : vector<1x1x16xf32> to vector<1x16xf32>
    %69 = vector.extract_strided_slice %28 {offsets = [1, 0, 0], sizes = [1, 1, 16], strides = [1, 1, 1]} : vector<3x1x16xf32> to vector<1x1x16xf32>
    %70 = vector.shape_cast %69 : vector<1x1x16xf32> to vector<1x16xf32>
    %71 = vector.extract_strided_slice %28 {offsets = [2, 0, 0], sizes = [1, 1, 16], strides = [1, 1, 1]} : vector<3x1x16xf32> to vector<1x1x16xf32>
    %72 = vector.shape_cast %71 : vector<1x1x16xf32> to vector<1x16xf32>
    %73 = vector.extract_strided_slice %27 {offsets = [0, 0, 0], sizes = [1, 128, 16], strides = [1, 1, 1]} : vector<2x128x16xf32> to vector<1x128x16xf32>
    %74 = vector.shape_cast %73 : vector<1x128x16xf32> to vector<128x16xf32>
    %cst_23 = arith.constant dense<0.000000e+00> : vector<8x16xf32>
    %75 = tpu.matmul %66, %74, %cst_23 {dimension_numbers = #tpu.dot_dimension_numbers<[1], [0], [0], [1], [0, 0, 1, 1], [], []>} : vector<8x128xf32>, vector<128x16xf32>, vector<8x16xf32> -> vector<8x16xf32>
    %76 = vector.broadcast %68 : vector<1x16xf32> to vector<8x16xf32>
    %77 = arith.addf %75, %76 : vector<8x16xf32>
    %78 = vector.extract_strided_slice %27 {offsets = [1, 0, 0], sizes = [1, 128, 16], strides = [1, 1, 1]} : vector<2x128x16xf32> to vector<1x128x16xf32>
    %79 = vector.shape_cast %78 : vector<1x128x16xf32> to vector<128x16xf32>
    %cst_24 = arith.constant dense<0.000000e+00> : vector<8x16xf32>
    %80 = tpu.matmul %66, %79, %cst_24 {dimension_numbers = #tpu.dot_dimension_numbers<[1], [0], [0], [1], [0, 0, 1, 1], [], []>} : vector<8x128xf32>, vector<128x16xf32>, vector<8x16xf32> -> vector<8x16xf32>
    %81 = vector.broadcast %68 : vector<1x16xf32> to vector<8x16xf32>
    %82 = arith.addf %80, %81 : vector<8x16xf32>
    %83 = vector.broadcast %23 : vector<8x1xf32> to vector<8x16xf32>
    %84 = arith.mulf %77, %83 : vector<8x16xf32>
    %cst_25 = arith.constant dense<0.000000e+00> : vector<16xf32>
    %85 = vector.multi_reduction <add>, %84, %cst_25 [0] : vector<8x16xf32> to vector<16xf32>
    %86 = vector.shape_cast %85 : vector<16xf32> to vector<1x16xf32>
    %87 = vector.broadcast %23 : vector<8x1xf32> to vector<8x16xf32>
    %88 = arith.mulf %82, %87 : vector<8x16xf32>
    %cst_26 = arith.constant dense<0.000000e+00> : vector<16xf32>
    %89 = vector.multi_reduction <add>, %88, %cst_26 [0] : vector<8x16xf32> to vector<16xf32>
    %90 = vector.shape_cast %89 : vector<16xf32> to vector<1x16xf32>
    %91 = arith.addf %86, %90 : vector<1x16xf32>
    %cst_27 = arith.constant 2.500000e-01 : f32
    %92 = vector.broadcast %cst_27 : f32 to vector<1x16xf32>
    %93 = arith.mulf %91, %92 : vector<1x16xf32>
    %94 = vector.broadcast %93 : vector<1x16xf32> to vector<8x16xf32>
    %95 = arith.subf %77, %94 : vector<8x16xf32>
    %96 = vector.broadcast %93 : vector<1x16xf32> to vector<8x16xf32>
    %97 = arith.subf %82, %96 : vector<8x16xf32>
    %98 = arith.mulf %95, %95 : vector<8x16xf32>
    %99 = vector.broadcast %23 : vector<8x1xf32> to vector<8x16xf32>
    %100 = arith.mulf %98, %99 : vector<8x16xf32>
    %cst_28 = arith.constant dense<0.000000e+00> : vector<16xf32>
    %101 = vector.multi_reduction <add>, %100, %cst_28 [0] : vector<8x16xf32> to vector<16xf32>
    %102 = vector.shape_cast %101 : vector<16xf32> to vector<1x16xf32>
    %103 = arith.mulf %97, %97 : vector<8x16xf32>
    %104 = vector.broadcast %23 : vector<8x1xf32> to vector<8x16xf32>
    %105 = arith.mulf %103, %104 : vector<8x16xf32>
    %cst_29 = arith.constant dense<0.000000e+00> : vector<16xf32>
    %106 = vector.multi_reduction <add>, %105, %cst_29 [0] : vector<8x16xf32> to vector<16xf32>
    %107 = vector.shape_cast %106 : vector<16xf32> to vector<1x16xf32>
    %108 = arith.addf %102, %107 : vector<1x16xf32>
    %cst_30 = arith.constant 2.500000e-01 : f32
    %109 = vector.broadcast %cst_30 : f32 to vector<1x16xf32>
    %110 = arith.mulf %108, %109 : vector<1x16xf32>
    %cst_31 = arith.constant 9.99999974E-6 : f32
    %111 = vector.broadcast %cst_31 : f32 to vector<1x16xf32>
    %112 = arith.addf %110, %111 : vector<1x16xf32>
    %113 = math.rsqrt %112 : vector<1x16xf32>
    %114 = arith.mulf %113, %70 : vector<1x16xf32>
    %115 = vector.broadcast %2 : f32 to vector<8x16xf32>
    %116 = arith.mulf %95, %115 : vector<8x16xf32>
    %cst_32 = arith.constant 1.000000e+00 : f32
    %117 = arith.subf %cst_32, %2 : f32
    %118 = vector.broadcast %117 : f32 to vector<8x16xf32>
    %119 = arith.mulf %97, %118 : vector<8x16xf32>
    %120 = arith.addf %116, %119 : vector<8x16xf32>
    %121 = vector.broadcast %114 : vector<1x16xf32> to vector<8x16xf32>
    %122 = arith.mulf %120, %121 : vector<8x16xf32>
    %123 = vector.broadcast %72 : vector<1x16xf32> to vector<8x16xf32>
    %124 = arith.addf %122, %123 : vector<8x16xf32>
    %cst_33 = arith.constant 0.000000e+00 : f32
    %125 = vector.broadcast %cst_33 : f32 to vector<8x16xf32>
    %126 = arith.maximumf %124, %125 : vector<8x16xf32>
    %127 = arith.index_cast %arg0 : i32 to index
    %c0_34 = arith.constant 0 : index
    %c0_35 = arith.constant 0 : index
    %128 = vector.load %arg4[%127, %c0_34, %c0_35] : memref<4x8x16xf32, #tpu.memory_space<vmem>>, vector<1x8x16xf32>
    %129 = vector.shape_cast %128 : vector<1x8x16xf32> to vector<8x16xf32>
    %130 = arith.index_cast %arg0 : i32 to index
    %c0_36 = arith.constant 0 : index
    %c0_37 = arith.constant 0 : index
    %131 = vector.load %arg10[%130, %c0_36, %c0_37] : memref<4x16x128xf32, #tpu.memory_space<vmem>>, vector<1x16x128xf32>
    %132 = vector.shape_cast %131 : vector<1x16x128xf32> to vector<16x128xf32>
    %133 = arith.index_cast %arg0 : i32 to index
    %c0_38 = arith.constant 0 : index
    %c0_39 = arith.constant 0 : index
    %c0_40 = arith.constant 0 : index
    %134 = vector.load %arg11[%133, %c0_38, %c0_39, %c0_40] : memref<4x3x1x128xf32, #tpu.memory_space<vmem>>, vector<1x3x1x128xf32>
    %135 = vector.shape_cast %134 : vector<1x3x1x128xf32> to vector<3x1x128xf32>
    %136 = arith.index_cast %arg0 : i32 to index
    %c0_41 = arith.constant 0 : index
    %c0_42 = arith.constant 0 : index
    %c0_43 = arith.constant 0 : index
    %137 = vector.load %arg12[%136, %c0_41, %c0_42, %c0_43] : memref<4x2x128x16xf32, #tpu.memory_space<vmem>>, vector<1x2x128x16xf32>
    %138 = vector.shape_cast %137 : vector<1x2x128x16xf32> to vector<2x128x16xf32>
    %139 = arith.index_cast %arg0 : i32 to index
    %c0_44 = arith.constant 0 : index
    %c0_45 = arith.constant 0 : index
    %c0_46 = arith.constant 0 : index
    %140 = vector.load %arg13[%139, %c0_44, %c0_45, %c0_46] : memref<4x3x1x16xf32, #tpu.memory_space<vmem>>, vector<1x3x1x16xf32>
    %141 = vector.shape_cast %140 : vector<1x3x1x16xf32> to vector<3x1x16xf32>
    %142 = vector.extract_strided_slice %135 {offsets = [0, 0, 0], sizes = [1, 1, 128], strides = [1, 1, 1]} : vector<3x1x128xf32> to vector<1x1x128xf32>
    %143 = vector.shape_cast %142 : vector<1x1x128xf32> to vector<1x128xf32>
    %144 = vector.extract_strided_slice %135 {offsets = [1, 0, 0], sizes = [1, 1, 128], strides = [1, 1, 1]} : vector<3x1x128xf32> to vector<1x1x128xf32>
    %145 = vector.shape_cast %144 : vector<1x1x128xf32> to vector<1x128xf32>
    %146 = vector.extract_strided_slice %135 {offsets = [2, 0, 0], sizes = [1, 1, 128], strides = [1, 1, 1]} : vector<3x1x128xf32> to vector<1x1x128xf32>
    %147 = vector.shape_cast %146 : vector<1x1x128xf32> to vector<1x128xf32>
    %cst_47 = arith.constant dense<0.000000e+00> : vector<8x128xf32>
    %148 = tpu.matmul %129, %132, %cst_47 {dimension_numbers = #tpu.dot_dimension_numbers<[1], [0], [0], [1], [0, 0, 1, 1], [], []>} : vector<8x16xf32>, vector<16x128xf32>, vector<8x128xf32> -> vector<8x128xf32>
    %149 = vector.broadcast %143 : vector<1x128xf32> to vector<8x128xf32>
    %150 = arith.addf %148, %149 : vector<8x128xf32>
    %151 = vector.broadcast %23 : vector<8x1xf32> to vector<8x128xf32>
    %152 = arith.mulf %150, %151 : vector<8x128xf32>
    %cst_48 = arith.constant dense<0.000000e+00> : vector<128xf32>
    %153 = vector.multi_reduction <add>, %152, %cst_48 [0] : vector<8x128xf32> to vector<128xf32>
    %154 = vector.shape_cast %153 : vector<128xf32> to vector<1x128xf32>
    %c64_i32_49 = arith.constant 64 : i32
    %155 = tpu.dynamic_rotate %154 by %c64_i32_49 dim 1 : vector<1x128xf32>, i32 -> vector<1x128xf32>
    %156 = arith.addf %154, %155 : vector<1x128xf32>
    %cst_50 = arith.constant 2.500000e-01 : f32
    %157 = vector.broadcast %cst_50 : f32 to vector<1x128xf32>
    %158 = arith.mulf %156, %157 : vector<1x128xf32>
    %159 = vector.broadcast %158 : vector<1x128xf32> to vector<8x128xf32>
    %160 = arith.subf %150, %159 : vector<8x128xf32>
    %161 = arith.mulf %160, %160 : vector<8x128xf32>
    %162 = vector.broadcast %23 : vector<8x1xf32> to vector<8x128xf32>
    %163 = arith.mulf %161, %162 : vector<8x128xf32>
    %cst_51 = arith.constant dense<0.000000e+00> : vector<128xf32>
    %164 = vector.multi_reduction <add>, %163, %cst_51 [0] : vector<8x128xf32> to vector<128xf32>
    %165 = vector.shape_cast %164 : vector<128xf32> to vector<1x128xf32>
    %c64_i32_52 = arith.constant 64 : i32
    %166 = tpu.dynamic_rotate %165 by %c64_i32_52 dim 1 : vector<1x128xf32>, i32 -> vector<1x128xf32>
    %167 = arith.addf %165, %166 : vector<1x128xf32>
    %cst_53 = arith.constant 2.500000e-01 : f32
    %168 = vector.broadcast %cst_53 : f32 to vector<1x128xf32>
    %169 = arith.mulf %167, %168 : vector<1x128xf32>
    %cst_54 = arith.constant 9.99999974E-6 : f32
    %170 = vector.broadcast %cst_54 : f32 to vector<1x128xf32>
    %171 = arith.addf %169, %170 : vector<1x128xf32>
    %172 = math.rsqrt %171 : vector<1x128xf32>
    %173 = arith.mulf %172, %145 : vector<1x128xf32>
    %174 = vector.broadcast %173 : vector<1x128xf32> to vector<8x128xf32>
    %175 = arith.mulf %160, %174 : vector<8x128xf32>
    %176 = vector.broadcast %147 : vector<1x128xf32> to vector<8x128xf32>
    %177 = arith.addf %175, %176 : vector<8x128xf32>
    %cst_55 = arith.constant 0.000000e+00 : f32
    %178 = vector.broadcast %cst_55 : f32 to vector<8x128xf32>
    %179 = arith.maximumf %177, %178 : vector<8x128xf32>
    %180 = vector.extract_strided_slice %141 {offsets = [0, 0, 0], sizes = [1, 1, 16], strides = [1, 1, 1]} : vector<3x1x16xf32> to vector<1x1x16xf32>
    %181 = vector.shape_cast %180 : vector<1x1x16xf32> to vector<1x16xf32>
    %182 = vector.extract_strided_slice %141 {offsets = [1, 0, 0], sizes = [1, 1, 16], strides = [1, 1, 1]} : vector<3x1x16xf32> to vector<1x1x16xf32>
    %183 = vector.shape_cast %182 : vector<1x1x16xf32> to vector<1x16xf32>
    %184 = vector.extract_strided_slice %141 {offsets = [2, 0, 0], sizes = [1, 1, 16], strides = [1, 1, 1]} : vector<3x1x16xf32> to vector<1x1x16xf32>
    %185 = vector.shape_cast %184 : vector<1x1x16xf32> to vector<1x16xf32>
    %186 = vector.extract_strided_slice %138 {offsets = [0, 0, 0], sizes = [1, 128, 16], strides = [1, 1, 1]} : vector<2x128x16xf32> to vector<1x128x16xf32>
    %187 = vector.shape_cast %186 : vector<1x128x16xf32> to vector<128x16xf32>
    %cst_56 = arith.constant dense<0.000000e+00> : vector<8x16xf32>
    %188 = tpu.matmul %179, %187, %cst_56 {dimension_numbers = #tpu.dot_dimension_numbers<[1], [0], [0], [1], [0, 0, 1, 1], [], []>} : vector<8x128xf32>, vector<128x16xf32>, vector<8x16xf32> -> vector<8x16xf32>
    %189 = vector.broadcast %181 : vector<1x16xf32> to vector<8x16xf32>
    %190 = arith.addf %188, %189 : vector<8x16xf32>
    %191 = vector.extract_strided_slice %138 {offsets = [1, 0, 0], sizes = [1, 128, 16], strides = [1, 1, 1]} : vector<2x128x16xf32> to vector<1x128x16xf32>
    %192 = vector.shape_cast %191 : vector<1x128x16xf32> to vector<128x16xf32>
    %cst_57 = arith.constant dense<0.000000e+00> : vector<8x16xf32>
    %193 = tpu.matmul %179, %192, %cst_57 {dimension_numbers = #tpu.dot_dimension_numbers<[1], [0], [0], [1], [0, 0, 1, 1], [], []>} : vector<8x128xf32>, vector<128x16xf32>, vector<8x16xf32> -> vector<8x16xf32>
    %194 = vector.broadcast %181 : vector<1x16xf32> to vector<8x16xf32>
    %195 = arith.addf %193, %194 : vector<8x16xf32>
    %196 = vector.broadcast %23 : vector<8x1xf32> to vector<8x16xf32>
    %197 = arith.mulf %190, %196 : vector<8x16xf32>
    %cst_58 = arith.constant dense<0.000000e+00> : vector<16xf32>
    %198 = vector.multi_reduction <add>, %197, %cst_58 [0] : vector<8x16xf32> to vector<16xf32>
    %199 = vector.shape_cast %198 : vector<16xf32> to vector<1x16xf32>
    %200 = vector.broadcast %23 : vector<8x1xf32> to vector<8x16xf32>
    %201 = arith.mulf %195, %200 : vector<8x16xf32>
    %cst_59 = arith.constant dense<0.000000e+00> : vector<16xf32>
    %202 = vector.multi_reduction <add>, %201, %cst_59 [0] : vector<8x16xf32> to vector<16xf32>
    %203 = vector.shape_cast %202 : vector<16xf32> to vector<1x16xf32>
    %204 = arith.addf %199, %203 : vector<1x16xf32>
    %cst_60 = arith.constant 2.500000e-01 : f32
    %205 = vector.broadcast %cst_60 : f32 to vector<1x16xf32>
    %206 = arith.mulf %204, %205 : vector<1x16xf32>
    %207 = vector.broadcast %206 : vector<1x16xf32> to vector<8x16xf32>
    %208 = arith.subf %190, %207 : vector<8x16xf32>
    %209 = vector.broadcast %206 : vector<1x16xf32> to vector<8x16xf32>
    %210 = arith.subf %195, %209 : vector<8x16xf32>
    %211 = arith.mulf %208, %208 : vector<8x16xf32>
    %212 = vector.broadcast %23 : vector<8x1xf32> to vector<8x16xf32>
    %213 = arith.mulf %211, %212 : vector<8x16xf32>
    %cst_61 = arith.constant dense<0.000000e+00> : vector<16xf32>
    %214 = vector.multi_reduction <add>, %213, %cst_61 [0] : vector<8x16xf32> to vector<16xf32>
    %215 = vector.shape_cast %214 : vector<16xf32> to vector<1x16xf32>
    %216 = arith.mulf %210, %210 : vector<8x16xf32>
    %217 = vector.broadcast %23 : vector<8x1xf32> to vector<8x16xf32>
    %218 = arith.mulf %216, %217 : vector<8x16xf32>
    %cst_62 = arith.constant dense<0.000000e+00> : vector<16xf32>
    %219 = vector.multi_reduction <add>, %218, %cst_62 [0] : vector<8x16xf32> to vector<16xf32>
    %220 = vector.shape_cast %219 : vector<16xf32> to vector<1x16xf32>
    %221 = arith.addf %215, %220 : vector<1x16xf32>
    %cst_63 = arith.constant 2.500000e-01 : f32
    %222 = vector.broadcast %cst_63 : f32 to vector<1x16xf32>
    %223 = arith.mulf %221, %222 : vector<1x16xf32>
    %cst_64 = arith.constant 9.99999974E-6 : f32
    %224 = vector.broadcast %cst_64 : f32 to vector<1x16xf32>
    %225 = arith.addf %223, %224 : vector<1x16xf32>
    %226 = math.rsqrt %225 : vector<1x16xf32>
    %227 = arith.mulf %226, %183 : vector<1x16xf32>
    %228 = vector.broadcast %2 : f32 to vector<8x16xf32>
    %229 = arith.mulf %208, %228 : vector<8x16xf32>
    %cst_65 = arith.constant 1.000000e+00 : f32
    %230 = arith.subf %cst_65, %2 : f32
    %231 = vector.broadcast %230 : f32 to vector<8x16xf32>
    %232 = arith.mulf %210, %231 : vector<8x16xf32>
    %233 = arith.addf %229, %232 : vector<8x16xf32>
    %234 = vector.broadcast %227 : vector<1x16xf32> to vector<8x16xf32>
    %235 = arith.mulf %233, %234 : vector<8x16xf32>
    %236 = vector.broadcast %185 : vector<1x16xf32> to vector<8x16xf32>
    %237 = arith.addf %235, %236 : vector<8x16xf32>
    %cst_66 = arith.constant 0.000000e+00 : f32
    %238 = vector.broadcast %cst_66 : f32 to vector<8x16xf32>
    %239 = arith.maximumf %237, %238 : vector<8x16xf32>
    %240 = arith.index_cast %arg0 : i32 to index
    %c0_67 = arith.constant 0 : index
    %c0_68 = arith.constant 0 : index
    %c0_69 = arith.constant 0 : index
    %241 = vector.load %arg14[%240, %c0_67, %c0_68, %c0_69] : memref<4x4x16x64xf32, #tpu.memory_space<vmem>>, vector<1x4x16x64xf32>
    %242 = vector.shape_cast %241 : vector<1x4x16x64xf32> to vector<4x16x64xf32>
    %243 = arith.index_cast %arg0 : i32 to index
    %c0_70 = arith.constant 0 : index
    %c0_71 = arith.constant 0 : index
    %c0_72 = arith.constant 0 : index
    %244 = vector.load %arg15[%243, %c0_70, %c0_71, %c0_72] : memref<4x3x1x64xf32, #tpu.memory_space<vmem>>, vector<1x3x1x64xf32>
    %245 = vector.shape_cast %244 : vector<1x3x1x64xf32> to vector<3x1x64xf32>
    %246 = vector.extract_strided_slice %242 {offsets = [0, 0, 0], sizes = [1, 16, 64], strides = [1, 1, 1]} : vector<4x16x64xf32> to vector<1x16x64xf32>
    %247 = vector.shape_cast %246 : vector<1x16x64xf32> to vector<16x64xf32>
    %cst_73 = arith.constant dense<0.000000e+00> : vector<8x64xf32>
    %248 = tpu.matmul %126, %247, %cst_73 {dimension_numbers = #tpu.dot_dimension_numbers<[1], [0], [0], [1], [0, 0, 1, 1], [], []>} : vector<8x16xf32>, vector<16x64xf32>, vector<8x64xf32> -> vector<8x64xf32>
    %c0_74 = arith.constant 0 : index
    %c0_75 = arith.constant 0 : index
    %249 = vector.load %arg3[%c0_74, %c0_75] : memref<8x16xf32, #tpu.memory_space<vmem>>, vector<8x16xf32>
    %250 = vector.extract_strided_slice %242 {offsets = [1, 0, 0], sizes = [1, 16, 64], strides = [1, 1, 1]} : vector<4x16x64xf32> to vector<1x16x64xf32>
    %251 = vector.shape_cast %250 : vector<1x16x64xf32> to vector<16x64xf32>
    %cst_76 = arith.constant dense<0.000000e+00> : vector<8x64xf32>
    %252 = tpu.matmul %249, %251, %cst_76 {dimension_numbers = #tpu.dot_dimension_numbers<[1], [0], [0], [1], [0, 0, 1, 1], [], []>} : vector<8x16xf32>, vector<16x64xf32>, vector<8x64xf32> -> vector<8x64xf32>
    %253 = arith.addf %248, %252 : vector<8x64xf32>
    %254 = vector.extract_strided_slice %242 {offsets = [2, 0, 0], sizes = [1, 16, 64], strides = [1, 1, 1]} : vector<4x16x64xf32> to vector<1x16x64xf32>
    %255 = vector.shape_cast %254 : vector<1x16x64xf32> to vector<16x64xf32>
    %cst_77 = arith.constant dense<0.000000e+00> : vector<8x64xf32>
    %256 = tpu.matmul %239, %255, %cst_77 {dimension_numbers = #tpu.dot_dimension_numbers<[1], [0], [0], [1], [0, 0, 1, 1], [], []>} : vector<8x16xf32>, vector<16x64xf32>, vector<8x64xf32> -> vector<8x64xf32>
    %257 = arith.addf %253, %256 : vector<8x64xf32>
    %258 = arith.index_cast %arg0 : i32 to index
    %c0_78 = arith.constant 0 : index
    %c0_79 = arith.constant 0 : index
    %259 = vector.load %arg5[%258, %c0_78, %c0_79] : memref<4x8x16xf32, #tpu.memory_space<vmem>>, vector<1x8x16xf32>
    %260 = vector.shape_cast %259 : vector<1x8x16xf32> to vector<8x16xf32>
    %261 = vector.extract_strided_slice %242 {offsets = [3, 0, 0], sizes = [1, 16, 64], strides = [1, 1, 1]} : vector<4x16x64xf32> to vector<1x16x64xf32>
    %262 = vector.shape_cast %261 : vector<1x16x64xf32> to vector<16x64xf32>
    %cst_80 = arith.constant dense<0.000000e+00> : vector<8x64xf32>
    %263 = tpu.matmul %260, %262, %cst_80 {dimension_numbers = #tpu.dot_dimension_numbers<[1], [0], [0], [1], [0, 0, 1, 1], [], []>} : vector<8x16xf32>, vector<16x64xf32>, vector<8x64xf32> -> vector<8x64xf32>
    %264 = arith.addf %257, %263 : vector<8x64xf32>
    %265 = vector.extract_strided_slice %245 {offsets = [0, 0, 0], sizes = [1, 1, 64], strides = [1, 1, 1]} : vector<3x1x64xf32> to vector<1x1x64xf32>
    %266 = vector.shape_cast %265 : vector<1x1x64xf32> to vector<1x64xf32>
    %267 = vector.broadcast %266 : vector<1x64xf32> to vector<8x64xf32>
    %268 = arith.addf %264, %267 : vector<8x64xf32>
    %269 = vector.extract_strided_slice %245 {offsets = [1, 0, 0], sizes = [1, 1, 64], strides = [1, 1, 1]} : vector<3x1x64xf32> to vector<1x1x64xf32>
    %270 = vector.shape_cast %269 : vector<1x1x64xf32> to vector<1x64xf32>
    %271 = vector.extract_strided_slice %245 {offsets = [2, 0, 0], sizes = [1, 1, 64], strides = [1, 1, 1]} : vector<3x1x64xf32> to vector<1x1x64xf32>
    %272 = vector.shape_cast %271 : vector<1x1x64xf32> to vector<1x64xf32>
    %273 = vector.broadcast %23 : vector<8x1xf32> to vector<8x64xf32>
    %274 = arith.mulf %268, %273 : vector<8x64xf32>
    %cst_81 = arith.constant dense<0.000000e+00> : vector<64xf32>
    %275 = vector.multi_reduction <add>, %274, %cst_81 [0] : vector<8x64xf32> to vector<64xf32>
    %276 = vector.shape_cast %275 : vector<64xf32> to vector<1x64xf32>
    %cst_82 = arith.constant 0.000000e+00 : f32
    %277 = vector.broadcast %cst_82 : f32 to vector<1x64xf32>
    %278 = arith.addf %277, %276 : vector<1x64xf32>
    %cst_83 = arith.constant 5.000000e-01 : f32
    %279 = vector.broadcast %cst_83 : f32 to vector<1x64xf32>
    %280 = arith.mulf %278, %279 : vector<1x64xf32>
    %281 = vector.broadcast %280 : vector<1x64xf32> to vector<8x64xf32>
    %282 = arith.subf %268, %281 : vector<8x64xf32>
    %283 = arith.mulf %282, %282 : vector<8x64xf32>
    %284 = vector.broadcast %23 : vector<8x1xf32> to vector<8x64xf32>
    %285 = arith.mulf %283, %284 : vector<8x64xf32>
    %cst_84 = arith.constant dense<0.000000e+00> : vector<64xf32>
    %286 = vector.multi_reduction <add>, %285, %cst_84 [0] : vector<8x64xf32> to vector<64xf32>
    %287 = vector.shape_cast %286 : vector<64xf32> to vector<1x64xf32>
    %cst_85 = arith.constant 0.000000e+00 : f32
    %288 = vector.broadcast %cst_85 : f32 to vector<1x64xf32>
    %289 = arith.addf %288, %287 : vector<1x64xf32>
    %cst_86 = arith.constant 5.000000e-01 : f32
    %290 = vector.broadcast %cst_86 : f32 to vector<1x64xf32>
    %291 = arith.mulf %289, %290 : vector<1x64xf32>
    %cst_87 = arith.constant 9.99999974E-6 : f32
    %292 = vector.broadcast %cst_87 : f32 to vector<1x64xf32>
    %293 = arith.addf %291, %292 : vector<1x64xf32>
    %294 = math.rsqrt %293 : vector<1x64xf32>
    %295 = arith.mulf %294, %270 : vector<1x64xf32>
    %296 = vector.broadcast %295 : vector<1x64xf32> to vector<8x64xf32>
    %297 = arith.mulf %282, %296 : vector<8x64xf32>
    %298 = vector.broadcast %272 : vector<1x64xf32> to vector<8x64xf32>
    %299 = arith.addf %297, %298 : vector<8x64xf32>
    %cst_88 = arith.constant 0.000000e+00 : f32
    %300 = vector.broadcast %cst_88 : f32 to vector<8x64xf32>
    %301 = arith.maximumf %299, %300 : vector<8x64xf32>
    %302 = arith.index_cast %arg0 : i32 to index
    %c0_89 = arith.constant 0 : index
    %c0_90 = arith.constant 0 : index
    %c0_91 = arith.constant 0 : index
    %303 = vector.load %arg16[%302, %c0_89, %c0_90, %c0_91] : memref<4x4x64x32xf32, #tpu.memory_space<vmem>>, vector<1x4x64x32xf32>
    %304 = vector.shape_cast %303 : vector<1x4x64x32xf32> to vector<4x64x32xf32>
    %305 = arith.index_cast %arg0 : i32 to index
    %c0_92 = arith.constant 0 : index
    %c0_93 = arith.constant 0 : index
    %c0_94 = arith.constant 0 : index
    %306 = vector.load %arg17[%305, %c0_92, %c0_93, %c0_94] : memref<4x3x1x32xf32, #tpu.memory_space<vmem>>, vector<1x3x1x32xf32>
    %307 = vector.shape_cast %306 : vector<1x3x1x32xf32> to vector<3x1x32xf32>
    %308 = vector.extract_strided_slice %304 {offsets = [0, 0, 0], sizes = [1, 64, 32], strides = [1, 1, 1]} : vector<4x64x32xf32> to vector<1x64x32xf32>
    %309 = vector.shape_cast %308 : vector<1x64x32xf32> to vector<64x32xf32>
    %cst_95 = arith.constant dense<0.000000e+00> : vector<8x32xf32>
    %310 = tpu.matmul %301, %309, %cst_95 {dimension_numbers = #tpu.dot_dimension_numbers<[1], [0], [0], [1], [0, 0, 1, 1], [], []>} : vector<8x64xf32>, vector<64x32xf32>, vector<8x32xf32> -> vector<8x32xf32>
    %311 = vector.extract_strided_slice %307 {offsets = [0, 0, 0], sizes = [1, 1, 32], strides = [1, 1, 1]} : vector<3x1x32xf32> to vector<1x1x32xf32>
    %312 = vector.shape_cast %311 : vector<1x1x32xf32> to vector<1x32xf32>
    %313 = vector.broadcast %312 : vector<1x32xf32> to vector<8x32xf32>
    %314 = arith.addf %310, %313 : vector<8x32xf32>
    %315 = vector.extract_strided_slice %304 {offsets = [1, 0, 0], sizes = [1, 64, 32], strides = [1, 1, 1]} : vector<4x64x32xf32> to vector<1x64x32xf32>
    %316 = vector.shape_cast %315 : vector<1x64x32xf32> to vector<64x32xf32>
    %cst_96 = arith.constant dense<0.000000e+00> : vector<8x32xf32>
    %317 = tpu.matmul %301, %316, %cst_96 {dimension_numbers = #tpu.dot_dimension_numbers<[1], [0], [0], [1], [0, 0, 1, 1], [], []>} : vector<8x64xf32>, vector<64x32xf32>, vector<8x32xf32> -> vector<8x32xf32>
    %318 = vector.extract_strided_slice %307 {offsets = [0, 0, 0], sizes = [1, 1, 32], strides = [1, 1, 1]} : vector<3x1x32xf32> to vector<1x1x32xf32>
    %319 = vector.shape_cast %318 : vector<1x1x32xf32> to vector<1x32xf32>
    %320 = vector.broadcast %319 : vector<1x32xf32> to vector<8x32xf32>
    %321 = arith.addf %317, %320 : vector<8x32xf32>
    %322 = vector.extract_strided_slice %304 {offsets = [2, 0, 0], sizes = [1, 64, 32], strides = [1, 1, 1]} : vector<4x64x32xf32> to vector<1x64x32xf32>
    %323 = vector.shape_cast %322 : vector<1x64x32xf32> to vector<64x32xf32>
    %cst_97 = arith.constant dense<0.000000e+00> : vector<8x32xf32>
    %324 = tpu.matmul %301, %323, %cst_97 {dimension_numbers = #tpu.dot_dimension_numbers<[1], [0], [0], [1], [0, 0, 1, 1], [], []>} : vector<8x64xf32>, vector<64x32xf32>, vector<8x32xf32> -> vector<8x32xf32>
    %325 = vector.extract_strided_slice %307 {offsets = [0, 0, 0], sizes = [1, 1, 32], strides = [1, 1, 1]} : vector<3x1x32xf32> to vector<1x1x32xf32>
    %326 = vector.shape_cast %325 : vector<1x1x32xf32> to vector<1x32xf32>
    %327 = vector.broadcast %326 : vector<1x32xf32> to vector<8x32xf32>
    %328 = arith.addf %324, %327 : vector<8x32xf32>
    %329 = vector.extract_strided_slice %304 {offsets = [3, 0, 0], sizes = [1, 64, 32], strides = [1, 1, 1]} : vector<4x64x32xf32> to vector<1x64x32xf32>
    %330 = vector.shape_cast %329 : vector<1x64x32xf32> to vector<64x32xf32>
    %cst_98 = arith.constant dense<0.000000e+00> : vector<8x32xf32>
    %331 = tpu.matmul %301, %330, %cst_98 {dimension_numbers = #tpu.dot_dimension_numbers<[1], [0], [0], [1], [0, 0, 1, 1], [], []>} : vector<8x64xf32>, vector<64x32xf32>, vector<8x32xf32> -> vector<8x32xf32>
    %332 = vector.extract_strided_slice %307 {offsets = [0, 0, 0], sizes = [1, 1, 32], strides = [1, 1, 1]} : vector<3x1x32xf32> to vector<1x1x32xf32>
    %333 = vector.shape_cast %332 : vector<1x1x32xf32> to vector<1x32xf32>
    %334 = vector.broadcast %333 : vector<1x32xf32> to vector<8x32xf32>
    %335 = arith.addf %331, %334 : vector<8x32xf32>
    %336 = vector.extract_strided_slice %307 {offsets = [1, 0, 0], sizes = [1, 1, 32], strides = [1, 1, 1]} : vector<3x1x32xf32> to vector<1x1x32xf32>
    %337 = vector.shape_cast %336 : vector<1x1x32xf32> to vector<1x32xf32>
    %338 = vector.extract_strided_slice %307 {offsets = [2, 0, 0], sizes = [1, 1, 32], strides = [1, 1, 1]} : vector<3x1x32xf32> to vector<1x1x32xf32>
    %339 = vector.shape_cast %338 : vector<1x1x32xf32> to vector<1x32xf32>
    %340 = vector.broadcast %23 : vector<8x1xf32> to vector<8x32xf32>
    %341 = arith.mulf %314, %340 : vector<8x32xf32>
    %cst_99 = arith.constant dense<0.000000e+00> : vector<32xf32>
    %342 = vector.multi_reduction <add>, %341, %cst_99 [0] : vector<8x32xf32> to vector<32xf32>
    %343 = vector.shape_cast %342 : vector<32xf32> to vector<1x32xf32>
    %cst_100 = arith.constant 0.000000e+00 : f32
    %344 = vector.broadcast %cst_100 : f32 to vector<1x32xf32>
    %345 = arith.addf %344, %343 : vector<1x32xf32>
    %346 = vector.broadcast %23 : vector<8x1xf32> to vector<8x32xf32>
    %347 = arith.mulf %321, %346 : vector<8x32xf32>
    %cst_101 = arith.constant dense<0.000000e+00> : vector<32xf32>
    %348 = vector.multi_reduction <add>, %347, %cst_101 [0] : vector<8x32xf32> to vector<32xf32>
    %349 = vector.shape_cast %348 : vector<32xf32> to vector<1x32xf32>
    %350 = arith.addf %345, %349 : vector<1x32xf32>
    %351 = vector.broadcast %23 : vector<8x1xf32> to vector<8x32xf32>
    %352 = arith.mulf %328, %351 : vector<8x32xf32>
    %cst_102 = arith.constant dense<0.000000e+00> : vector<32xf32>
    %353 = vector.multi_reduction <add>, %352, %cst_102 [0] : vector<8x32xf32> to vector<32xf32>
    %354 = vector.shape_cast %353 : vector<32xf32> to vector<1x32xf32>
    %355 = arith.addf %350, %354 : vector<1x32xf32>
    %356 = vector.broadcast %23 : vector<8x1xf32> to vector<8x32xf32>
    %357 = arith.mulf %335, %356 : vector<8x32xf32>
    %cst_103 = arith.constant dense<0.000000e+00> : vector<32xf32>
    %358 = vector.multi_reduction <add>, %357, %cst_103 [0] : vector<8x32xf32> to vector<32xf32>
    %359 = vector.shape_cast %358 : vector<32xf32> to vector<1x32xf32>
    %360 = arith.addf %355, %359 : vector<1x32xf32>
    %cst_104 = arith.constant 1.250000e-01 : f32
    %361 = vector.broadcast %cst_104 : f32 to vector<1x32xf32>
    %362 = arith.mulf %360, %361 : vector<1x32xf32>
    %363 = vector.broadcast %362 : vector<1x32xf32> to vector<8x32xf32>
    %364 = arith.subf %314, %363 : vector<8x32xf32>
    %365 = vector.broadcast %362 : vector<1x32xf32> to vector<8x32xf32>
    %366 = arith.subf %321, %365 : vector<8x32xf32>
    %367 = vector.broadcast %362 : vector<1x32xf32> to vector<8x32xf32>
    %368 = arith.subf %328, %367 : vector<8x32xf32>
    %369 = vector.broadcast %362 : vector<1x32xf32> to vector<8x32xf32>
    %370 = arith.subf %335, %369 : vector<8x32xf32>
    %371 = arith.mulf %364, %364 : vector<8x32xf32>
    %372 = vector.broadcast %23 : vector<8x1xf32> to vector<8x32xf32>
    %373 = arith.mulf %371, %372 : vector<8x32xf32>
    %cst_105 = arith.constant dense<0.000000e+00> : vector<32xf32>
    %374 = vector.multi_reduction <add>, %373, %cst_105 [0] : vector<8x32xf32> to vector<32xf32>
    %375 = vector.shape_cast %374 : vector<32xf32> to vector<1x32xf32>
    %cst_106 = arith.constant 0.000000e+00 : f32
    %376 = vector.broadcast %cst_106 : f32 to vector<1x32xf32>
    %377 = arith.addf %376, %375 : vector<1x32xf32>
    %378 = arith.mulf %366, %366 : vector<8x32xf32>
    %379 = vector.broadcast %23 : vector<8x1xf32> to vector<8x32xf32>
    %380 = arith.mulf %378, %379 : vector<8x32xf32>
    %cst_107 = arith.constant dense<0.000000e+00> : vector<32xf32>
    %381 = vector.multi_reduction <add>, %380, %cst_107 [0] : vector<8x32xf32> to vector<32xf32>
    %382 = vector.shape_cast %381 : vector<32xf32> to vector<1x32xf32>
    %383 = arith.addf %377, %382 : vector<1x32xf32>
    %384 = arith.mulf %368, %368 : vector<8x32xf32>
    %385 = vector.broadcast %23 : vector<8x1xf32> to vector<8x32xf32>
    %386 = arith.mulf %384, %385 : vector<8x32xf32>
    %cst_108 = arith.constant dense<0.000000e+00> : vector<32xf32>
    %387 = vector.multi_reduction <add>, %386, %cst_108 [0] : vector<8x32xf32> to vector<32xf32>
    %388 = vector.shape_cast %387 : vector<32xf32> to vector<1x32xf32>
    %389 = arith.addf %383, %388 : vector<1x32xf32>
    %390 = arith.mulf %370, %370 : vector<8x32xf32>
    %391 = vector.broadcast %23 : vector<8x1xf32> to vector<8x32xf32>
    %392 = arith.mulf %390, %391 : vector<8x32xf32>
    %cst_109 = arith.constant dense<0.000000e+00> : vector<32xf32>
    %393 = vector.multi_reduction <add>, %392, %cst_109 [0] : vector<8x32xf32> to vector<32xf32>
    %394 = vector.shape_cast %393 : vector<32xf32> to vector<1x32xf32>
    %395 = arith.addf %389, %394 : vector<1x32xf32>
    %cst_110 = arith.constant 1.250000e-01 : f32
    %396 = vector.broadcast %cst_110 : f32 to vector<1x32xf32>
    %397 = arith.mulf %395, %396 : vector<1x32xf32>
    %cst_111 = arith.constant 9.99999974E-6 : f32
    %398 = vector.broadcast %cst_111 : f32 to vector<1x32xf32>
    %399 = arith.addf %397, %398 : vector<1x32xf32>
    %400 = math.rsqrt %399 : vector<1x32xf32>
    %401 = arith.mulf %400, %337 : vector<1x32xf32>
    %402 = vector.broadcast %401 : vector<1x32xf32> to vector<8x32xf32>
    %403 = arith.mulf %364, %402 : vector<8x32xf32>
    %404 = vector.broadcast %339 : vector<1x32xf32> to vector<8x32xf32>
    %405 = arith.addf %403, %404 : vector<8x32xf32>
    %cst_112 = arith.constant 0.000000e+00 : f32
    %406 = vector.broadcast %cst_112 : f32 to vector<8x32xf32>
    %407 = arith.maximumf %405, %406 : vector<8x32xf32>
    %408 = vector.broadcast %401 : vector<1x32xf32> to vector<8x32xf32>
    %409 = arith.mulf %366, %408 : vector<8x32xf32>
    %410 = vector.broadcast %339 : vector<1x32xf32> to vector<8x32xf32>
    %411 = arith.addf %409, %410 : vector<8x32xf32>
    %cst_113 = arith.constant 0.000000e+00 : f32
    %412 = vector.broadcast %cst_113 : f32 to vector<8x32xf32>
    %413 = arith.maximumf %411, %412 : vector<8x32xf32>
    %414 = vector.broadcast %401 : vector<1x32xf32> to vector<8x32xf32>
    %415 = arith.mulf %368, %414 : vector<8x32xf32>
    %416 = vector.broadcast %339 : vector<1x32xf32> to vector<8x32xf32>
    %417 = arith.addf %415, %416 : vector<8x32xf32>
    %cst_114 = arith.constant 0.000000e+00 : f32
    %418 = vector.broadcast %cst_114 : f32 to vector<8x32xf32>
    %419 = arith.maximumf %417, %418 : vector<8x32xf32>
    %420 = vector.broadcast %401 : vector<1x32xf32> to vector<8x32xf32>
    %421 = arith.mulf %370, %420 : vector<8x32xf32>
    %422 = vector.broadcast %339 : vector<1x32xf32> to vector<8x32xf32>
    %423 = arith.addf %421, %422 : vector<8x32xf32>
    %cst_115 = arith.constant 0.000000e+00 : f32
    %424 = vector.broadcast %cst_115 : f32 to vector<8x32xf32>
    %425 = arith.maximumf %423, %424 : vector<8x32xf32>
    %426 = tpu.concatenate %407, %413, %419, %425 in 0 : vector<8x32xf32>, vector<8x32xf32>, vector<8x32xf32>, vector<8x32xf32> -> vector<32x32xf32>
    %427 = arith.index_cast %arg0 : i32 to index
    %c0_116 = arith.constant 0 : index
    %c0_117 = arith.constant 0 : index
    %c0_118 = arith.constant 0 : index
    %428 = vector.load %arg18[%427, %c0_116, %c0_117, %c0_118] : memref<4x2x32x16xf32, #tpu.memory_space<vmem>>, vector<1x2x32x16xf32>
    %429 = vector.shape_cast %428 : vector<1x2x32x16xf32> to vector<2x32x16xf32>
    %430 = arith.index_cast %arg0 : i32 to index
    %c0_119 = arith.constant 0 : index
    %c0_120 = arith.constant 0 : index
    %c0_121 = arith.constant 0 : index
    %431 = vector.load %arg19[%430, %c0_119, %c0_120, %c0_121] : memref<4x3x1x16xf32, #tpu.memory_space<vmem>>, vector<1x3x1x16xf32>
    %432 = vector.shape_cast %431 : vector<1x3x1x16xf32> to vector<3x1x16xf32>
    %433 = tpu.iota {dimensions = array<i32: 0>} : vector<32x1xi32>
    %c8_i32_122 = arith.constant 8 : i32
    %c0_i32_123 = arith.constant 0 : i32
    %434 = arith.cmpi eq, %c8_i32_122, %c0_i32_123 : i32
    %c1_i32_124 = arith.constant 1 : i32
    %435 = arith.select %434, %c1_i32_124, %c8_i32_122 : i32
    %436 = vector.broadcast %435 : i32 to vector<32x1xi32>
    %437 = arith.remsi %433, %436 : vector<32x1xi32>
    %c0_i32_125 = arith.constant 0 : i32
    %438 = vector.broadcast %c0_i32_125 : i32 to vector<32x1xi32>
    %439 = arith.cmpi ne, %437, %438 : vector<32x1xi32>
    %c0_i32_126 = arith.constant 0 : i32
    %440 = vector.broadcast %c0_i32_126 : i32 to vector<32x1xi32>
    %441 = arith.cmpi slt, %437, %440 : vector<32x1xi32>
    %c0_i32_127 = arith.constant 0 : i32
    %442 = arith.cmpi slt, %435, %c0_i32_127 : i32
    %443 = vector.broadcast %442 : i1 to vector<32x1xi1>
    %444 = vector.broadcast %443 : vector<32x1xi1> to vector<32x1xi1>
    %445 = arith.xori %441, %444 : vector<32x1xi1>
    %446 = arith.andi %445, %439 : vector<32x1xi1>
    %447 = vector.broadcast %435 : i32 to vector<32x1xi32>
    %448 = arith.addi %437, %447 : vector<32x1xi32>
    %449 = arith.select %446, %448, %437 : vector<32x1xi1>, vector<32x1xi32>
    %c2_i32_128 = arith.constant 2 : i32
    %450 = vector.broadcast %c2_i32_128 : i32 to vector<32x1xi32>
    %451 = arith.cmpi slt, %449, %450 : vector<32x1xi32>
    %452 = arith.extui %451 : vector<32x1xi1> to vector<32x1xi32>
    %453 = arith.sitofp %452 : vector<32x1xi32> to vector<32x1xf32>
    %454 = vector.extract_strided_slice %429 {offsets = [0, 0, 0], sizes = [1, 32, 16], strides = [1, 1, 1]} : vector<2x32x16xf32> to vector<1x32x16xf32>
    %455 = vector.shape_cast %454 : vector<1x32x16xf32> to vector<32x16xf32>
    %cst_129 = arith.constant dense<0.000000e+00> : vector<32x16xf32>
    %456 = tpu.matmul %426, %455, %cst_129 {dimension_numbers = #tpu.dot_dimension_numbers<[1], [0], [0], [1], [0, 0, 1, 1], [], []>} : vector<32x32xf32>, vector<32x16xf32>, vector<32x16xf32> -> vector<32x16xf32>
    %457 = vector.extract_strided_slice %432 {offsets = [0, 0, 0], sizes = [1, 1, 16], strides = [1, 1, 1]} : vector<3x1x16xf32> to vector<1x1x16xf32>
    %458 = vector.shape_cast %457 : vector<1x1x16xf32> to vector<1x16xf32>
    %459 = vector.broadcast %458 : vector<1x16xf32> to vector<32x16xf32>
    %460 = arith.addf %456, %459 : vector<32x16xf32>
    %461 = vector.extract_strided_slice %429 {offsets = [1, 0, 0], sizes = [1, 32, 16], strides = [1, 1, 1]} : vector<2x32x16xf32> to vector<1x32x16xf32>
    %462 = vector.shape_cast %461 : vector<1x32x16xf32> to vector<32x16xf32>
    %cst_130 = arith.constant dense<0.000000e+00> : vector<32x16xf32>
    %463 = tpu.matmul %426, %462, %cst_130 {dimension_numbers = #tpu.dot_dimension_numbers<[1], [0], [0], [1], [0, 0, 1, 1], [], []>} : vector<32x32xf32>, vector<32x16xf32>, vector<32x16xf32> -> vector<32x16xf32>
    %464 = vector.extract_strided_slice %432 {offsets = [0, 0, 0], sizes = [1, 1, 16], strides = [1, 1, 1]} : vector<3x1x16xf32> to vector<1x1x16xf32>
    %465 = vector.shape_cast %464 : vector<1x1x16xf32> to vector<1x16xf32>
    %466 = vector.broadcast %465 : vector<1x16xf32> to vector<32x16xf32>
    %467 = arith.addf %463, %466 : vector<32x16xf32>
    %468 = vector.extract_strided_slice %432 {offsets = [1, 0, 0], sizes = [1, 1, 16], strides = [1, 1, 1]} : vector<3x1x16xf32> to vector<1x1x16xf32>
    %469 = vector.shape_cast %468 : vector<1x1x16xf32> to vector<1x16xf32>
    %470 = vector.extract_strided_slice %432 {offsets = [2, 0, 0], sizes = [1, 1, 16], strides = [1, 1, 1]} : vector<3x1x16xf32> to vector<1x1x16xf32>
    %471 = vector.shape_cast %470 : vector<1x1x16xf32> to vector<1x16xf32>
    %472 = vector.broadcast %453 : vector<32x1xf32> to vector<32x16xf32>
    %473 = arith.mulf %460, %472 : vector<32x16xf32>
    %cst_131 = arith.constant dense<0.000000e+00> : vector<16xf32>
    %474 = vector.multi_reduction <add>, %473, %cst_131 [0] : vector<32x16xf32> to vector<16xf32>
    %475 = vector.shape_cast %474 : vector<16xf32> to vector<1x16xf32>
    %cst_132 = arith.constant 0.000000e+00 : f32
    %476 = vector.broadcast %cst_132 : f32 to vector<1x16xf32>
    %477 = arith.addf %476, %475 : vector<1x16xf32>
    %478 = vector.broadcast %453 : vector<32x1xf32> to vector<32x16xf32>
    %479 = arith.mulf %467, %478 : vector<32x16xf32>
    %cst_133 = arith.constant dense<0.000000e+00> : vector<16xf32>
    %480 = vector.multi_reduction <add>, %479, %cst_133 [0] : vector<32x16xf32> to vector<16xf32>
    %481 = vector.shape_cast %480 : vector<16xf32> to vector<1x16xf32>
    %482 = arith.addf %477, %481 : vector<1x16xf32>
    %cst_134 = arith.constant 6.250000e-02 : f32
    %483 = vector.broadcast %cst_134 : f32 to vector<1x16xf32>
    %484 = arith.mulf %482, %483 : vector<1x16xf32>
    %485 = vector.broadcast %484 : vector<1x16xf32> to vector<32x16xf32>
    %486 = arith.subf %460, %485 : vector<32x16xf32>
    %487 = vector.broadcast %484 : vector<1x16xf32> to vector<32x16xf32>
    %488 = arith.subf %467, %487 : vector<32x16xf32>
    %489 = arith.mulf %486, %486 : vector<32x16xf32>
    %490 = vector.broadcast %453 : vector<32x1xf32> to vector<32x16xf32>
    %491 = arith.mulf %489, %490 : vector<32x16xf32>
    %cst_135 = arith.constant dense<0.000000e+00> : vector<16xf32>
    %492 = vector.multi_reduction <add>, %491, %cst_135 [0] : vector<32x16xf32> to vector<16xf32>
    %493 = vector.shape_cast %492 : vector<16xf32> to vector<1x16xf32>
    %cst_136 = arith.constant 0.000000e+00 : f32
    %494 = vector.broadcast %cst_136 : f32 to vector<1x16xf32>
    %495 = arith.addf %494, %493 : vector<1x16xf32>
    %496 = arith.mulf %488, %488 : vector<32x16xf32>
    %497 = vector.broadcast %453 : vector<32x1xf32> to vector<32x16xf32>
    %498 = arith.mulf %496, %497 : vector<32x16xf32>
    %cst_137 = arith.constant dense<0.000000e+00> : vector<16xf32>
    %499 = vector.multi_reduction <add>, %498, %cst_137 [0] : vector<32x16xf32> to vector<16xf32>
    %500 = vector.shape_cast %499 : vector<16xf32> to vector<1x16xf32>
    %501 = arith.addf %495, %500 : vector<1x16xf32>
    %cst_138 = arith.constant 6.250000e-02 : f32
    %502 = vector.broadcast %cst_138 : f32 to vector<1x16xf32>
    %503 = arith.mulf %501, %502 : vector<1x16xf32>
    %cst_139 = arith.constant 9.99999974E-6 : f32
    %504 = vector.broadcast %cst_139 : f32 to vector<1x16xf32>
    %505 = arith.addf %503, %504 : vector<1x16xf32>
    %506 = math.rsqrt %505 : vector<1x16xf32>
    %507 = arith.mulf %506, %469 : vector<1x16xf32>
    %508 = vector.broadcast %507 : vector<1x16xf32> to vector<32x16xf32>
    %509 = arith.mulf %486, %508 : vector<32x16xf32>
    %510 = vector.broadcast %471 : vector<1x16xf32> to vector<32x16xf32>
    %511 = arith.addf %509, %510 : vector<32x16xf32>
    %cst_140 = arith.constant 0.000000e+00 : f32
    %512 = vector.broadcast %cst_140 : f32 to vector<32x16xf32>
    %513 = arith.maximumf %511, %512 : vector<32x16xf32>
    %514 = vector.broadcast %507 : vector<1x16xf32> to vector<32x16xf32>
    %515 = arith.mulf %488, %514 : vector<32x16xf32>
    %516 = vector.broadcast %471 : vector<1x16xf32> to vector<32x16xf32>
    %517 = arith.addf %515, %516 : vector<32x16xf32>
    %cst_141 = arith.constant 0.000000e+00 : f32
    %518 = vector.broadcast %cst_141 : f32 to vector<32x16xf32>
    %519 = arith.maximumf %517, %518 : vector<32x16xf32>
    %520 = tpu.concatenate %513, %519 in 0 : vector<32x16xf32>, vector<32x16xf32> -> vector<64x16xf32>
    %521 = arith.index_cast %arg0 : i32 to index
    %c0_142 = arith.constant 0 : index
    %c0_143 = arith.constant 0 : index
    %c0_144 = arith.constant 0 : index
    %522 = vector.load %arg20[%521, %c0_142, %c0_143, %c0_144] : memref<4x2x16x16xf32, #tpu.memory_space<vmem>>, vector<1x2x16x16xf32>
    %523 = vector.shape_cast %522 : vector<1x2x16x16xf32> to vector<2x16x16xf32>
    %524 = arith.index_cast %arg0 : i32 to index
    %c0_145 = arith.constant 0 : index
    %c0_146 = arith.constant 0 : index
    %c0_147 = arith.constant 0 : index
    %525 = vector.load %arg21[%524, %c0_145, %c0_146, %c0_147] : memref<4x3x1x16xf32, #tpu.memory_space<vmem>>, vector<1x3x1x16xf32>
    %526 = vector.shape_cast %525 : vector<1x3x1x16xf32> to vector<3x1x16xf32>
    %527 = tpu.iota {dimensions = array<i32: 0>} : vector<64x1xi32>
    %c8_i32_148 = arith.constant 8 : i32
    %c0_i32_149 = arith.constant 0 : i32
    %528 = arith.cmpi eq, %c8_i32_148, %c0_i32_149 : i32
    %c1_i32_150 = arith.constant 1 : i32
    %529 = arith.select %528, %c1_i32_150, %c8_i32_148 : i32
    %530 = vector.broadcast %529 : i32 to vector<64x1xi32>
    %531 = arith.remsi %527, %530 : vector<64x1xi32>
    %c0_i32_151 = arith.constant 0 : i32
    %532 = vector.broadcast %c0_i32_151 : i32 to vector<64x1xi32>
    %533 = arith.cmpi ne, %531, %532 : vector<64x1xi32>
    %c0_i32_152 = arith.constant 0 : i32
    %534 = vector.broadcast %c0_i32_152 : i32 to vector<64x1xi32>
    %535 = arith.cmpi slt, %531, %534 : vector<64x1xi32>
    %c0_i32_153 = arith.constant 0 : i32
    %536 = arith.cmpi slt, %529, %c0_i32_153 : i32
    %537 = vector.broadcast %536 : i1 to vector<64x1xi1>
    %538 = vector.broadcast %537 : vector<64x1xi1> to vector<64x1xi1>
    %539 = arith.xori %535, %538 : vector<64x1xi1>
    %540 = arith.andi %539, %533 : vector<64x1xi1>
    %541 = vector.broadcast %529 : i32 to vector<64x1xi32>
    %542 = arith.addi %531, %541 : vector<64x1xi32>
    %543 = arith.select %540, %542, %531 : vector<64x1xi1>, vector<64x1xi32>
    %c2_i32_154 = arith.constant 2 : i32
    %544 = vector.broadcast %c2_i32_154 : i32 to vector<64x1xi32>
    %545 = arith.cmpi slt, %543, %544 : vector<64x1xi32>
    %546 = arith.extui %545 : vector<64x1xi1> to vector<64x1xi32>
    %547 = arith.sitofp %546 : vector<64x1xi32> to vector<64x1xf32>
    %548 = vector.extract_strided_slice %523 {offsets = [0, 0, 0], sizes = [1, 16, 16], strides = [1, 1, 1]} : vector<2x16x16xf32> to vector<1x16x16xf32>
    %549 = vector.shape_cast %548 : vector<1x16x16xf32> to vector<16x16xf32>
    %cst_155 = arith.constant dense<0.000000e+00> : vector<64x16xf32>
    %550 = tpu.matmul %520, %549, %cst_155 {dimension_numbers = #tpu.dot_dimension_numbers<[1], [0], [0], [1], [0, 0, 1, 1], [], []>} : vector<64x16xf32>, vector<16x16xf32>, vector<64x16xf32> -> vector<64x16xf32>
    %551 = vector.extract_strided_slice %526 {offsets = [0, 0, 0], sizes = [1, 1, 16], strides = [1, 1, 1]} : vector<3x1x16xf32> to vector<1x1x16xf32>
    %552 = vector.shape_cast %551 : vector<1x1x16xf32> to vector<1x16xf32>
    %553 = vector.broadcast %552 : vector<1x16xf32> to vector<64x16xf32>
    %554 = arith.addf %550, %553 : vector<64x16xf32>
    %555 = vector.extract_strided_slice %523 {offsets = [1, 0, 0], sizes = [1, 16, 16], strides = [1, 1, 1]} : vector<2x16x16xf32> to vector<1x16x16xf32>
    %556 = vector.shape_cast %555 : vector<1x16x16xf32> to vector<16x16xf32>
    %cst_156 = arith.constant dense<0.000000e+00> : vector<64x16xf32>
    %557 = tpu.matmul %520, %556, %cst_156 {dimension_numbers = #tpu.dot_dimension_numbers<[1], [0], [0], [1], [0, 0, 1, 1], [], []>} : vector<64x16xf32>, vector<16x16xf32>, vector<64x16xf32> -> vector<64x16xf32>
    %558 = vector.extract_strided_slice %526 {offsets = [0, 0, 0], sizes = [1, 1, 16], strides = [1, 1, 1]} : vector<3x1x16xf32> to vector<1x1x16xf32>
    %559 = vector.shape_cast %558 : vector<1x1x16xf32> to vector<1x16xf32>
    %560 = vector.broadcast %559 : vector<1x16xf32> to vector<64x16xf32>
    %561 = arith.addf %557, %560 : vector<64x16xf32>
    %562 = vector.extract_strided_slice %526 {offsets = [1, 0, 0], sizes = [1, 1, 16], strides = [1, 1, 1]} : vector<3x1x16xf32> to vector<1x1x16xf32>
    %563 = vector.shape_cast %562 : vector<1x1x16xf32> to vector<1x16xf32>
    %564 = vector.extract_strided_slice %526 {offsets = [2, 0, 0], sizes = [1, 1, 16], strides = [1, 1, 1]} : vector<3x1x16xf32> to vector<1x1x16xf32>
    %565 = vector.shape_cast %564 : vector<1x1x16xf32> to vector<1x16xf32>
    %566 = vector.broadcast %547 : vector<64x1xf32> to vector<64x16xf32>
    %567 = arith.mulf %554, %566 : vector<64x16xf32>
    %cst_157 = arith.constant dense<0.000000e+00> : vector<16xf32>
    %568 = vector.multi_reduction <add>, %567, %cst_157 [0] : vector<64x16xf32> to vector<16xf32>
    %569 = vector.shape_cast %568 : vector<16xf32> to vector<1x16xf32>
    %cst_158 = arith.constant 0.000000e+00 : f32
    %570 = vector.broadcast %cst_158 : f32 to vector<1x16xf32>
    %571 = arith.addf %570, %569 : vector<1x16xf32>
    %572 = vector.broadcast %547 : vector<64x1xf32> to vector<64x16xf32>
    %573 = arith.mulf %561, %572 : vector<64x16xf32>
    %cst_159 = arith.constant dense<0.000000e+00> : vector<16xf32>
    %574 = vector.multi_reduction <add>, %573, %cst_159 [0] : vector<64x16xf32> to vector<16xf32>
    %575 = vector.shape_cast %574 : vector<16xf32> to vector<1x16xf32>
    %576 = arith.addf %571, %575 : vector<1x16xf32>
    %cst_160 = arith.constant 3.125000e-02 : f32
    %577 = vector.broadcast %cst_160 : f32 to vector<1x16xf32>
    %578 = arith.mulf %576, %577 : vector<1x16xf32>
    %579 = vector.broadcast %578 : vector<1x16xf32> to vector<64x16xf32>
    %580 = arith.subf %554, %579 : vector<64x16xf32>
    %581 = vector.broadcast %578 : vector<1x16xf32> to vector<64x16xf32>
    %582 = arith.subf %561, %581 : vector<64x16xf32>
    %583 = arith.mulf %580, %580 : vector<64x16xf32>
    %584 = vector.broadcast %547 : vector<64x1xf32> to vector<64x16xf32>
    %585 = arith.mulf %583, %584 : vector<64x16xf32>
    %cst_161 = arith.constant dense<0.000000e+00> : vector<16xf32>
    %586 = vector.multi_reduction <add>, %585, %cst_161 [0] : vector<64x16xf32> to vector<16xf32>
    %587 = vector.shape_cast %586 : vector<16xf32> to vector<1x16xf32>
    %cst_162 = arith.constant 0.000000e+00 : f32
    %588 = vector.broadcast %cst_162 : f32 to vector<1x16xf32>
    %589 = arith.addf %588, %587 : vector<1x16xf32>
    %590 = arith.mulf %582, %582 : vector<64x16xf32>
    %591 = vector.broadcast %547 : vector<64x1xf32> to vector<64x16xf32>
    %592 = arith.mulf %590, %591 : vector<64x16xf32>
    %cst_163 = arith.constant dense<0.000000e+00> : vector<16xf32>
    %593 = vector.multi_reduction <add>, %592, %cst_163 [0] : vector<64x16xf32> to vector<16xf32>
    %594 = vector.shape_cast %593 : vector<16xf32> to vector<1x16xf32>
    %595 = arith.addf %589, %594 : vector<1x16xf32>
    %cst_164 = arith.constant 3.125000e-02 : f32
    %596 = vector.broadcast %cst_164 : f32 to vector<1x16xf32>
    %597 = arith.mulf %595, %596 : vector<1x16xf32>
    %cst_165 = arith.constant 9.99999974E-6 : f32
    %598 = vector.broadcast %cst_165 : f32 to vector<1x16xf32>
    %599 = arith.addf %597, %598 : vector<1x16xf32>
    %600 = math.rsqrt %599 : vector<1x16xf32>
    %601 = arith.mulf %600, %563 : vector<1x16xf32>
    %602 = vector.broadcast %601 : vector<1x16xf32> to vector<64x16xf32>
    %603 = arith.mulf %580, %602 : vector<64x16xf32>
    %604 = vector.broadcast %565 : vector<1x16xf32> to vector<64x16xf32>
    %605 = arith.addf %603, %604 : vector<64x16xf32>
    %cst_166 = arith.constant 0.000000e+00 : f32
    %606 = vector.broadcast %cst_166 : f32 to vector<64x16xf32>
    %607 = arith.maximumf %605, %606 : vector<64x16xf32>
    %608 = vector.broadcast %601 : vector<1x16xf32> to vector<64x16xf32>
    %609 = arith.mulf %582, %608 : vector<64x16xf32>
    %610 = vector.broadcast %565 : vector<1x16xf32> to vector<64x16xf32>
    %611 = arith.addf %609, %610 : vector<64x16xf32>
    %cst_167 = arith.constant 0.000000e+00 : f32
    %612 = vector.broadcast %cst_167 : f32 to vector<64x16xf32>
    %613 = arith.maximumf %611, %612 : vector<64x16xf32>
    %614 = tpu.concatenate %607, %613 in 0 : vector<64x16xf32>, vector<64x16xf32> -> vector<128x16xf32>
    %615 = arith.index_cast %arg0 : i32 to index
    %c0_168 = arith.constant 0 : index
    %c0_169 = arith.constant 0 : index
    %616 = vector.load %arg22[%615, %c0_168, %c0_169] : memref<4x16x112xf32, #tpu.memory_space<vmem>>, vector<1x16x112xf32>
    %617 = vector.shape_cast %616 : vector<1x16x112xf32> to vector<16x112xf32>
    %618 = arith.index_cast %arg0 : i32 to index
    %c0_170 = arith.constant 0 : index
    %c0_171 = arith.constant 0 : index
    %c0_172 = arith.constant 0 : index
    %619 = vector.load %arg23[%618, %c0_170, %c0_171, %c0_172] : memref<4x3x1x112xf32, #tpu.memory_space<vmem>>, vector<1x3x1x112xf32>
    %620 = vector.shape_cast %619 : vector<1x3x1x112xf32> to vector<3x1x112xf32>
    %621 = tpu.iota {dimensions = array<i32: 0>} : vector<128x1xi32>
    %c8_i32_173 = arith.constant 8 : i32
    %c0_i32_174 = arith.constant 0 : i32
    %622 = arith.cmpi eq, %c8_i32_173, %c0_i32_174 : i32
    %c1_i32_175 = arith.constant 1 : i32
    %623 = arith.select %622, %c1_i32_175, %c8_i32_173 : i32
    %624 = vector.broadcast %623 : i32 to vector<128x1xi32>
    %625 = arith.remsi %621, %624 : vector<128x1xi32>
    %c0_i32_176 = arith.constant 0 : i32
    %626 = vector.broadcast %c0_i32_176 : i32 to vector<128x1xi32>
    %627 = arith.cmpi ne, %625, %626 : vector<128x1xi32>
    %c0_i32_177 = arith.constant 0 : i32
    %628 = vector.broadcast %c0_i32_177 : i32 to vector<128x1xi32>
    %629 = arith.cmpi slt, %625, %628 : vector<128x1xi32>
    %c0_i32_178 = arith.constant 0 : i32
    %630 = arith.cmpi slt, %623, %c0_i32_178 : i32
    %631 = vector.broadcast %630 : i1 to vector<128x1xi1>
    %632 = vector.broadcast %631 : vector<128x1xi1> to vector<128x1xi1>
    %633 = arith.xori %629, %632 : vector<128x1xi1>
    %634 = arith.andi %633, %627 : vector<128x1xi1>
    %635 = vector.broadcast %623 : i32 to vector<128x1xi32>
    %636 = arith.addi %625, %635 : vector<128x1xi32>
    %637 = arith.select %634, %636, %625 : vector<128x1xi1>, vector<128x1xi32>
    %c2_i32_179 = arith.constant 2 : i32
    %638 = vector.broadcast %c2_i32_179 : i32 to vector<128x1xi32>
    %639 = arith.cmpi slt, %637, %638 : vector<128x1xi32>
    %640 = arith.extui %639 : vector<128x1xi1> to vector<128x1xi32>
    %641 = arith.sitofp %640 : vector<128x1xi32> to vector<128x1xf32>
    %cst_180 = arith.constant dense<0.000000e+00> : vector<128x112xf32>
    %642 = tpu.matmul %614, %617, %cst_180 {dimension_numbers = #tpu.dot_dimension_numbers<[1], [0], [0], [1], [0, 0, 1, 1], [], []>} : vector<128x16xf32>, vector<16x112xf32>, vector<128x112xf32> -> vector<128x112xf32>
    %643 = vector.extract_strided_slice %620 {offsets = [0, 0, 0], sizes = [1, 1, 112], strides = [1, 1, 1]} : vector<3x1x112xf32> to vector<1x1x112xf32>
    %644 = vector.shape_cast %643 : vector<1x1x112xf32> to vector<1x112xf32>
    %645 = vector.broadcast %644 : vector<1x112xf32> to vector<128x112xf32>
    %646 = arith.addf %642, %645 : vector<128x112xf32>
    %c0_181 = arith.constant 0 : index
    %c0_182 = arith.constant 0 : index
    %647 = vector.load %arg24[%c0_181, %c0_182] : memref<112x112xf32, #tpu.memory_space<vmem>>, vector<112x112xf32>
    %648 = vector.broadcast %641 : vector<128x1xf32> to vector<128x112xf32>
    %649 = arith.mulf %646, %648 : vector<128x112xf32>
    %cst_183 = arith.constant dense<0.000000e+00> : vector<112xf32>
    %650 = vector.multi_reduction <add>, %649, %cst_183 [0] : vector<128x112xf32> to vector<112xf32>
    %651 = vector.shape_cast %650 : vector<112xf32> to vector<1x112xf32>
    %cst_184 = arith.constant dense<0.000000e+00> : vector<1x112xf32>
    %652 = tpu.matmul %651, %647, %cst_184 {dimension_numbers = #tpu.dot_dimension_numbers<[1], [0], [0], [1], [0, 0, 1, 1], [], []>} : vector<1x112xf32>, vector<112x112xf32>, vector<1x112xf32> -> vector<1x112xf32>
    %cst_185 = arith.constant 0.00446428591 : f32
    %653 = vector.broadcast %cst_185 : f32 to vector<1x112xf32>
    %654 = arith.mulf %652, %653 : vector<1x112xf32>
    %655 = vector.broadcast %654 : vector<1x112xf32> to vector<128x112xf32>
    %656 = arith.subf %646, %655 : vector<128x112xf32>
    %657 = arith.mulf %656, %656 : vector<128x112xf32>
    %658 = vector.broadcast %641 : vector<128x1xf32> to vector<128x112xf32>
    %659 = arith.mulf %657, %658 : vector<128x112xf32>
    %cst_186 = arith.constant dense<0.000000e+00> : vector<112xf32>
    %660 = vector.multi_reduction <add>, %659, %cst_186 [0] : vector<128x112xf32> to vector<112xf32>
    %661 = vector.shape_cast %660 : vector<112xf32> to vector<1x112xf32>
    %cst_187 = arith.constant dense<0.000000e+00> : vector<1x112xf32>
    %662 = tpu.matmul %661, %647, %cst_187 {dimension_numbers = #tpu.dot_dimension_numbers<[1], [0], [0], [1], [0, 0, 1, 1], [], []>} : vector<1x112xf32>, vector<112x112xf32>, vector<1x112xf32> -> vector<1x112xf32>
    %cst_188 = arith.constant 0.00446428591 : f32
    %663 = vector.broadcast %cst_188 : f32 to vector<1x112xf32>
    %664 = arith.mulf %662, %663 : vector<1x112xf32>
    %cst_189 = arith.constant 9.99999974E-6 : f32
    %665 = vector.broadcast %cst_189 : f32 to vector<1x112xf32>
    %666 = arith.addf %664, %665 : vector<1x112xf32>
    %667 = math.rsqrt %666 : vector<1x112xf32>
    %668 = vector.extract_strided_slice %620 {offsets = [1, 0, 0], sizes = [1, 1, 112], strides = [1, 1, 1]} : vector<3x1x112xf32> to vector<1x1x112xf32>
    %669 = vector.shape_cast %668 : vector<1x1x112xf32> to vector<1x112xf32>
    %670 = arith.mulf %667, %669 : vector<1x112xf32>
    %671 = vector.broadcast %670 : vector<1x112xf32> to vector<128x112xf32>
    %672 = arith.mulf %656, %671 : vector<128x112xf32>
    %673 = vector.extract_strided_slice %620 {offsets = [2, 0, 0], sizes = [1, 1, 112], strides = [1, 1, 1]} : vector<3x1x112xf32> to vector<1x1x112xf32>
    %674 = vector.shape_cast %673 : vector<1x1x112xf32> to vector<1x112xf32>
    %675 = vector.broadcast %674 : vector<1x112xf32> to vector<128x112xf32>
    %676 = arith.addf %672, %675 : vector<128x112xf32>
    %cst_190 = arith.constant 0.000000e+00 : f32
    %677 = vector.broadcast %cst_190 : f32 to vector<128x112xf32>
    %678 = arith.maximumf %676, %677 : vector<128x112xf32>
    %679 = arith.index_cast %arg0 : i32 to index
    %c0_191 = arith.constant 0 : index
    %c0_192 = arith.constant 0 : index
    %680 = vector.load %arg25[%679, %c0_191, %c0_192] : memref<4x112x128xf32, #tpu.memory_space<vmem>>, vector<1x112x128xf32>
    %681 = vector.shape_cast %680 : vector<1x112x128xf32> to vector<112x128xf32>
    %cst_193 = arith.constant dense<0.000000e+00> : vector<128x128xf32>
    %682 = tpu.matmul %678, %681, %cst_193 {dimension_numbers = #tpu.dot_dimension_numbers<[1], [0], [0], [1], [0, 0, 1, 1], [], []>} : vector<128x112xf32>, vector<112x128xf32>, vector<128x128xf32> -> vector<128x128xf32>
    %683 = arith.index_cast %arg0 : i32 to index
    %c0_194 = arith.constant 0 : index
    %c0_195 = arith.constant 0 : index
    %684 = vector.load %arg26[%683, %c0_194, %c0_195] : memref<4x1x128xf32, #tpu.memory_space<vmem>>, vector<1x1x128xf32>
    %685 = vector.shape_cast %684 : vector<1x1x128xf32> to vector<1x128xf32>
    %686 = vector.broadcast %685 : vector<1x128xf32> to vector<128x128xf32>
    %687 = arith.addf %682, %686 : vector<128x128xf32>
    %c0_196 = arith.constant 0 : index
    %c0_197 = arith.constant 0 : index
    %c0_198 = arith.constant 0 : index
    %c0_199 = arith.constant 0 : index
    %688 = vector.load %arg27[%c0_196, %c0_197, %c0_198, %c0_199] : memref<1x1x128x128xf32, #tpu.memory_space<vmem>>, vector<1x1x128x128xf32>
    %689 = vector.shape_cast %688 : vector<1x1x128x128xf32> to vector<128x128xf32>
    %690 = vector.shape_cast %687 : vector<128x128xf32> to vector<1x1x128x128xf32>
    tpu.vector_store %arg27[%c0_196, %c0_197, %c0_198, %c0_199], %690 {strides = array<i32>} : memref<1x1x128x128xf32, #tpu.memory_space<vmem>>, vector<1x1x128x128xf32>,
    return
  }
  func.func @transform_0(%arg0: i32, %arg1: i32) -> (i32, i32) {
    %c0_i32 = arith.constant 0 : i32
    %c0_i32_0 = arith.constant 0 : i32
    %c0_i32_1 = arith.constant 0 : i32
    return %c0_i32, %c0_i32_0 : i32, i32
  }
  func.func @transform_1(%arg0: i32, %arg1: i32) -> (i32, i32) {
    %c0_i32 = arith.constant 0 : i32
    %c0_i32_0 = arith.constant 0 : i32
    %c0_i32_1 = arith.constant 0 : i32
    return %c0_i32, %c0_i32_0 : i32, i32
  }
  func.func @transform_2(%arg0: i32, %arg1: i32) -> (i32, i32, i32) {
    %c0_i32 = arith.constant 0 : i32
    %c0_i32_0 = arith.constant 0 : i32
    %c0_i32_1 = arith.constant 0 : i32
    %c0_i32_2 = arith.constant 0 : i32
    return %c0_i32, %c0_i32_0, %c0_i32_1 : i32, i32, i32
  }
  func.func @transform_3(%arg0: i32, %arg1: i32) -> (i32, i32, i32) {
    %c0_i32 = arith.constant 0 : i32
    %c0_i32_0 = arith.constant 0 : i32
    %c0_i32_1 = arith.constant 0 : i32
    %c0_i32_2 = arith.constant 0 : i32
    return %c0_i32, %c0_i32_0, %c0_i32_1 : i32, i32, i32
  }
  func.func @transform_4(%arg0: i32, %arg1: i32) -> (i32, i32) {
    %c0_i32 = arith.constant 0 : i32
    %c0_i32_0 = arith.constant 0 : i32
    %c0_i32_1 = arith.constant 0 : i32
    return %c0_i32, %c0_i32_0 : i32, i32
  }
  func.func @transform_5(%arg0: i32, %arg1: i32) -> (i32, i32, i32) {
    %c0_i32 = arith.constant 0 : i32
    %c0_i32_0 = arith.constant 0 : i32
    %c0_i32_1 = arith.constant 0 : i32
    %c0_i32_2 = arith.constant 0 : i32
    return %c0_i32, %c0_i32_0, %c0_i32_1 : i32, i32, i32
  }
  func.func @transform_6(%arg0: i32, %arg1: i32) -> (i32, i32, i32) {
    %c0_i32 = arith.constant 0 : i32
    %c0_i32_0 = arith.constant 0 : i32
    %c0_i32_1 = arith.constant 0 : i32
    %c0_i32_2 = arith.constant 0 : i32
    return %c0_i32, %c0_i32_0, %c0_i32_1 : i32, i32, i32
  }
  func.func @transform_7(%arg0: i32, %arg1: i32) -> (i32, i32, i32) {
    %c0_i32 = arith.constant 0 : i32
    %c0_i32_0 = arith.constant 0 : i32
    %c0_i32_1 = arith.constant 0 : i32
    %c0_i32_2 = arith.constant 0 : i32
    return %c0_i32, %c0_i32_0, %c0_i32_1 : i32, i32, i32
  }
  func.func @transform_8(%arg0: i32, %arg1: i32) -> (i32, i32, i32) {
    %c0_i32 = arith.constant 0 : i32
    %c0_i32_0 = arith.constant 0 : i32
    %c0_i32_1 = arith.constant 0 : i32
    %c0_i32_2 = arith.constant 0 : i32
    return %c0_i32, %c0_i32_0, %c0_i32_1 : i32, i32, i32
  }
  func.func @transform_9(%arg0: i32, %arg1: i32) -> (i32, i32, i32, i32) {
    %c0_i32 = arith.constant 0 : i32
    %c0_i32_0 = arith.constant 0 : i32
    %c0_i32_1 = arith.constant 0 : i32
    %c0_i32_2 = arith.constant 0 : i32
    %c0_i32_3 = arith.constant 0 : i32
    return %c0_i32, %c0_i32_0, %c0_i32_1, %c0_i32_2 : i32, i32, i32, i32
  }
  func.func @transform_10(%arg0: i32, %arg1: i32) -> (i32, i32, i32, i32) {
    %c0_i32 = arith.constant 0 : i32
    %c0_i32_0 = arith.constant 0 : i32
    %c0_i32_1 = arith.constant 0 : i32
    %c0_i32_2 = arith.constant 0 : i32
    %c0_i32_3 = arith.constant 0 : i32
    return %c0_i32, %c0_i32_0, %c0_i32_1, %c0_i32_2 : i32, i32, i32, i32
  }
  func.func @transform_11(%arg0: i32, %arg1: i32) -> (i32, i32, i32, i32) {
    %c0_i32 = arith.constant 0 : i32
    %c0_i32_0 = arith.constant 0 : i32
    %c0_i32_1 = arith.constant 0 : i32
    %c0_i32_2 = arith.constant 0 : i32
    %c0_i32_3 = arith.constant 0 : i32
    return %c0_i32, %c0_i32_0, %c0_i32_1, %c0_i32_2 : i32, i32, i32, i32
  }
  func.func @transform_12(%arg0: i32, %arg1: i32) -> (i32, i32, i32, i32) {
    %c0_i32 = arith.constant 0 : i32
    %c0_i32_0 = arith.constant 0 : i32
    %c0_i32_1 = arith.constant 0 : i32
    %c0_i32_2 = arith.constant 0 : i32
    %c0_i32_3 = arith.constant 0 : i32
    return %c0_i32, %c0_i32_0, %c0_i32_1, %c0_i32_2 : i32, i32, i32, i32
  }
  func.func @transform_13(%arg0: i32, %arg1: i32) -> (i32, i32, i32, i32) {
    %c0_i32 = arith.constant 0 : i32
    %c0_i32_0 = arith.constant 0 : i32
    %c0_i32_1 = arith.constant 0 : i32
    %c0_i32_2 = arith.constant 0 : i32
    %c0_i32_3 = arith.constant 0 : i32
    return %c0_i32, %c0_i32_0, %c0_i32_1, %c0_i32_2 : i32, i32, i32, i32
  }
  func.func @transform_14(%arg0: i32, %arg1: i32) -> (i32, i32, i32, i32) {
    %c0_i32 = arith.constant 0 : i32
    %c0_i32_0 = arith.constant 0 : i32
    %c0_i32_1 = arith.constant 0 : i32
    %c0_i32_2 = arith.constant 0 : i32
    %c0_i32_3 = arith.constant 0 : i32
    return %c0_i32, %c0_i32_0, %c0_i32_1, %c0_i32_2 : i32, i32, i32, i32
  }
  func.func @transform_15(%arg0: i32, %arg1: i32) -> (i32, i32, i32, i32) {
    %c0_i32 = arith.constant 0 : i32
    %c0_i32_0 = arith.constant 0 : i32
    %c0_i32_1 = arith.constant 0 : i32
    %c0_i32_2 = arith.constant 0 : i32
    %c0_i32_3 = arith.constant 0 : i32
    return %c0_i32, %c0_i32_0, %c0_i32_1, %c0_i32_2 : i32, i32, i32, i32
  }
  func.func @transform_16(%arg0: i32, %arg1: i32) -> (i32, i32, i32, i32) {
    %c0_i32 = arith.constant 0 : i32
    %c0_i32_0 = arith.constant 0 : i32
    %c0_i32_1 = arith.constant 0 : i32
    %c0_i32_2 = arith.constant 0 : i32
    %c0_i32_3 = arith.constant 0 : i32
    return %c0_i32, %c0_i32_0, %c0_i32_1, %c0_i32_2 : i32, i32, i32, i32
  }
  func.func @transform_17(%arg0: i32, %arg1: i32) -> (i32, i32, i32, i32) {
    %c0_i32 = arith.constant 0 : i32
    %c0_i32_0 = arith.constant 0 : i32
    %c0_i32_1 = arith.constant 0 : i32
    %c0_i32_2 = arith.constant 0 : i32
    %c0_i32_3 = arith.constant 0 : i32
    return %c0_i32, %c0_i32_0, %c0_i32_1, %c0_i32_2 : i32, i32, i32, i32
  }
  func.func @transform_18(%arg0: i32, %arg1: i32) -> (i32, i32, i32, i32) {
    %c0_i32 = arith.constant 0 : i32
    %c0_i32_0 = arith.constant 0 : i32
    %c0_i32_1 = arith.constant 0 : i32
    %c0_i32_2 = arith.constant 0 : i32
    %c0_i32_3 = arith.constant 0 : i32
    return %c0_i32, %c0_i32_0, %c0_i32_1, %c0_i32_2 : i32, i32, i32, i32
  }
  func.func @transform_19(%arg0: i32, %arg1: i32) -> (i32, i32, i32, i32) {
    %c0_i32 = arith.constant 0 : i32
    %c0_i32_0 = arith.constant 0 : i32
    %c0_i32_1 = arith.constant 0 : i32
    %c0_i32_2 = arith.constant 0 : i32
    %c0_i32_3 = arith.constant 0 : i32
    return %c0_i32, %c0_i32_0, %c0_i32_1, %c0_i32_2 : i32, i32, i32, i32
  }
  func.func @transform_20(%arg0: i32, %arg1: i32) -> (i32, i32, i32) {
    %c0_i32 = arith.constant 0 : i32
    %c0_i32_0 = arith.constant 0 : i32
    %c0_i32_1 = arith.constant 0 : i32
    %c0_i32_2 = arith.constant 0 : i32
    return %c0_i32, %c0_i32_0, %c0_i32_1 : i32, i32, i32
  }
  func.func @transform_21(%arg0: i32, %arg1: i32) -> (i32, i32, i32, i32) {
    %c0_i32 = arith.constant 0 : i32
    %c0_i32_0 = arith.constant 0 : i32
    %c0_i32_1 = arith.constant 0 : i32
    %c0_i32_2 = arith.constant 0 : i32
    %c0_i32_3 = arith.constant 0 : i32
    return %c0_i32, %c0_i32_0, %c0_i32_1, %c0_i32_2 : i32, i32, i32, i32
  }
  func.func @transform_22(%arg0: i32, %arg1: i32) -> (i32, i32) {
    %c0_i32 = arith.constant 0 : i32
    %c0_i32_0 = arith.constant 0 : i32
    %c0_i32_1 = arith.constant 0 : i32
    return %c0_i32, %c0_i32_0 : i32, i32
  }
  func.func @transform_23(%arg0: i32, %arg1: i32) -> (i32, i32, i32) {
    %c0_i32 = arith.constant 0 : i32
    %c0_i32_0 = arith.constant 0 : i32
    %c0_i32_1 = arith.constant 0 : i32
    %c0_i32_2 = arith.constant 0 : i32
    return %c0_i32, %c0_i32_0, %c0_i32_1 : i32, i32, i32
  }
  func.func @transform_24(%arg0: i32, %arg1: i32) -> (i32, i32, i32) {
    %c0_i32 = arith.constant 0 : i32
    %c0_i32_0 = arith.constant 0 : i32
    %c0_i32_1 = arith.constant 0 : i32
    %c0_i32_2 = arith.constant 0 : i32
    return %c0_i32, %c0_i32_0, %c0_i32_1 : i32, i32, i32
  }
  func.func @transform_25(%arg0: i32, %arg1: i32) -> (i32, i32, i32, i32) {
    %c0_i32 = arith.constant 0 : i32
    %c0_i32_0 = arith.constant 0 : i32
    %c0_i32_1 = arith.constant 0 : i32
    return %arg0, %arg1, %c0_i32, %c0_i32_0 : i32, i32, i32, i32
  }
}

</mosaic_0001>

<bundles_post_ra>
// kernel: fwd.1
= control target key start
LH: loop header
LB: loop body
LE: loop exit
PB: predicated region body
PF: predicated region fallthrough
CT: control target
= control target key end

     0   :  { %s3427_s29 = smov 0   ;;  %s3433_s30 = smov 0   ;;  %s4705_s0 = inlined_call_operand.vmem [shape: f32[8,16], index: 0, kind: input, shape index: {}]   ;;  %s4706_s1 = inlined_call_operand.vmem [shape: f32[8,16], index: 1, kind: input, shape index: {}]   ;;  %s4707_s2 = inlined_call_operand.vmem [shape: f32[4,8,16], index: 2, kind: input, shape index: {}]   ;;  %s4708_s3 = inlined_call_operand.vmem [shape: f32[4,8,16], index: 3, kind: input, shape index: {}]   ;;  %s4709_s4 = inlined_call_operand.vmem [shape: f32[16,128], index: 4, kind: input, shape index: {}]   ;;  %s4710_s5 = inlined_call_operand.vmem [shape: f32[3,1,128], index: 5, kind: input, shape index: {}]   ;;  %s4711_s6 = inlined_call_operand.vmem [shape: f32[2,128,16], index: 6, kind: input, shape index: {}]   ;;  %s4712_s7 = inlined_call_operand.vmem [shape: f32[3,1,16], index: 7, kind: input, shape index: {}]   ;;  %s4713_s8 = inlined_call_operand.vmem [shape: f32[4,16,128], index: 8, kind: input, shape index: {}]   ;;  %s4714_s9 = inlined_call_operand.vmem [shape: f32[4,3,1,128], index: 9, kind: input, shape index: {}]   ;;  %s4715_s10 = inlined_call_operand.vmem [shape: f32[4,2,128,16], index: 10, kind: input, shape index: {}]   ;;  %s4716_s11 = inlined_call_operand.vmem [shape: f32[4,3,1,16], index: 11, kind: input, shape index: {}]   ;;  %s4717_s12 = inlined_call_operand.vmem [shape: f32[4,4,16,64], index: 12, kind: input, shape index: {}]   ;;  %s4718_s13 = inlined_call_operand.vmem [shape: f32[4,3,1,64], index: 13, kind: input, shape index: {}]   ;;  %s4719_s14 = inlined_call_operand.vmem [shape: f32[4,4,64,32], index: 14, kind: input, shape index: {}]   ;;  %s4720_s15 = inlined_call_operand.vmem [shape: f32[4,3,1,32], index: 15, kind: input, shape index: {}]   ;;  %s4721_s16 = inlined_call_operand.vmem [shape: f32[4,2,32,16], index: 16, kind: input, shape index: {}]   ;;  %s4722_s17 = inlined_call_operand.vmem [shape: f32[4,3,1,16], index: 17, kind: input, shape index: {}]   ;;  %s4723_s18 = inlined_call_operand.vmem [shape: f32[4,2,16,16], index: 18, kind: input, shape index: {}]   ;;  %s4724_s19 = inlined_call_operand.vmem [shape: f32[4,3,1,16], index: 19, kind: input, shape index: {}]   ;;  %s4725_s20 = inlined_call_operand.vmem [shape: f32[4,16,112], index: 20, kind: input, shape index: {}]   ;;  %s4726_s21 = inlined_call_operand.vmem [shape: f32[4,3,1,112], index: 21, kind: input, shape index: {}]   ;;  %s4727_s22 = inlined_call_operand.vmem [shape: f32[112,112], index: 22, kind: input, shape index: {}]   ;;  %s4728_s23 = inlined_call_operand.vmem [shape: f32[4,112,128], index: 23, kind: input, shape index: {}]   ;;  %s4729_s24 = inlined_call_operand.vmem [shape: f32[4,1,128], index: 24, kind: input, shape index: {}]   ;;  %s4730_s25 = inlined_call_operand.vmem [shape: f32[4,2,128,128], index: 25, kind: output, shape index: {}]  }
   0x1   :  { %4745 = sst [smem:[#allocation7_spill]] %s4705_s0 }
   0x2   :  { %4746 = sst [smem:[#allocation8_spill]] %s4706_s1 }
   0x3   :  { %4747 = sst [smem:[#allocation9_spill]] %s4707_s2  ;;  %s3429_s2 = smov 0  }
   0x4   :  { %4748 = sst [smem:[#allocation10_spill]] %s4708_s3 }
   0x5   :  { %4749 = sst [smem:[#allocation11_spill]] %s4709_s4 }
   0x6   :  { %4750 = sst [smem:[#allocation12_spill]] %s4710_s5 }
   0x7   :  { %4751 = sst [smem:[#allocation13_spill]] %s4711_s6  ;;  %s3431_s6 = smov 0  }
   0x8   :  { %4752 = sst [smem:[#allocation14_spill]] %s4712_s7  ;;  %s3435_s7 = smov 0  }
   0x9   :  { %4753 = sst [smem:[#allocation15_spill]] %s4713_s8 }
   0xa   :  { %4754 = sst [smem:[#allocation16_spill]] %s4714_s9 }
   0xb   :  { %4755 = sst [smem:[#allocation17_spill]] %s4730_s25 }
   0xc LB: > { %4756 = sst [smem:[#allocation2_spill]] %s3285_s6  ;;  %s44_s3 = sadd.s32 1, %s3285_s6  ;;  %s3293_s7 = sphi %s3435_s7, %s35_s7   ;;  %s3289_s30 = sphi %s3433_s30, %s4782_s30   ;;  %s3285_s6 = sphi %s3431_s6, %s4781_s6   ;;  %s3281_s2 = sphi %s3429_s2, %s4780_s2   ;;  %s3277_s29 = sphi %s3427_s29, %s4779_s29  }
   0xd   : > { %4757 = sst [smem:[#allocation3_spill]] %s3289_s30  ;;  %s47_s26 = sadd.s32 1, %s3289_s30 }
   0xe   : > { %4758 = sst [smem:[#allocation4_spill]] %s3293_s7  ;;  %p45_p0 = scmp.ge.s32.totalorder %s44_s3, 2 }
   0xf   : > { %p3067_p1 = scmp.ge.s32.totalorder %s3293_s7, 1  ;;  %p691_p2 = scmp.lt.s32.totalorder %s3293_s7, 9 }
  0x10   : > { %s4784_s3 = smov (%p45_p0, %s44_s3), 0  ;;  %s4786_s26 = smov (!%p45_p0, %s47_s26), %s3289_s30 }
  0x11   : > { %4759 = sst [smem:[#allocation5_spill]] %s4784_s3  ;;  %p692_p3 = pnand %p3067_p1, %p691_p2 }
  0x12   : > { %p49_p4 = scmp.ge.s32.totalorder %s4786_s26, 4  ;;  %s4761_s27 = sld [smem:[#allocation11_spill]] (!%p692_p3) }
  0x13   : > { %695 = sbr.rel (%p692_p3) target bundleno = 2884 (0xb44), region = 120  ;;  %s4762_s0 = sld [smem:[#allocation7_spill]] (!%p692_p3) }
  0x14   : > { %s4788_s26 = smov (%p49_p4, %s4786_s26), 0  ;;  %s4737_s4 = smov (!%p692_p3), 64  }
  0x15   : > { %4760 = sst [smem:[#allocation6_spill]] %s4788_s26  ;;  %s4740_s28 = sshll.u32 (!%p692_p3), %s3281_s2, 4 }
  0x16   : > { %s4763_s26 = sld [smem:[#allocation12_spill]] (!%p692_p3)  ;;  %p767_p5 = scmp.eq.s32.totalorder (!%p692_p3), %s3277_s29, 0 }
  0x17   : > { %s4764_s5 = sld [smem:[#allocation13_spill]] (!%p692_p3)  ;;  %p758_p6 = scmp.lt.s32.totalorder (!%p692_p3), %s3281_s2, 3 }
  0x18   : > { %v789_v0 = vld [vmem:[%s4761_s27 + $0x8] sm:$0xff]  ;;  %v788_v1 = vld [vmem:[%s4761_s27] sm:$0xff]  ;;  %vm831_vm0 = vcmask 130048   ;;  %v770_v3 = vlaneseq  ;;  %v3295_v7 = vmov 0.0   ;;  %s4765_s3 = sld [smem:[#allocation15_spill]]  ;;  %s3073_s27 = sshll.u32 %s3281_s2, 3 }
  0x19   : > { %849 = vmatpush.msra.mxu0 %v789_v0  ;;  %v787_v2 = vld [vmem:[%s4762_s0] sm:$0xff]  ;;  %s4767_s1 = sld [smem:[#allocation16_spill]]  ;;  %vm1348_vm14 = vcmask 523264   ;;  %p760_p7 = scmp.lt.s32.totalorder %s3277_s29, 1 }
  0x1a   : > { %v3471_v4 = vshrl.u32 %v770_v3, 7  ;;  %s4768_s7 = sld [smem:[#allocation14_spill]] }
  0x1b   : > { %850 = vmatpush.msra.mxu0 %v788_v1  ;;  %s4771_s9 = sld [smem:[#allocation8_spill]]  ;;  %s4790_s29 = smov (!%p760_p7, %s3277_s29), 1 }
  0x1c   : > { %3072 = vmatmul.msk.f32.vlgmr.msra.gmra.mxu0 %vm831_vm0, %v787_v2  ;;  %v776_v5 = vand.u32 7, %v3471_v4  ;;  %v3218_v6 = vld [vmem:[%s4763_s26] ss:$0 sm:$0xff]  ;;  %s768_s0 = scalar_select %p767_p5, 1, 0 }
  0x1d   : > { %v808_v31 = vld [vmem:[%s4764_s5 + $0x78] sm:$0xff]  ;;  %v807_v33 = vld [vmem:[%s4764_s5 + $0x70] sm:$0xff]  ;;  %v806_v35 = vld [vmem:[%s4764_s5 + $0x68] sm:$0xff] }
  0x1e   : > { %vm784_vm1 = vcmp.lt.s32.totalorder %v776_v5, 2  ;;  %v824_v32 = vld [vmem:[%s4764_s5 + $0xf8] sm:$0xff]  ;;  %902 = vmatpush.msra.mxu3 %v808_v31  ;;  %v823_v34 = vld [vmem:[%s4764_s5 + $0xf0] sm:$0xff]  ;;  %v822_v36 = vld [vmem:[%s4764_s5 + $0xe8] sm:$0xff]  ;;  %s1011_s6 = scalar_lea.vmem %s4765_s3, %s4740_s28  ;;  %s4766_s3 = sld [smem:[#allocation9_spill]] }
  0x1f   : > { %v3478_v8 = vsel %vm784_vm1, 1.0, %v3295_v7  ;;  %922 = vmatpush.msra.mxu2 %v824_v32  ;;  %v805_v37 = vld [vmem:[%s4764_s5 + $0x60] sm:$0xff]  ;;  %v804_v39 = vld [vmem:[%s4764_s5 + $0x58] sm:$0xff]  ;;  %v803_v41 = vld [vmem:[%s4764_s5 + $0x50] sm:$0xff] }
  0x20   : > { %903 = vmatpush.msra.mxu3 %v807_v33  ;;  %v821_v38 = vld [vmem:[%s4764_s5 + $0xe0] sm:$0xff]  ;;  %v820_v40 = vld [vmem:[%s4764_s5 + $0xd8] sm:$0xff]  ;;  %v819_v42 = vld [vmem:[%s4764_s5 + $0xd0] sm:$0xff]  ;;  %s4769_s25 = smov %s4768_s7 }
  0x21   : > { %923 = vmatpush.msra.mxu2 %v823_v34  ;;  %v802_v43 = vld [vmem:[%s4764_s5 + $0x48] sm:$0xff]  ;;  %v801_v45 = vld [vmem:[%s4764_s5 + $0x40] sm:$0xff]  ;;  %v800_v47 = vld [vmem:[%s4764_s5 + $0x38] sm:$0xff] }
  0x22   : > { %904 = vmatpush.msra.mxu3 %v806_v35  ;;  %v818_v44 = vld [vmem:[%s4764_s5 + $0xc8] sm:$0xff]  ;;  %v817_v46 = vld [vmem:[%s4764_s5 + $0xc0] sm:$0xff]  ;;  %v816_v48 = vld [vmem:[%s4764_s5 + $0xb8] sm:$0xff] }
  0x23   : > { %924 = vmatpush.msra.mxu2 %v822_v36  ;;  %v799_v49 = vld [vmem:[%s4764_s5 + $0x30] sm:$0xff]  ;;  %v798_v51 = vld [vmem:[%s4764_s5 + $0x28] sm:$0xff]  ;;  %v797_v53 = vld [vmem:[%s4764_s5 + $0x20] sm:$0xff] }
  0x24   : > { %905 = vmatpush.msra.mxu3 %v805_v37  ;;  %v815_v50 = vld [vmem:[%s4764_s5 + $0xb0] sm:$0xff]  ;;  %v814_v52 = vld [vmem:[%s4764_s5 + $0xa8] sm:$0xff]  ;;  %v813_v54 = vld [vmem:[%s4764_s5 + $0xa0] sm:$0xff] }
  0x25   : > { %925 = vmatpush.msra.mxu2 %v821_v38  ;;  %v796_v55 = vld [vmem:[%s4764_s5 + $0x18] sm:$0xff]  ;;  %v795_v57 = vld [vmem:[%s4764_s5 + $0x10] sm:$0xff]  ;;  %v794_v59 = vld [vmem:[%s4764_s5 + $0x8] sm:$0xff] }
  0x26   : > { %906 = vmatpush.msra.mxu3 %v804_v39  ;;  %v812_v56 = vld [vmem:[%s4764_s5 + $0x98] sm:$0xff]  ;;  %v811_v58 = vld [vmem:[%s4764_s5 + $0x90] sm:$0xff]  ;;  %v810_v60 = vld [vmem:[%s4764_s5 + $0x88] sm:$0xff] }
  0x27   : > { %926 = vmatpush.msra.mxu2 %v820_v40  ;;  %v793_v61 = vld [vmem:[%s4764_s5] sm:$0xff]  ;;  %v1013_v2 = vld [vmem:[%s1011_s6 + $0x8] sm:$0xff] }
  0x28   : > { %907 = vmatpush.msra.mxu3 %v803_v41  ;;  %v809_v62 = vld [vmem:[%s4764_s5 + $0x80] sm:$0xff] }
  0x29   : > { %927 = vmatpush.msra.mxu2 %v819_v42  ;;  %v1012_v3 = vld [vmem:[%s1011_s6] sm:$0xff]  ;;  %s1008_s6 = scalar_lea.vmem %s4766_s3, %s3073_s27  ;;  %s3075_s3 = sshll.u32 %s3281_s2, 8 }
  0x2a   : > { %908 = vmatpush.msra.mxu3 %v802_v43 }
  0x2b   : > { %928 = vmatpush.msra.mxu2 %v818_v44 }
  0x2c   : > { %909 = vmatpush.msra.mxu3 %v801_v45 }
  0x2d   : > { %929 = vmatpush.msra.mxu2 %v817_v46 }
  0x2e   : > { %910 = vmatpush.msra.mxu3 %v800_v47 }
  0x2f   : > { %930 = vmatpush.msra.mxu2 %v816_v48 }
  0x30   : > { %911 = vmatpush.msra.mxu3 %v799_v49 }
  0x31   : > { %931 = vmatpush.msra.mxu2 %v815_v50 }
  0x32   : > { %912 = vmatpush.msra.mxu3 %v798_v51 }
  0x33   : > { %932 = vmatpush.msra.mxu2 %v814_v52 }
  0x34   : > { %913 = vmatpush.msra.mxu3 %v797_v53 }
  0x35   : > { %933 = vmatpush.msra.mxu2 %v813_v54 }
  0x36   : > { %914 = vmatpush.msra.mxu3 %v796_v55 }
  0x37   : > { %934 = vmatpush.msra.mxu2 %v812_v56 }
  0x38   : > { %915 = vmatpush.msra.mxu3 %v795_v57 }
  0x39   : > { %935 = vmatpush.msra.mxu2 %v811_v58 }
  0x3a   : > { %916 = vmatpush.msra.mxu3 %v794_v59 }
  0x3b   : > { %936 = vmatpush.msra.mxu2 %v810_v60 }
  0x3c   : > { %917 = vmatpush.msra.mxu3 %v793_v61 }
  0x3d   : > { %937 = vmatpush.msra.mxu2 %v809_v62 }
  0x3e   : > { %1077 = vmatpush.msrb.mxu3 %v1013_v2 }
  0x40   : > { %1078 = vmatpush.msrb.mxu3 %v1012_v3 }
  0x99   : > { %v852_v9 = vpop.f32.mrf.mxu0 }
  0x9a   : > { %v853_v10 = vadd.f32 %v3218_v6, %v852_v9 }
  0x9c   : > { %v855_v11 = vmul.f32 %v3478_v8, %v853_v10 }
  0x9e   : > { %v856_v12 = vrot.slane %v855_v11, 4 }
  0xa0   : > { %v857_v13 = vadd.f32 %v856_v12, %v855_v11 }
  0xa2   : > { %v858_v14 = vrot.slane %v857_v13, 2 }
  0xa4   : > { %v859_v15 = vadd.f32 %v858_v14, %v857_v13  ;;  %v791_v14 = vld [vmem:[%s4763_s26 + $0x1] sm:$0x1] }
  0xa6   : > { %v860_v16 = vrot.slane %v859_v15, 1 }
  0xa8   : > { %v861_v17 = vadd.f32 %v860_v16, %v859_v15 }
  0xaa   : > { %862 = vrot.lane.b32.xlu0 %v861_v17, %s4737_s4 }
 0x11c   : > { %v863_v18 = vpop.permute.xlu0 %862 }
 0x11d   : > { %v864_v19 = vadd.f32 %v863_v18, %v861_v17  ;;  %v3219_v18 = vld [vmem:[%s4763_s26 + $0x2] ss:$0 sm:$0xff]  ;;  %s4744_s26 = sshll.u32 %s3281_s2, 6 }
 0x11e   : > { %s3643_s30 = scalar_lea.vmem %s4717_s12, %s4744_s26  ;;  %s3692_s26 = scalar_lea.vmem %s4715_s10, %s3075_s3 }
 0x11f   : > { %v865_v20 = vmul.f32 0.25, %v864_v19 }
 0x121   : > { %v866_v21 = vperm.slane %v865_v20, 0 }
 0x123   : > { %v3482_v22 = vsub.f32 %v853_v10, %v866_v21 }
 0x125   : > { %v868_v23 = vmul.f32 %v3482_v22, %v3482_v22 }
 0x127   : > { %v869_v24 = vmul.f32 %v3478_v8, %v868_v23  ;;  %v1009_v23 = vld [vmem:[%s1008_s6] sm:$0xff] }
 0x129   : > { %v870_v25 = vrot.slane %v869_v24, 4 }
 0x12b   : > { %v871_v26 = vadd.f32 %v870_v25, %v869_v24 }
 0x12d   : > { %v872_v27 = vrot.slane %v871_v26, 2 }
 0x12f   : > { %v873_v28 = vadd.f32 %v872_v27, %v871_v26 }
 0x131   : > { %v874_v29 = vrot.slane %v873_v28, 1 }
 0x133   : > { %v3487_v30 = vadd.f32 %v874_v29, %v873_v28 }
 0x135   : > { %876 = vrot.lane.b32.xlu0 %v3487_v30, %s4737_s4  ;;  %s3608_s4 = smul.u32 3, %s3281_s2 }
 0x137   : > { %s3615_s28 = scalar_lea.vmem %s4767_s1, %s3608_s4  ;;  %s769_s1 = scvt.s32.f32 %s768_s0 }
 0x138   : > { %v3221_v32 = vld [vmem:[%s3615_s28] ss:$0 sm:$0xff]  ;;  %s3684_s8 = scalar_lea.vmem %s4716_s11, %s3608_s4 }
 0x139   : > { %s3654_s5 = ssub.f32 1.0, %s769_s1 }
 0x1a7   : > { %v877_v63 = vpop.permute.xlu0 %876 }
 0x1a8   : > { %v878_v0 = vadd.f32 %v877_v63, %v3487_v30 }
 0x1aa   : > { %v879_v1 = vmul.f32 0.25, %v878_v0 }
 0x1ac   : > { %v880_v5 = vadd.f32 1e-05, %v879_v1 }
 0x1ae   : > { %3237 = vrsqrt.f32 %v880_v5  ;;  %vm887_vm3 = vweird.f32 %v880_v5 }
 0x1b4   : > { %v3238_v6 = vpop.eup %3237 }
 0x1b5   : > { %v882_v9 = vmul.f32 %v3238_v6, %v880_v5  ;;  %vm888_vm2 = vweird.f32 %v3238_v6 }
 0x1b6   : > { %vm889_vm4 = vmor %vm887_vm3, %vm888_vm2  ;;  %vm1513_vm3 = vcmask 261120  }
 0x1b7   : > { %v883_v10 = vmul.f32 %v3238_v6, %v882_v9 }
 0x1b9   : > { %v884_v11 = vmul.f32 0.5, %v883_v10 }
 0x1bb   : > { %v885_v12 = vsub.f32 1.5, %v884_v11 }
 0x1bd   : > { %v886_v13 = vmul.f32 %v3238_v6, %v885_v12 }
 0x1bf   : > { %v890_v15 = vsel %vm889_vm4, %v3238_v6, %v886_v13  ;;  %v1235_v13 = vld [vmem:[%s3643_s30 + $0x8] sm:$0xff] }
 0x1c0   : > { %v891_v16 = vmul.f32 %v890_v15, %v791_v14  ;;  %v1234_v14 = vld [vmem:[%s3643_s30] sm:$0xff]  ;;  %1287 = vmatpush.msrb.mxu2 %v1235_v13  ;;  %v1043_v13 = vld [vmem:[%s3692_s26 + $0xb0] sm:$0xff] }
 0x1c2   : > { %v892_v17 = vperm.slane %v891_v16, 0  ;;  %1288 = vmatpush.msrb.mxu2 %v1234_v14  ;;  %v1026_v14 = vld [vmem:[%s3692_s26 + $0x28] sm:$0xff] }
 0x1c4   : > { %v893_v19 = vmul.f32 %v892_v17, %v3482_v22  ;;  %v3220_v22 = vld [vmem:[%s4768_s7] ss:$0 sm:$0xff]  ;;  %s4770_s7 = smov 64  }
 0x1c6   : > { %v897_v20 = vadd.f32 %v3219_v18, %v893_v19  ;;  %v1237_v19 = vld [vmem:[%s3643_s30 + $0x18] sm:$0xff] }
 0x1c7   : > { %1264 = vmatpush.msra.mxu1 %v1237_v19  ;;  %v1040_v19 = vld [vmem:[%s3692_s26 + $0x98] sm:$0xff] }
 0x1c8   : > { %v898_v21 = vmax.f32 %v897_v20, 0.0  ;;  %v1236_v20 = vld [vmem:[%s3643_s30 + $0x10] sm:$0xff] }
 0x1c9   : > { %1265 = vmatpush.msra.mxu1 %v1236_v20  ;;  %v1023_v20 = vld [vmem:[%s3692_s26 + $0x10] sm:$0xff] }
 0x1ca   : > { %918 = vmatmul.f32.vlgmr.msra.gmra.mxu3 %v898_v21  ;;  %938 = vmatmul.f32.vlgmr.msra.gmra.mxu2 %v898_v21  ;;  %v1246_v21 = vld [vmem:[%s4771_s9] sm:$0xff]  ;;  %s3068_s9 = sshll.u32 %s4790_s29, 4 }
 0x1cb   : > { %3078 = vmatmul.msk.f32.vlgmr.msra.gmra.mxu1 %vm831_vm0, %v1246_v21  ;;  %v1039_v21 = vld [vmem:[%s3692_s26 + $0x90] sm:$0xff] }
 0x1d2   : > { %3076 = vmatmul.msk.f32.vlgmr.msrb.gmra.mxu3 %vm831_vm0, %v1009_v23 }
 0x24d   : > { %v919_v24 = vpop.f32.mrf.mxu3  ;;  %v939_v25 = vpop.f32.mrf.mxu2 }
 0x24e   : > { %v920_v26 = vadd.f32 %v3220_v22, %v919_v24  ;;  %v940_v27 = vadd.f32 %v3220_v22, %v939_v25 }
 0x250   : > { %v942_v28 = vmul.f32 %v3478_v8, %v920_v26  ;;  %v950_v29 = vmul.f32 %v3478_v8, %v940_v27 }
 0x252   : > { %v943_v30 = vsel %vm831_vm0, %v942_v28, 0.0  ;;  %v951_v31 = vsel %vm831_vm0, %v950_v29, 0.0  ;;  %v3656_v28 = vstv %s769_s1  ;;  %v997_v29 = vstv %s3654_s5  ;;  %s3758_s1 = scalar_lea.vmem %s4718_s13, %s3608_s4  ;;  %s3765_s5 = scalar_lea.vmem %s4720_s15, %s3608_s4 }
 0x253   : > { %v944_v33 = vrot.slane %v943_v30, 4  ;;  %v952_v34 = vrot.slane %v951_v31, 4 }
 0x255   : > { %v945_v35 = vadd.f32 %v944_v33, %v943_v30  ;;  %v953_v36 = vadd.f32 %v952_v34, %v951_v31  ;;  %v1080_v37 = vpop.f32.mrf.mxu3  ;;  %v826_v30 = vld [vmem:[%s4769_s25 + $0x1] sm:$0x1] }
 0x256   : > { %v3625_v38 = vadd.f32 %v3221_v32, %v1080_v37 }
 0x257   : > { %v946_v39 = vrot.slane %v945_v35, 2  ;;  %v954_v40 = vrot.slane %v953_v36, 2 }
 0x258   : > { %v1083_v41 = vmul.f32 %v3478_v8, %v3625_v38 }
 0x259   : > { %v947_v42 = vadd.f32 %v946_v39, %v945_v35  ;;  %v955_v43 = vadd.f32 %v954_v40, %v953_v36  ;;  %v3222_v39 = vld [vmem:[%s4769_s25 + $0x2] ss:$0 sm:$0xff] }
 0x25a   : > { %v1084_v44 = vrot.slane %v1083_v41, 4 }
 0x25b   : > { %v948_v45 = vrot.slane %v947_v42, 1  ;;  %v956_v46 = vrot.slane %v955_v43, 1 }
 0x25c   : > { %v1085_v47 = vadd.f32 %v1084_v44, %v1083_v41 }
 0x25d   : > { %v949_v48 = vadd.f32 %v948_v45, %v947_v42  ;;  %v957_v49 = vadd.f32 %v956_v46, %v955_v43 }
 0x25e   : > { %v1086_v50 = vrot.slane %v1085_v47, 2 }
 0x25f   : > { %v958_v51 = vadd.f32 %v957_v49, %v949_v48 }
 0x260   : > { %v1087_v52 = vadd.f32 %v1086_v50, %v1085_v47 }
 0x261   : > { %v959_v53 = vmul.f32 0.25, %v958_v51 }
 0x262   : > { %v1088_v54 = vrot.slane %v1087_v52, 1 }
 0x263   : > { %v960_v55 = vsub.f32 %v920_v26, %v959_v53  ;;  %v961_v56 = vsub.f32 %v940_v27, %v959_v53 }
 0x264   : > { %v3629_v57 = vadd.f32 %v1088_v54, %v1087_v52 }
 0x265   : > { %v962_v58 = vmul.f32 %v960_v55, %v960_v55  ;;  %v971_v59 = vmul.f32 %v961_v56, %v961_v56  ;;  %v995_v32 = vmul.f32 %v3656_v28, %v960_v55  ;;  %v998_v33 = vmul.f32 %v997_v29, %v961_v56  ;;  %v1052_v56 = vld [vmem:[%s3692_s26 + $0xf8] sm:$0xff] }
 0x266   : > { %1090 = vrot.lane.b32.xlu1 %v3629_v57, %s4770_s7  ;;  %1150 = vmatpush.msra.mxu3 %v1052_v56 }
 0x267   : > { %v963_v60 = vmul.f32 %v3478_v8, %v962_v58  ;;  %v972_v61 = vmul.f32 %v3478_v8, %v971_v59  ;;  %v999_v36 = vadd.f32 %v998_v33, %v995_v32  ;;  %v1051_v58 = vld [vmem:[%s3692_s26 + $0xf0] sm:$0xff]  ;;  %v1034_v59 = vld [vmem:[%s3692_s26 + $0x68] sm:$0xff] }
 0x268   : > { %1151 = vmatpush.msra.mxu3 %v1051_v58 }
 0x269   : > { %v964_v62 = vsel %vm831_vm0, %v963_v60, 0.0  ;;  %v973_v63 = vsel %vm831_vm0, %v972_v61, 0.0  ;;  %v1050_v60 = vld [vmem:[%s3692_s26 + $0xe8] sm:$0xff]  ;;  %v1033_v61 = vld [vmem:[%s3692_s26 + $0x60] sm:$0xff] }
 0x26a   : > { %v965_v0 = vrot.slane %v964_v62, 4  ;;  %v974_v1 = vrot.slane %v973_v63, 4  ;;  %1152 = vmatpush.msra.mxu3 %v1050_v60 }
 0x26c   : > { %v966_v2 = vadd.f32 %v965_v0, %v964_v62  ;;  %v975_v3 = vadd.f32 %v974_v1, %v973_v63  ;;  %v1049_v62 = vld [vmem:[%s3692_s26 + $0xe0] sm:$0xff]  ;;  %v1032_v63 = vld [vmem:[%s3692_s26 + $0x58] sm:$0xff]  ;;  %v1031_v1 = vld [vmem:[%s3692_s26 + $0x50] sm:$0xff] }
 0x26d   : > { %1153 = vmatpush.msra.mxu3 %v1049_v62  ;;  %v1048_v0 = vld [vmem:[%s3692_s26 + $0xd8] sm:$0xff] }
 0x26e   : > { %v967_v5 = vrot.slane %v966_v2, 2  ;;  %v976_v6 = vrot.slane %v975_v3, 2 }
 0x26f   : > { %1154 = vmatpush.msra.mxu3 %v1048_v0 }
 0x270   : > { %v968_v9 = vadd.f32 %v967_v5, %v966_v2  ;;  %v977_v10 = vadd.f32 %v976_v6, %v975_v3  ;;  %v1047_v2 = vld [vmem:[%s3692_s26 + $0xd0] sm:$0xff]  ;;  %v1030_v3 = vld [vmem:[%s3692_s26 + $0x48] sm:$0xff]  ;;  %v1029_v6 = vld [vmem:[%s3692_s26 + $0x40] sm:$0xff] }
 0x271   : > { %1155 = vmatpush.msra.mxu3 %v1047_v2  ;;  %v1046_v5 = vld [vmem:[%s3692_s26 + $0xc8] sm:$0xff] }
 0x272   : > { %v969_v11 = vrot.slane %v968_v9, 1  ;;  %v978_v12 = vrot.slane %v977_v10, 1 }
 0x273   : > { %1156 = vmatpush.msra.mxu3 %v1046_v5 }
 0x274   : > { %v970_v15 = vadd.f32 %v969_v11, %v968_v9  ;;  %v979_v16 = vadd.f32 %v978_v12, %v977_v10  ;;  %v1045_v9 = vld [vmem:[%s3692_s26 + $0xc0] sm:$0xff]  ;;  %v1028_v10 = vld [vmem:[%s3692_s26 + $0x38] sm:$0xff]  ;;  %v1027_v12 = vld [vmem:[%s3692_s26 + $0x30] sm:$0xff] }
 0x275   : > { %1157 = vmatpush.msra.mxu3 %v1045_v9  ;;  %v1044_v11 = vld [vmem:[%s3692_s26 + $0xb8] sm:$0xff] }
 0x276   : > { %v980_v17 = vadd.f32 %v979_v16, %v970_v15  ;;  %v1042_v15 = vld [vmem:[%s3692_s26 + $0xa8] sm:$0xff]  ;;  %v1025_v16 = vld [vmem:[%s3692_s26 + $0x20] sm:$0xff] }
 0x277   : > { %1158 = vmatpush.msra.mxu3 %v1044_v11 }
 0x278   : > { %v981_v18 = vmul.f32 0.25, %v980_v17  ;;  %v1041_v17 = vld [vmem:[%s3692_s26 + $0xa0] sm:$0xff] }
 0x279   : > { %1159 = vmatpush.msra.mxu3 %v1043_v13 }
 0x27a   : > { %v982_v23 = vadd.f32 1e-05, %v981_v18  ;;  %v1024_v18 = vld [vmem:[%s3692_s26 + $0x18] sm:$0xff] }
 0x27b   : > { %1160 = vmatpush.msra.mxu3 %v1042_v15 }
 0x27c   : > { %3239 = vrsqrt.f32 %v982_v23  ;;  %vm989_vm6 = vweird.f32 %v982_v23 }
 0x27d   : > { %1161 = vmatpush.msra.mxu3 %v1041_v17 }
 0x27f   : > { %1162 = vmatpush.msra.mxu3 %v1040_v19 }
 0x281   : > { %1163 = vmatpush.msra.mxu3 %v1039_v21 }
 0x282   : > { %v3240_v22 = vpop.eup %3239 }
 0x283   : > { %v984_v24 = vmul.f32 %v3240_v22, %v982_v23  ;;  %vm990_vm5 = vweird.f32 %v3240_v22  ;;  %v1022_v23 = vld [vmem:[%s3692_s26 + $0x8] sm:$0xff] }
 0x284   : > { %vm991_vm7 = vmor %vm989_vm6, %vm990_vm5 }
 0x285   : > { %v985_v25 = vmul.f32 %v3240_v22, %v984_v24  ;;  %v1021_v24 = vld [vmem:[%s3692_s26] sm:$0xff] }
 0x287   : > { %v986_v26 = vmul.f32 0.5, %v985_v25  ;;  %v1037_v25 = vld [vmem:[%s3692_s26 + $0x80] sm:$0xff] }
 0x289   : > { %v987_v27 = vsub.f32 1.5, %v986_v26 }
 0x28b   : > { %v988_v31 = vmul.f32 %v3240_v22, %v987_v27 }
 0x28d   : > { %v992_v34 = vsel %vm991_vm7, %v3240_v22, %v988_v31  ;;  %v1038_v22 = vld [vmem:[%s3692_s26 + $0x88] sm:$0xff] }
 0x28e   : > { %v993_v35 = vmul.f32 %v992_v34, %v826_v30  ;;  %1164 = vmatpush.msra.mxu3 %v1038_v22 }
 0x290   : > { %v1000_v37 = vperm.slane %v993_v35, 0  ;;  %1165 = vmatpush.msra.mxu3 %v1037_v25 }
 0x292   : > { %v1001_v40 = vmul.f32 %v1000_v37, %v999_v36  ;;  %v1017_v37 = vld [vmem:[%s3615_s28 + $0x1] sm:$0x1] }
 0x294   : > { %v1005_v41 = vadd.f32 %v3222_v39, %v1001_v40 }
 0x296   : > { %v1006_v42 = vmax.f32 %v1005_v41, 0.0 }
 0x298   : > { %3079 = vmatmul.msk.f32.vlgmr.msrb.gmra.mxu2 %vm831_vm0, %v1006_v42 }
 0x2d8   : > { %v1091_v43 = vpop.permute.xlu1 %1090 }
 0x2d9   : > { %v1092_v44 = vadd.f32 %v1091_v43, %v3629_v57  ;;  %v1035_v57 = vld [vmem:[%s3692_s26 + $0x70] sm:$0xff]  ;;  %v3223_v43 = vld [vmem:[%s3615_s28 + $0x2] ss:$0 sm:$0xff]  ;;  %s3097_s28 = sshll.u32 %s3281_s2, 5 }
 0x2db   : > { %v1093_v45 = vmul.f32 0.25, %v1092_v44 }
 0x2dd   : > { %v1094_v46 = vperm.slane %v1093_v45, 0 }
 0x2df   : > { %v3671_v47 = vsub.f32 %v3625_v38, %v1094_v46  ;;  %v1036_v38 = vld [vmem:[%s3692_s26 + $0x78] sm:$0xff]  ;;  %s4772_s26 = sld [smem:[#allocation10_spill]] }
 0x2e0   : > { %1130 = vmatpush.msrb.mxu0 %v1036_v38 }
 0x2e1   : > { %v1096_v48 = vmul.f32 %v3671_v47, %v3671_v47 }
 0x2e2   : > { %1131 = vmatpush.msrb.mxu0 %v1035_v57 }
 0x2e3   : > { %v1097_v49 = vmul.f32 %v3478_v8, %v1096_v48  ;;  %v3224_v48 = vld [vmem:[%s3684_s8] ss:$0 sm:$0xff] }
 0x2e4   : > { %1132 = vmatpush.msrb.mxu0 %v1034_v59 }
 0x2e5   : > { %v1098_v50 = vrot.slane %v1097_v49, 4  ;;  %s1317_s0 = scalar_lea.vmem %s4772_s26, %s3073_s27  ;;  %s4773_s27 = sshll.u32 %s3281_s2, 6 }
 0x2e6   : > { %1133 = vmatpush.msrb.mxu0 %v1033_v61  ;;  %s1623_s6 = scalar_lea.vmem %s4721_s16, %s4773_s27  ;;  %s1888_s26 = scalar_lea.vmem %s4723_s18, %s3097_s28 }
 0x2e7   : > { %v1099_v51 = vadd.f32 %v1098_v50, %v1097_v49 }
 0x2e8   : > { %1134 = vmatpush.msrb.mxu0 %v1032_v63 }
 0x2e9   : > { %v1100_v52 = vrot.slane %v1099_v51, 2 }
 0x2ea   : > { %1135 = vmatpush.msrb.mxu0 %v1031_v1 }
 0x2eb   : > { %v1101_v53 = vadd.f32 %v1100_v52, %v1099_v51 }
 0x2ec   : > { %1136 = vmatpush.msrb.mxu0 %v1030_v3 }
 0x2ed   : > { %v1102_v54 = vrot.slane %v1101_v53, 1 }
 0x2ee   : > { %1137 = vmatpush.msrb.mxu0 %v1029_v6 }
 0x2ef   : > { %v3676_v55 = vadd.f32 %v1102_v54, %v1101_v53 }
 0x2f0   : > { %1138 = vmatpush.msrb.mxu0 %v1028_v10 }
 0x2f1   : > { %1104 = vrot.lane.b32.xlu1 %v3676_v55, %s4770_s7  ;;  %s3777_s7 = scalar_lea.vmem %s4719_s14, %s3075_s3  ;;  %s2805_s3 = smul.u32 112, %s3281_s2 }
 0x2f2   : > { %1139 = vmatpush.msrb.mxu0 %v1027_v12 }
 0x2f3   : > { %s4606_s27 = scalar_lea.vmem %s4728_s23, %s2805_s3 }
 0x2f4   : > { %1140 = vmatpush.msrb.mxu0 %v1026_v14 }
 0x2f6   : > { %1141 = vmatpush.msrb.mxu0 %v1025_v16 }
 0x2f8   : > { %1142 = vmatpush.msrb.mxu0 %v1024_v18 }
 0x2fa   : > { %1143 = vmatpush.msrb.mxu0 %v1023_v20 }
 0x2fc   : > { %1144 = vmatpush.msrb.mxu0 %v1022_v23 }
 0x2fe   : > { %1145 = vmatpush.msrb.mxu0 %v1021_v24  ;;  %v1241_v24 = vld [vmem:[%s3643_s30 + $0x38] sm:$0xff] }
 0x2ff   : > { %1336 = vmatpush.msrb.mxu3 %v1241_v24  ;;  %v1403_v24 = vld [vmem:[%s3777_s7 + $0x68] sm:$0xff] }
 0x363   : > { %v1105_v26 = vpop.permute.xlu1 %1104 }
 0x364   : > { %v1106_v27 = vadd.f32 %v1105_v26, %v3676_v55 }
 0x366   : > { %v1107_v30 = vmul.f32 0.25, %v1106_v27  ;;  %v1240_v27 = vld [vmem:[%s3643_s30 + $0x30] sm:$0xff] }
 0x367   : > { %1337 = vmatpush.msrb.mxu3 %v1240_v27 }
 0x368   : > { %v1108_v31 = vadd.f32 1e-05, %v1107_v30  ;;  %v1318_v30 = vld [vmem:[%s1317_s0] sm:$0xff]  ;;  %s3826_s0 = scalar_lea.vmem %s4722_s17, %s3608_s4 }
 0x36a   : > { %3241 = vrsqrt.f32 %v1108_v31  ;;  %vm1115_vm9 = vweird.f32 %v1108_v31 }
 0x370   : > { %v3242_v32 = vpop.eup %3241 }
 0x371   : > { %v1110_v33 = vmul.f32 %v3242_v32, %v1108_v31  ;;  %vm1116_vm8 = vweird.f32 %v3242_v32 }
 0x372   : > { %vm1117_vm10 = vmor %vm1115_vm9, %vm1116_vm8 }
 0x373   : > { %v1111_v34 = vmul.f32 %v3242_v32, %v1110_v33  ;;  %v1239_v33 = vld [vmem:[%s3643_s30 + $0x28] sm:$0xff] }
 0x374   : > { %1310 = vmatpush.msra.mxu0 %v1239_v33  ;;  %v1418_v33 = vld [vmem:[%s3777_s7 + $0xe0] sm:$0xff] }
 0x375   : > { %v1112_v35 = vmul.f32 0.5, %v1111_v34 }
 0x377   : > { %v1113_v36 = vsub.f32 1.5, %v1112_v35  ;;  %v1238_v35 = vld [vmem:[%s3643_s30 + $0x20] sm:$0xff] }
 0x378   : > { %1311 = vmatpush.msra.mxu0 %v1238_v35  ;;  %v1393_v35 = vld [vmem:[%s3777_s7 + $0x18] sm:$0xff] }
 0x379   : > { %v1114_v39 = vmul.f32 %v3242_v32, %v1113_v36 }
 0x37b   : > { %v1118_v40 = vsel %vm1117_vm10, %v3242_v32, %v1114_v39 }
 0x37c   : > { %v1119_v41 = vmul.f32 %v1118_v40, %v1017_v37 }
 0x37e   : > { %v1120_v42 = vperm.slane %v1119_v41, 0 }
 0x380   : > { %v1121_v44 = vmul.f32 %v1120_v42, %v3671_v47 }
 0x382   : > { %v1125_v45 = vadd.f32 %v3223_v43, %v1121_v44  ;;  %v1055_v44 = vld [vmem:[%s3684_s8 + $0x1] sm:$0x1] }
 0x384   : > { %v1126_v46 = vmax.f32 %v1125_v45, 0.0 }
 0x386   : > { %1146 = vmatmul.f32.vlgmr.msrb.gmra.mxu0 %v1126_v46  ;;  %1166 = vmatmul.f32.vlgmr.msra.gmra.mxu3 %v1126_v46 }
 0x38e   : > { %3081 = vmatmul.msk.f32.vlgmr.msrb.gmra.mxu3 %vm831_vm0, %v1318_v30  ;;  %v1394_v30 = vld [vmem:[%s3777_s7 + $0x20] sm:$0xff] }
 0x403   : > { %v1147_v49 = vpop.f32.mrf.mxu0 }
 0x404   : > { %v1148_v50 = vadd.f32 %v3224_v48, %v1147_v49 }
 0x406   : > { %v1170_v51 = vmul.f32 %v3478_v8, %v1148_v50 }
 0x408   : > { %v1171_v52 = vsel %vm831_vm0, %v1170_v51, 0.0  ;;  %v3225_v51 = vld [vmem:[%s3684_s8 + $0x2] ss:$0 sm:$0xff]  ;;  %s3913_s8 = scalar_lea.vmem %s4724_s19, %s3608_s4 }
 0x409   : > { %v1172_v53 = vrot.slane %v1171_v52, 4  ;;  %v1167_v54 = vpop.f32.mrf.mxu3 }
 0x40a   : > { %v1168_v55 = vadd.f32 %v3224_v48, %v1167_v54 }
 0x40b   : > { %v1173_v38 = vadd.f32 %v1172_v53, %v1171_v52 }
 0x40c   : > { %v1178_v56 = vmul.f32 %v3478_v8, %v1168_v55 }
 0x40d   : > { %v1174_v57 = vrot.slane %v1173_v38, 2 }
 0x40e   : > { %v1179_v47 = vsel %vm831_vm0, %v1178_v56, 0.0 }
 0x40f   : > { %v1180_v58 = vrot.slane %v1179_v47, 4  ;;  %v1175_v59 = vadd.f32 %v1174_v57, %v1173_v38 }
 0x411   : > { %v1181_v60 = vadd.f32 %v1180_v58, %v1179_v47  ;;  %v1176_v62 = vrot.slane %v1175_v59, 1  ;;  %v1339_v47 = vpop.f32.mrf.mxu3 }
 0x413   : > { %v1182_v61 = vrot.slane %v1181_v60, 2  ;;  %v1177_v1 = vadd.f32 %v1176_v62, %v1175_v59  ;;  %v3226_v59 = vld [vmem:[%s3758_s1] ss:$0 sm:$0xff] }
 0x415   : > { %v1183_v63 = vadd.f32 %v1182_v61, %v1181_v60 }
 0x417   : > { %v1184_v0 = vrot.slane %v1183_v63, 1 }
 0x419   : > { %v1185_v2 = vadd.f32 %v1184_v0, %v1183_v63 }
 0x41b   : > { %v1186_v3 = vadd.f32 %v1185_v2, %v1177_v1 }
 0x41d   : > { %v1187_v5 = vmul.f32 0.25, %v1186_v3 }
 0x41f   : > { %v1188_v6 = vsub.f32 %v1148_v50, %v1187_v5  ;;  %v1189_v9 = vsub.f32 %v1168_v55, %v1187_v5 }
 0x421   : > { %v1190_v10 = vmul.f32 %v1188_v6, %v1188_v6  ;;  %v1199_v11 = vmul.f32 %v1189_v9, %v1189_v9  ;;  %v1222_v46 = vmul.f32 %v1188_v6, %v3656_v28  ;;  %v1223_v48 = vmul.f32 %v1189_v9, %v997_v29  ;;  %v1267_v28 = vpop.f32.mrf.mxu1  ;;  %v1290_v29 = vpop.f32.mrf.mxu2 }
 0x422   : > { %v1291_v56 = vadd.f32 %v1290_v29, %v1267_v28 }
 0x423   : > { %v1191_v12 = vmul.f32 %v3478_v8, %v1190_v10  ;;  %v1200_v13 = vmul.f32 %v3478_v8, %v1199_v11  ;;  %v1224_v52 = vadd.f32 %v1223_v48, %v1222_v46  ;;  %v1399_v48 = vld [vmem:[%s3777_s7 + $0x48] sm:$0xff] }
 0x425   : > { %v1192_v14 = vsel %vm831_vm0, %v1191_v12, 0.0  ;;  %v1201_v15 = vsel %vm831_vm0, %v1200_v13, 0.0  ;;  %v1397_v12 = vld [vmem:[%s3777_s7 + $0x38] sm:$0xff] }
 0x426   : > { %v1193_v16 = vrot.slane %v1192_v14, 4  ;;  %v1202_v17 = vrot.slane %v1201_v15, 4  ;;  %v1405_v13 = vld [vmem:[%s3777_s7 + $0x78] sm:$0xff]  ;;  %1440 = vmatpush.msrb.mxu1 %v1397_v12 }
 0x427   : > { %1460 = vmatpush.msra.mxu2 %v1405_v13 }
 0x428   : > { %v1194_v18 = vadd.f32 %v1193_v16, %v1192_v14  ;;  %v1203_v19 = vadd.f32 %v1202_v17, %v1201_v15  ;;  %v1413_v14 = vld [vmem:[%s3777_s7 + $0xb8] sm:$0xff]  ;;  %v1396_v17 = vld [vmem:[%s3777_s7 + $0x30] sm:$0xff] }
 0x429   : > { %v1421_v16 = vld [vmem:[%s3777_s7 + $0xf8] sm:$0xff]  ;;  %1480 = vmatpush.msrb.mxu0 %v1413_v14  ;;  %1441 = vmatpush.msrb.mxu1 %v1396_v17 }
 0x42a   : > { %v1195_v20 = vrot.slane %v1194_v18, 2  ;;  %v1204_v21 = vrot.slane %v1203_v19, 2  ;;  %1500 = vmatpush.msra.mxu3 %v1421_v16 }
 0x42c   : > { %v1196_v23 = vadd.f32 %v1195_v20, %v1194_v18  ;;  %v1205_v22 = vadd.f32 %v1204_v21, %v1203_v19  ;;  %v1404_v18 = vld [vmem:[%s3777_s7 + $0x70] sm:$0xff] }
 0x42d   : > { %v1412_v19 = vld [vmem:[%s3777_s7 + $0xb0] sm:$0xff]  ;;  %1461 = vmatpush.msra.mxu2 %v1404_v18 }
 0x42e   : > { %v1197_v25 = vrot.slane %v1196_v23, 1  ;;  %v1206_v26 = vrot.slane %v1205_v22, 1  ;;  %v1420_v21 = vld [vmem:[%s3777_s7 + $0xf0] sm:$0xff]  ;;  %1481 = vmatpush.msrb.mxu0 %v1412_v19 }
 0x42f   : > { %1501 = vmatpush.msra.mxu3 %v1420_v21  ;;  %1462 = vmatpush.msra.mxu2 %v1403_v24 }
 0x430   : > { %v1198_v31 = vadd.f32 %v1197_v25, %v1196_v23  ;;  %v1207_v32 = vadd.f32 %v1206_v26, %v1205_v22  ;;  %v1395_v22 = vld [vmem:[%s3777_s7 + $0x28] sm:$0xff] }
 0x431   : > { %v1411_v25 = vld [vmem:[%s3777_s7 + $0xa8] sm:$0xff]  ;;  %1442 = vmatpush.msrb.mxu1 %v1395_v22 }
 0x432   : > { %v1208_v34 = vadd.f32 %v1207_v32, %v1198_v31  ;;  %v1419_v26 = vld [vmem:[%s3777_s7 + $0xe8] sm:$0xff]  ;;  %1482 = vmatpush.msrb.mxu0 %v1411_v25  ;;  %v1402_v31 = vld [vmem:[%s3777_s7 + $0x60] sm:$0xff] }
 0x433   : > { %1502 = vmatpush.msra.mxu3 %v1419_v26  ;;  %v1410_v32 = vld [vmem:[%s3777_s7 + $0xa0] sm:$0xff]  ;;  %1443 = vmatpush.msrb.mxu1 %v1394_v30 }
 0x434   : > { %v1209_v36 = vmul.f32 0.25, %v1208_v34  ;;  %1463 = vmatpush.msra.mxu2 %v1402_v31  ;;  %1483 = vmatpush.msrb.mxu0 %v1410_v32 }
 0x435   : > { %1503 = vmatpush.msra.mxu3 %v1418_v33  ;;  %1444 = vmatpush.msrb.mxu1 %v1393_v35 }
 0x436   : > { %v1210_v37 = vadd.f32 1e-05, %v1209_v36  ;;  %v1401_v36 = vld [vmem:[%s3777_s7 + $0x58] sm:$0xff] }
 0x437   : > { %1464 = vmatpush.msra.mxu2 %v1401_v36 }
 0x438   : > { %3243 = vrsqrt.f32 %v1210_v37  ;;  %vm1217_vm12 = vweird.f32 %v1210_v37 }
 0x43e   : > { %v3244_v39 = vpop.eup %3243 }
 0x43f   : > { %v1212_v40 = vmul.f32 %v3244_v39, %v1210_v37  ;;  %vm1218_vm11 = vweird.f32 %v3244_v39  ;;  %v1409_v37 = vld [vmem:[%s3777_s7 + $0x98] sm:$0xff] }
 0x440   : > { %vm1219_vm13 = vmor %vm1217_vm12, %vm1218_vm11  ;;  %1484 = vmatpush.msrb.mxu0 %v1409_v37 }
 0x441   : > { %v1213_v41 = vmul.f32 %v3244_v39, %v1212_v40 }
 0x443   : > { %v1214_v42 = vmul.f32 0.5, %v1213_v41  ;;  %v1392_v41 = vld [vmem:[%s3777_s7 + $0x10] sm:$0xff] }
 0x444   : > { %1445 = vmatpush.msrb.mxu1 %v1392_v41 }
 0x445   : > { %v1215_v43 = vsub.f32 1.5, %v1214_v42  ;;  %v1400_v42 = vld [vmem:[%s3777_s7 + $0x50] sm:$0xff] }
 0x446   : > { %1465 = vmatpush.msra.mxu2 %v1400_v42 }
 0x447   : > { %v1216_v45 = vmul.f32 %v3244_v39, %v1215_v43  ;;  %v1408_v43 = vld [vmem:[%s3777_s7 + $0x90] sm:$0xff] }
 0x448   : > { %1485 = vmatpush.msrb.mxu0 %v1408_v43  ;;  %1466 = vmatpush.msra.mxu2 %v1399_v48 }
 0x449   : > { %v1220_v49 = vsel %vm1219_vm13, %v3244_v39, %v1216_v45  ;;  %v1417_v39 = vld [vmem:[%s3777_s7 + $0xd8] sm:$0xff]  ;;  %v1391_v45 = vld [vmem:[%s3777_s7 + $0x8] sm:$0xff] }
 0x44a   : > { %v1221_v50 = vmul.f32 %v1220_v49, %v1055_v44  ;;  %1504 = vmatpush.msra.mxu3 %v1417_v39  ;;  %v1416_v44 = vld [vmem:[%s3777_s7 + $0xd0] sm:$0xff]  ;;  %v1407_v49 = vld [vmem:[%s3777_s7 + $0x88] sm:$0xff]  ;;  %1446 = vmatpush.msrb.mxu1 %v1391_v45 }
 0x44b   : > { %1486 = vmatpush.msrb.mxu0 %v1407_v49 }
 0x44c   : > { %v1225_v53 = vperm.slane %v1221_v50, 0  ;;  %1505 = vmatpush.msra.mxu3 %v1416_v44  ;;  %v1415_v50 = vld [vmem:[%s3777_s7 + $0xc8] sm:$0xff] }
 0x44e   : > { %v1226_v54 = vmul.f32 %v1225_v53, %v1224_v52  ;;  %v1398_v52 = vld [vmem:[%s3777_s7 + $0x40] sm:$0xff]  ;;  %1506 = vmatpush.msra.mxu3 %v1415_v50 }
 0x44f   : > { %v1406_v53 = vld [vmem:[%s3777_s7 + $0x80] sm:$0xff]  ;;  %1467 = vmatpush.msra.mxu2 %v1398_v52 }
 0x450   : > { %v1230_v55 = vadd.f32 %v3225_v51, %v1226_v54  ;;  %v1390_v51 = vld [vmem:[%s3777_s7] sm:$0xff]  ;;  %1487 = vmatpush.msrb.mxu0 %v1406_v53 }
 0x451   : > { %1447 = vmatpush.msrb.mxu1 %v1390_v51 }
 0x452   : > { %v1231_v38 = vmax.f32 %v1230_v55, 0.0  ;;  %v1414_v55 = vld [vmem:[%s3777_s7 + $0xc0] sm:$0xff] }
 0x453   : > { %1507 = vmatpush.msra.mxu3 %v1414_v55 }
 0x454   : > { %3080 = vmatmul.msk.f32.vlgmr.msra.gmra.mxu0 %vm831_vm0, %v1231_v38 }
 0x4d1   : > { %v1313_v57 = vpop.f32.mrf.mxu0 }
 0x4d2   : > { %v1316_v58 = vadd.f32 %v1313_v57, %v1291_v56 }
 0x4d4   : > { %v1342_v60 = vadd.f32 %v1339_v47, %v1316_v58 }
 0x4d6   : > { %v1346_v61 = vadd.f32 %v3226_v59, %v1342_v60  ;;  %v1244_v59 = vld [vmem:[%s3758_s1 + $0x1] sm:$0x1] }
 0x4d8   : > { %v1347_v62 = vmul.f32 %v3478_v8, %v1346_v61 }
 0x4da   : > { %v1349_v63 = vsel %vm1348_vm14, %v1347_v62, 0.0 }
 0x4db   : > { %v1350_v0 = vrot.slane %v1349_v63, 4 }
 0x4dd   : > { %v1351_v1 = vadd.f32 %v1350_v0, %v1349_v63  ;;  %v3227_v0 = vld [vmem:[%s3758_s1 + $0x2] ss:$0 sm:$0xff] }
 0x4df   : > { %v1352_v2 = vrot.slane %v1351_v1, 2 }
 0x4e1   : > { %v1353_v3 = vadd.f32 %v1352_v2, %v1351_v1 }
 0x4e3   : > { %v1354_v5 = vrot.slane %v1353_v3, 1 }
 0x4e5   : > { %v1355_v6 = vadd.f32 %v1354_v5, %v1353_v3  ;;  %v3228_v5 = vld [vmem:[%s3765_s5] ss:$0 sm:$0xff] }
 0x4e7   : > { %v1357_v9 = vmul.f32 0.5, %v1355_v6 }
 0x4e9   : > { %v3770_v10 = vsub.f32 %v1346_v61, %v1357_v9 }
 0x4eb   : > { %v1359_v11 = vmul.f32 %v3770_v10, %v3770_v10 }
 0x4ed   : > { %v1360_v15 = vmul.f32 %v3478_v8, %v1359_v11 }
 0x4ef   : > { %v1361_v20 = vsel %vm1348_vm14, %v1360_v15, 0.0 }
 0x4f0   : > { %v1362_v23 = vrot.slane %v1361_v20, 4 }
 0x4f2   : > { %v1363_v27 = vadd.f32 %v1362_v23, %v1361_v20 }
 0x4f4   : > { %v1364_v34 = vrot.slane %v1363_v27, 2 }
 0x4f6   : > { %v1365_v40 = vadd.f32 %v1364_v34, %v1363_v27 }
 0x4f8   : > { %v1366_v46 = vrot.slane %v1365_v40, 1 }
 0x4fa   : > { %v1367_v54 = vadd.f32 %v1366_v46, %v1365_v40 }
 0x4fc   : > { %v1369_v38 = vmul.f32 0.5, %v1367_v54 }
 0x4fe   : > { %v1370_v28 = vadd.f32 1e-05, %v1369_v38 }
 0x500   : > { %3245 = vrsqrt.f32 %v1370_v28  ;;  %vm1377_vm1 = vweird.f32 %v1370_v28 }
 0x506   : > { %v3246_v29 = vpop.eup %3245 }
 0x507   : > { %v1372_v56 = vmul.f32 %v3246_v29, %v1370_v28  ;;  %vm1378_vm15 = vweird.f32 %v3246_v29 }
 0x508   : > { %vm1379_vm2 = vmor %vm1377_vm1, %vm1378_vm15 }
 0x509   : > { %v1373_v57 = vmul.f32 %v3246_v29, %v1372_v56 }
 0x50b   : > { %v1374_v47 = vmul.f32 0.5, %v1373_v57 }
 0x50d   : > { %v1375_v58 = vsub.f32 1.5, %v1374_v47 }
 0x50f   : > { %v1376_v60 = vmul.f32 %v3246_v29, %v1375_v58 }
 0x511   : > { %v1380_v61 = vsel %vm1379_vm2, %v3246_v29, %v1376_v60 }
 0x512   : > { %v1381_v62 = vmul.f32 %v1380_v61, %v1244_v59 }
 0x514   : > { %v1382_v63 = vperm.slane %v1381_v62, 0 }
 0x516   : > { %v1383_v1 = vmul.f32 %v1382_v63, %v3770_v10 }
 0x518   : > { %v1387_v2 = vadd.f32 %v3227_v0, %v1383_v1 }
 0x51a   : > { %v1388_v3 = vmax.f32 %v1387_v2, 0.0 }
 0x51c   : > { %3082 = vmatmul.msk.f32.vlgmr.msrb.gmra.mxu1 %vm1348_vm14, %v1388_v3  ;;  %3083 = vmatmul.msk.f32.vlgmr.msra.gmra.mxu2 %vm1348_vm14, %v1388_v3 }
 0x51d   : > { %3084 = vmatmul.msk.f32.vlgmr.msrb.gmra.mxu0 %vm1348_vm14, %v1388_v3  ;;  %3085 = vmatmul.msk.f32.vlgmr.msra.gmra.mxu3 %vm1348_vm14, %v1388_v3 }
 0x599   : > { %v1449_v6 = vpop.f32.mrf.mxu1 }
 0x59a   : > { %v1450_v9 = vadd.f32 %v3228_v5, %v1449_v6  ;;  %v1489_v11 = vpop.f32.mrf.mxu0 }
 0x59b   : > { %v1490_v10 = vadd.f32 %v3228_v5, %v1489_v11 }
 0x59c   : > { %v1512_v12 = vmul.f32 %v3478_v8, %v1450_v9 }
 0x59d   : > { %v1531_v13 = vmul.f32 %v3478_v8, %v1490_v10 }
 0x59e   : > { %v1514_v14 = vsel %vm1513_vm3, %v1512_v12, 0.0 }
 0x59f   : > { %v1515_v15 = vrot.slane %v1514_v14, 4  ;;  %v1532_v16 = vsel %vm1513_vm3, %v1531_v13, 0.0  ;;  %v1469_v17 = vpop.f32.mrf.mxu2 }
 0x5a0   : > { %v1533_v18 = vrot.slane %v1532_v16, 4  ;;  %v1470_v19 = vadd.f32 %v3228_v5, %v1469_v17  ;;  %v1509_v20 = vpop.f32.mrf.mxu3 }
 0x5a1   : > { %v1516_v21 = vadd.f32 %v1515_v15, %v1514_v14  ;;  %v1510_v23 = vadd.f32 %v3228_v5, %v1509_v20 }
 0x5a2   : > { %v1534_v22 = vadd.f32 %v1533_v18, %v1532_v16  ;;  %v1522_v24 = vmul.f32 %v3478_v8, %v1470_v19 }
 0x5a3   : > { %v1517_v25 = vrot.slane %v1516_v21, 2  ;;  %v1540_v26 = vmul.f32 %v3478_v8, %v1510_v23 }
 0x5a4   : > { %v1523_v27 = vsel %vm1513_vm3, %v1522_v24, 0.0  ;;  %v1535_v30 = vrot.slane %v1534_v22, 2 }
 0x5a5   : > { %v1524_v31 = vrot.slane %v1523_v27, 4  ;;  %v1541_v32 = vsel %vm1513_vm3, %v1540_v26, 0.0  ;;  %v1518_v34 = vadd.f32 %v1517_v25, %v1516_v21 }
 0x5a6   : > { %v1542_v33 = vrot.slane %v1541_v32, 4  ;;  %v1536_v37 = vadd.f32 %v1535_v30, %v1534_v22 }
 0x5a7   : > { %v1525_v35 = vadd.f32 %v1524_v31, %v1523_v27  ;;  %v1519_v41 = vrot.slane %v1518_v34, 1  ;;  %v1631_v31 = vld [vmem:[%s1623_s6 + $0x38] sm:$0xff] }
 0x5a8   : > { %v1543_v36 = vadd.f32 %v1542_v33, %v1541_v32  ;;  %v1537_v44 = vrot.slane %v1536_v37, 1  ;;  %v1627_v32 = vld [vmem:[%s1623_s6 + $0x18] sm:$0xff]  ;;  %1740 = vmatpush.msrb.mxu2 %v1631_v31 }
 0x5a9   : > { %v1526_v39 = vrot.slane %v1525_v35, 2  ;;  %v1520_v46 = vadd.f32 %v1519_v41, %v1518_v34  ;;  %1711 = vmatpush.msra.mxu1 %v1627_v32 }
 0x5aa   : > { %v1544_v40 = vrot.slane %v1543_v36, 2  ;;  %v1538_v50 = vadd.f32 %v1537_v44, %v1536_v37  ;;  %v1629_v37 = vld [vmem:[%s1623_s6 + $0x28] sm:$0xff] }
 0x5ab   : > { %v1527_v42 = vadd.f32 %v1526_v39, %v1525_v35  ;;  %v1630_v35 = vld [vmem:[%s1623_s6 + $0x30] sm:$0xff]  ;;  %v1625_v39 = vld [vmem:[%s1623_s6 + $0x8] sm:$0xff] }
 0x5ac   : > { %v1545_v43 = vadd.f32 %v1544_v40, %v1543_v36  ;;  %v1626_v36 = vld [vmem:[%s1623_s6 + $0x10] sm:$0xff]  ;;  %1741 = vmatpush.msrb.mxu2 %v1630_v35 }
 0x5ad   : > { %v1528_v45 = vrot.slane %v1527_v42, 1  ;;  %1712 = vmatpush.msra.mxu1 %v1626_v36 }
 0x5ae   : > { %v1546_v49 = vrot.slane %v1545_v43, 1  ;;  %1742 = vmatpush.msrb.mxu2 %v1629_v37 }
 0x5af   : > { %v1529_v48 = vadd.f32 %v1528_v45, %v1527_v42  ;;  %v1628_v42 = vld [vmem:[%s1623_s6 + $0x20] sm:$0xff]  ;;  %1713 = vmatpush.msra.mxu1 %v1625_v39 }
 0x5b0   : > { %v1547_v53 = vadd.f32 %v1546_v49, %v1545_v43  ;;  %v1624_v43 = vld [vmem:[%s1623_s6] sm:$0xff]  ;;  %1743 = vmatpush.msrb.mxu2 %v1628_v42  ;;  %s2821_s6 = scalar_lea.vmem %s4729_s24, %s3281_s2 }
 0x5b1   : > { %v1530_v51 = vadd.f32 %v1529_v48, %v1520_v46  ;;  %1714 = vmatpush.msra.mxu1 %v1624_v43 }
 0x5b3   : > { %v1539_v52 = vadd.f32 %v1538_v50, %v1530_v51 }
 0x5b5   : > { %v1548_v54 = vadd.f32 %v1547_v53, %v1539_v52  ;;  %v1424_v53 = vld [vmem:[%s3765_s5 + $0x1] sm:$0x1] }
 0x5b7   : > { %v1549_v55 = vmul.f32 0.125, %v1548_v54 }
 0x5b9   : > { %v3837_v38 = vsub.f32 %v1450_v9, %v1549_v55  ;;  %v3839_v28 = vsub.f32 %v1470_v19, %v1549_v55  ;;  %v3841_v29 = vsub.f32 %v1490_v10, %v1549_v55  ;;  %v3843_v56 = vsub.f32 %v1510_v23, %v1549_v55 }
 0x5bb   : > { %v1554_v57 = vmul.f32 %v3837_v38, %v3837_v38  ;;  %v1564_v47 = vmul.f32 %v3839_v28, %v3839_v28  ;;  %v1574_v58 = vmul.f32 %v3841_v29, %v3841_v29  ;;  %v1584_v59 = vmul.f32 %v3843_v56, %v3843_v56 }
 0x5bd   : > { %v1555_v60 = vmul.f32 %v3478_v8, %v1554_v57  ;;  %v1565_v61 = vmul.f32 %v3478_v8, %v1564_v47  ;;  %v1575_v62 = vmul.f32 %v3478_v8, %v1574_v58  ;;  %v1585_v63 = vmul.f32 %v3478_v8, %v1584_v59  ;;  %v3229_v47 = vld [vmem:[%s3765_s5 + $0x2] ss:$0 sm:$0xff]  ;;  %s4233_s5 = scalar_lea.vmem %s4726_s21, %s3608_s4 }
 0x5bf   : > { %v1556_v0 = vsel %vm1513_vm3, %v1555_v60, 0.0  ;;  %v1566_v1 = vsel %vm1513_vm3, %v1565_v61, 0.0  ;;  %v1576_v2 = vsel %vm1513_vm3, %v1575_v62, 0.0  ;;  %v1586_v3 = vsel %vm1513_vm3, %v1585_v63, 0.0 }
 0x5c0   : > { %v1557_v5 = vrot.slane %v1556_v0, 4  ;;  %v1567_v6 = vrot.slane %v1566_v1, 4  ;;  %v1577_v9 = vrot.slane %v1576_v2, 4  ;;  %v1587_v11 = vrot.slane %v1586_v3, 4 }
 0x5c2   : > { %v1558_v10 = vadd.f32 %v1557_v5, %v1556_v0  ;;  %v1568_v12 = vadd.f32 %v1567_v6, %v1566_v1  ;;  %v1578_v13 = vadd.f32 %v1577_v9, %v1576_v2  ;;  %v1588_v14 = vadd.f32 %v1587_v11, %v1586_v3 }
 0x5c3   : > { %v1636_v6 = vadd.s32 8, %v3471_v4  ;;  %v1637_v11 = vadd.s32 16, %v3471_v4 }
 0x5c4   : > { %v1559_v15 = vrot.slane %v1558_v10, 2  ;;  %v1569_v16 = vrot.slane %v1568_v12, 2  ;;  %v1579_v17 = vrot.slane %v1578_v13, 2  ;;  %v1589_v18 = vrot.slane %v1588_v14, 2 }
 0x5c6   : > { %v1560_v19 = vadd.f32 %v1559_v15, %v1558_v10  ;;  %v1570_v20 = vadd.f32 %v1569_v16, %v1568_v12  ;;  %v1580_v21 = vadd.f32 %v1579_v17, %v1578_v13  ;;  %v1590_v23 = vadd.f32 %v1589_v18, %v1588_v14  ;;  %v3230_v13 = vld [vmem:[%s3826_s0] ss:$0 sm:$0xff] }
 0x5c7   : > { %v1643_v12 = vand.u32 7, %v1636_v6  ;;  %v1638_v14 = vadd.s32 24, %v3471_v4 }
 0x5c8   : > { %v1561_v22 = vrot.slane %v1560_v19, 1  ;;  %v1571_v24 = vrot.slane %v1570_v20, 1  ;;  %v1581_v25 = vrot.slane %v1580_v21, 1  ;;  %v1591_v30 = vrot.slane %v1590_v23, 1 }
 0x5c9   : > { %vm1675_vm7 = vcmp.lt.s32.totalorder %v1643_v12, 2 }
 0x5ca   : > { %v1562_v26 = vadd.f32 %v1561_v22, %v1560_v19  ;;  %v1572_v27 = vadd.f32 %v1571_v24, %v1570_v20  ;;  %v1582_v34 = vadd.f32 %v1581_v25, %v1580_v21  ;;  %v1592_v41 = vadd.f32 %v1591_v30, %v1590_v23 }
 0x5cb   : > { %v3885_v17 = vsel %vm1675_vm7, 1.0, %v3295_v7  ;;  %v1657_v21 = vand.u32 7, %v1638_v14 }
 0x5cc   : > { %v1573_v33 = vadd.f32 %v1572_v27, %v1562_v26 }
 0x5cd   : > { %vm1677_vm9 = vcmp.lt.s32.totalorder %v1657_v21, 2 }
 0x5ce   : > { %v1583_v40 = vadd.f32 %v1582_v34, %v1573_v33  ;;  %v3895_v33 = vsel %vm1677_vm9, 1.0, %v3295_v7 }
 0x5d0   : > { %v1593_v44 = vadd.f32 %v1592_v41, %v1583_v40 }
 0x5d2   : > { %v1594_v45 = vmul.f32 0.125, %v1593_v44 }
 0x5d4   : > { %v1595_v46 = vadd.f32 1e-05, %v1594_v45 }
 0x5d6   : > { %3247 = vrsqrt.f32 %v1595_v46  ;;  %vm1602_vm5 = vweird.f32 %v1595_v46 }
 0x5dc   : > { %v3248_v48 = vpop.eup %3247 }
 0x5dd   : > { %v1597_v49 = vmul.f32 %v3248_v48, %v1595_v46  ;;  %vm1603_vm4 = vweird.f32 %v3248_v48 }
 0x5de   : > { %vm1604_vm6 = vmor %vm1602_vm5, %vm1603_vm4 }
 0x5df   : > { %v1598_v50 = vmul.f32 %v3248_v48, %v1597_v49 }
 0x5e1   : > { %v1599_v51 = vmul.f32 0.5, %v1598_v50 }
 0x5e3   : > { %v1600_v52 = vsub.f32 1.5, %v1599_v51 }
 0x5e5   : > { %v1601_v54 = vmul.f32 %v3248_v48, %v1600_v52 }
 0x5e7   : > { %v1605_v55 = vsel %vm1604_vm6, %v3248_v48, %v1601_v54 }
 0x5e8   : > { %v1606_v57 = vmul.f32 %v1605_v55, %v1424_v53 }
 0x5ea   : > { %v1607_v58 = vperm.slane %v1606_v57, 0 }
 0x5ec   : > { %v1608_v59 = vmul.f32 %v1607_v58, %v3837_v38  ;;  %v1614_v62 = vmul.f32 %v1607_v58, %v3839_v28  ;;  %v1617_v1 = vmul.f32 %v1607_v58, %v3841_v29  ;;  %v1620_v38 = vmul.f32 %v1607_v58, %v3843_v56 }
 0x5ed   : > { %v1650_v56 = vand.u32 7, %v1637_v11 }
 0x5ee   : > { %v1612_v60 = vadd.f32 %v3229_v47, %v1608_v59  ;;  %v1615_v63 = vadd.f32 %v3229_v47, %v1614_v62  ;;  %v1618_v2 = vadd.f32 %v3229_v47, %v1617_v1  ;;  %v1621_v28 = vadd.f32 %v3229_v47, %v1620_v38 }
 0x5ef   : > { %vm1676_vm8 = vcmp.lt.s32.totalorder %v1650_v56, 2 }
 0x5f0   : > { %v1613_v61 = vmax.f32 %v1612_v60, 0.0  ;;  %v1616_v0 = vmax.f32 %v1615_v63, 0.0  ;;  %v1619_v3 = vmax.f32 %v1618_v2, 0.0  ;;  %v1622_v5 = vmax.f32 %v1621_v28, 0.0 }
 0x5f1   : > { %v3888_v23 = vsel %vm1676_vm8, 1.0, %v3295_v7 }
 0x5f2   : > { %3089 = vmatmul.msk.f32.vlgmr.msra.gmra.mxu1 %vm1513_vm3, %v1613_v61  ;;  %3093 = vmatmul.msk.f32.vlgmr.msrb.gmra.mxu2 %vm1513_vm3, %v1613_v61 }
 0x5fa   : > { %3090 = vmatmul.msk.f32.gmra.mxu1 %vm1513_vm3, %v1616_v0  ;;  %3094 = vmatmul.msk.f32.gmra.mxu2 %vm1513_vm3, %v1616_v0 }
 0x602   : > { %3091 = vmatmul.msk.f32.gmra.mxu1 %vm1513_vm3, %v1619_v3  ;;  %3095 = vmatmul.msk.f32.gmra.mxu2 %vm1513_vm3, %v1619_v3 }
 0x60a   : > { %3092 = vmatmul.msk.f32.gmra.mxu1 %vm1513_vm3, %v1622_v5  ;;  %3096 = vmatmul.msk.f32.gmra.mxu2 %vm1513_vm3, %v1622_v5 }
 0x66f   : > { %v1716_v29 = vpop.f32.mrf.mxu1 }
 0x670   : > { %v1717_v19 = vadd.f32 %v3230_v13, %v1716_v29 }
 0x672   : > { %v1757_v24 = vmul.f32 %v3478_v8, %v1717_v19 }
 0x674   : > { %v1761_v35 = vsel %vm831_vm0, %v1757_v24, 0.0 }
 0x675   : > { %v1745_v9 = vpop.f32.mrf.mxu2 }
 0x676   : > { %v1746_v30 = vadd.f32 %v3230_v13, %v1745_v9 }
 0x677   : > { %v1719_v10 = vpop.f32.mrf.mxu1 }
 0x678   : > { %v1720_v16 = vadd.f32 %v3230_v13, %v1719_v10  ;;  %v1775_v41 = vmul.f32 %v3478_v8, %v1746_v30 }
 0x67a   : > { %v1758_v22 = vmul.f32 %v3885_v17, %v1720_v16  ;;  %v1779_v50 = vsel %vm831_vm0, %v1775_v41, 0.0 }
 0x67c   : > { %v1762_v31 = vsel %vm831_vm0, %v1758_v22, 0.0 }
 0x67d   : > { %v1748_v15 = vpop.f32.mrf.mxu2  ;;  %v1763_v40 = vadd.f32 %v1762_v31, %v1761_v35 }
 0x67e   : > { %v1749_v25 = vadd.f32 %v3230_v13, %v1748_v15 }
 0x67f   : > { %v1722_v18 = vpop.f32.mrf.mxu1 }
 0x680   : > { %v1723_v20 = vadd.f32 %v3230_v13, %v1722_v18  ;;  %v1776_v36 = vmul.f32 %v3885_v17, %v1749_v25 }
 0x682   : > { %v1759_v26 = vmul.f32 %v3888_v23, %v1723_v20  ;;  %v1780_v45 = vsel %vm831_vm0, %v1776_v36, 0.0 }
 0x683   : > { %v1781_v53 = vadd.f32 %v1780_v45, %v1779_v50 }
 0x684   : > { %v1764_v37 = vsel %vm831_vm0, %v1759_v26, 0.0 }
 0x685   : > { %v1751_v27 = vpop.f32.mrf.mxu2  ;;  %v1765_v44 = vadd.f32 %v1764_v37, %v1763_v40 }
 0x686   : > { %v1752_v32 = vadd.f32 %v3230_v13, %v1751_v27 }
 0x687   : > { %v1725_v34 = vpop.f32.mrf.mxu1 }
 0x688   : > { %v1726_v39 = vadd.f32 %v3230_v13, %v1725_v34  ;;  %v1777_v42 = vmul.f32 %v3888_v23, %v1752_v32 }
 0x68a   : > { %v1760_v43 = vmul.f32 %v3895_v33, %v1726_v39  ;;  %v1782_v51 = vsel %vm831_vm0, %v1777_v42, 0.0 }
 0x68b   : > { %v1783_v57 = vadd.f32 %v1782_v51, %v1781_v53 }
 0x68c   : > { %v1766_v46 = vsel %vm831_vm0, %v1760_v43, 0.0 }
 0x68d   : > { %v1767_v48 = vadd.f32 %v1766_v46, %v1765_v44  ;;  %v1754_v49 = vpop.f32.mrf.mxu2 }
 0x68e   : > { %v1755_v52 = vadd.f32 %v3230_v13, %v1754_v49 }
 0x68f   : > { %v1768_v54 = vrot.slane %v1767_v48, 4 }
 0x690   : > { %v1778_v55 = vmul.f32 %v3895_v33, %v1755_v52 }
 0x691   : > { %v1769_v47 = vadd.f32 %v1768_v54, %v1767_v48 }
 0x692   : > { %v1784_v58 = vsel %vm831_vm0, %v1778_v55, 0.0 }
 0x693   : > { %v1770_v59 = vrot.slane %v1769_v47, 2  ;;  %v1785_v60 = vadd.f32 %v1784_v58, %v1783_v57 }
 0x695   : > { %v1786_v61 = vrot.slane %v1785_v60, 4  ;;  %v1771_v62 = vadd.f32 %v1770_v59, %v1769_v47 }
 0x697   : > { %v1787_v63 = vadd.f32 %v1786_v61, %v1785_v60  ;;  %v1772_v1 = vrot.slane %v1771_v62, 1 }
 0x699   : > { %v1788_v0 = vrot.slane %v1787_v63, 2  ;;  %v1773_v3 = vadd.f32 %v1772_v1, %v1771_v62  ;;  %v1890_v62 = vld [vmem:[%s1888_s26 + $0x8] sm:$0xff] }
 0x69a   : > { %2002 = vmatpush.msra.mxu2 %v1890_v62  ;;  %v1898_v62 = vadd.s32 40, %v3471_v4 }
 0x69b   : > { %v1789_v2 = vadd.f32 %v1788_v0, %v1787_v63  ;;  %v1889_v63 = vld [vmem:[%s1888_s26] sm:$0xff]  ;;  %v1892_v0 = vld [vmem:[%s1888_s26 + $0x18] sm:$0xff] }
 0x69c   : > { %2043 = vmatpush.msrb.mxu3 %v1892_v0  ;;  %2003 = vmatpush.msra.mxu2 %v1889_v63 }
 0x69d   : > { %v1790_v38 = vrot.slane %v1789_v2, 1 }
 0x69f   : > { %v1791_v28 = vadd.f32 %v1790_v38, %v1789_v2  ;;  %v1891_v2 = vld [vmem:[%s1888_s26 + $0x10] sm:$0xff] }
 0x6a0   : > { %2044 = vmatpush.msrb.mxu3 %v1891_v2  ;;  %v1899_v2 = vadd.s32 48, %v3471_v4 }
 0x6a1   : > { %v1792_v5 = vadd.f32 %v1791_v28, %v1773_v3 }
 0x6a3   : > { %v1793_v29 = vmul.f32 0.0625, %v1792_v5 }
 0x6a5   : > { %v3915_v6 = vsub.f32 %v1717_v19, %v1793_v29  ;;  %v3917_v9 = vsub.f32 %v1720_v16, %v1793_v29  ;;  %v3919_v11 = vsub.f32 %v1723_v20, %v1793_v29  ;;  %v3921_v10 = vsub.f32 %v1726_v39, %v1793_v29 }
 0x6a6   : > { %v3923_v12 = vsub.f32 %v1746_v30, %v1793_v29  ;;  %v3925_v56 = vsub.f32 %v1749_v25, %v1793_v29  ;;  %v3927_v13 = vsub.f32 %v1752_v32, %v1793_v29  ;;  %v3929_v14 = vsub.f32 %v1755_v52, %v1793_v29 }
 0x6a7   : > { %v1802_v15 = vmul.f32 %v3915_v6, %v3915_v6  ;;  %v1803_v18 = vmul.f32 %v3917_v9, %v3917_v9  ;;  %v1804_v16 = vmul.f32 %v3919_v11, %v3919_v11  ;;  %v1805_v19 = vmul.f32 %v3921_v10, %v3921_v10 }
 0x6a8   : > { %v1824_v20 = vmul.f32 %v3923_v12, %v3923_v12  ;;  %v1825_v21 = vmul.f32 %v3925_v56, %v3925_v56  ;;  %v1826_v22 = vmul.f32 %v3927_v13, %v3927_v13  ;;  %v1827_v24 = vmul.f32 %v3929_v14, %v3929_v14 }
 0x6a9   : > { %v1806_v25 = vmul.f32 %v3478_v8, %v1802_v15  ;;  %v1807_v26 = vmul.f32 %v3885_v17, %v1803_v18  ;;  %v1808_v27 = vmul.f32 %v3888_v23, %v1804_v16  ;;  %v1809_v34 = vmul.f32 %v3895_v33, %v1805_v19 }
 0x6aa   : > { %v1828_v30 = vmul.f32 %v3478_v8, %v1824_v20  ;;  %v1829_v31 = vmul.f32 %v3885_v17, %v1825_v21  ;;  %v1830_v32 = vmul.f32 %v3888_v23, %v1826_v22  ;;  %v1831_v39 = vmul.f32 %v3895_v33, %v1827_v24  ;;  %v1634_v20 = vld [vmem:[%s3826_s0 + $0x1] sm:$0x1] }
 0x6ab   : > { %v1810_v35 = vsel %vm831_vm0, %v1806_v25, 0.0  ;;  %v1811_v36 = vsel %vm831_vm0, %v1807_v26, 0.0  ;;  %v1813_v42 = vsel %vm831_vm0, %v1808_v27, 0.0  ;;  %v1815_v46 = vsel %vm831_vm0, %v1809_v34, 0.0  ;;  %v3231_v25 = vld [vmem:[%s3826_s0 + $0x2] ss:$0 sm:$0xff] }
 0x6ac   : > { %v1812_v37 = vadd.f32 %v1811_v36, %v1810_v35  ;;  %v1832_v40 = vsel %vm831_vm0, %v1828_v30, 0.0  ;;  %v1833_v41 = vsel %vm831_vm0, %v1829_v31, 0.0  ;;  %v1835_v45 = vsel %vm831_vm0, %v1830_v32, 0.0  ;;  %s4776_s0 = sshll.u32 %s3281_s2, 4 }
 0x6ad   : > { %v1834_v43 = vadd.f32 %v1833_v41, %v1832_v40  ;;  %v1837_v50 = vsel %vm831_vm0, %v1831_v39, 0.0  ;;  %s2288_s1 = scalar_lea.vmem %s4725_s20, %s4776_s0 }
 0x6ae   : > { %v1814_v44 = vadd.f32 %v1813_v42, %v1812_v37 }
 0x6af   : > { %v1836_v48 = vadd.f32 %v1835_v45, %v1834_v43 }
 0x6b0   : > { %v1816_v49 = vadd.f32 %v1815_v46, %v1814_v44 }
 0x6b1   : > { %v1838_v51 = vadd.f32 %v1837_v50, %v1836_v48 }
 0x6b2   : > { %v1817_v52 = vrot.slane %v1816_v49, 4 }
 0x6b3   : > { %v1839_v53 = vrot.slane %v1838_v51, 4 }
 0x6b4   : > { %v1818_v54 = vadd.f32 %v1817_v52, %v1816_v49 }
 0x6b5   : > { %v1840_v55 = vadd.f32 %v1839_v53, %v1838_v51 }
 0x6b6   : > { %v1819_v57 = vrot.slane %v1818_v54, 2 }
 0x6b7   : > { %v1841_v47 = vrot.slane %v1840_v55, 2 }
 0x6b8   : > { %v1820_v58 = vadd.f32 %v1819_v57, %v1818_v54 }
 0x6b9   : > { %v1842_v59 = vadd.f32 %v1841_v47, %v1840_v55 }
 0x6ba   : > { %v1821_v60 = vrot.slane %v1820_v58, 1 }
 0x6bb   : > { %v1843_v61 = vrot.slane %v1842_v59, 1 }
 0x6bc   : > { %v1822_v1 = vadd.f32 %v1821_v60, %v1820_v58  ;;  %v3994_v58 = vld [vmem:[%s3913_s8] ss:$0 sm:$0xff] }
 0x6bd   : > { %v1844_v38 = vadd.f32 %v1843_v61, %v1842_v59  ;;  %v1897_v59 = vadd.s32 32, %v3471_v4 }
 0x6bf   : > { %v1845_v3 = vadd.f32 %v1844_v38, %v1822_v1  ;;  %v1905_v61 = vand.u32 7, %v1897_v59 }
 0x6c1   : > { %v1846_v28 = vmul.f32 0.0625, %v1845_v3  ;;  %vm1949_vm13 = vcmp.lt.s32.totalorder %v1905_v61, 2 }
 0x6c3   : > { %v1847_v5 = vadd.f32 1e-05, %v1846_v28 }
 0x6c5   : > { %3249 = vrsqrt.f32 %v1847_v5  ;;  %vm1854_vm11 = vweird.f32 %v1847_v5 }
 0x6cb   : > { %v3250_v29 = vpop.eup %3249 }
 0x6cc   : > { %v1849_v15 = vmul.f32 %v3250_v29, %v1847_v5  ;;  %vm1855_vm10 = vweird.f32 %v3250_v29 }
 0x6cd   : > { %vm1856_vm12 = vmor %vm1854_vm11, %vm1855_vm10 }
 0x6ce   : > { %v1850_v18 = vmul.f32 %v3250_v29, %v1849_v15  ;;  %v1912_v15 = vand.u32 7, %v1898_v62 }
 0x6d0   : > { %v1851_v16 = vmul.f32 0.5, %v1850_v18  ;;  %vm1950_vm14 = vcmp.lt.s32.totalorder %v1912_v15, 2 }
 0x6d2   : > { %v1852_v19 = vsub.f32 1.5, %v1851_v16 }
 0x6d4   : > { %v1853_v21 = vmul.f32 %v3250_v29, %v1852_v19 }
 0x6d6   : > { %v1857_v22 = vsel %vm1856_vm12, %v3250_v29, %v1853_v21 }
 0x6d7   : > { %v1858_v24 = vmul.f32 %v1857_v22, %v1634_v20  ;;  %v1919_v20 = vand.u32 7, %v1899_v2 }
 0x6d9   : > { %v1859_v26 = vperm.slane %v1858_v24, 0  ;;  %vm4049_vm15 = vcmp.lt.s32.totalorder %v1919_v20, 2 }
 0x6db   : > { %v1860_v27 = vmul.f32 %v1859_v26, %v3915_v6  ;;  %v1861_v32 = vmul.f32 %v1859_v26, %v3917_v9  ;;  %v1862_v36 = vmul.f32 %v1859_v26, %v3919_v11  ;;  %v1863_v6 = vmul.f32 %v1859_v26, %v3921_v10 }
 0x6dc   : > { %v1875_v41 = vmul.f32 %v1859_v26, %v3923_v12  ;;  %v1876_v43 = vmul.f32 %v1859_v26, %v3925_v56  ;;  %v1877_v45 = vmul.f32 %v1859_v26, %v3927_v13  ;;  %v1878_v46 = vmul.f32 %v1859_v26, %v3929_v14 }
 0x6dd   : > { %v1867_v30 = vadd.f32 %v3231_v25, %v1860_v27  ;;  %v1868_v34 = vadd.f32 %v3231_v25, %v1861_v32  ;;  %v1869_v37 = vadd.f32 %v3231_v25, %v1862_v36  ;;  %v1870_v9 = vadd.f32 %v3231_v25, %v1863_v6 }
 0x6de   : > { %v1879_v11 = vadd.f32 %v3231_v25, %v1875_v41  ;;  %v1880_v10 = vadd.f32 %v3231_v25, %v1876_v43  ;;  %v1881_v12 = vadd.f32 %v3231_v25, %v1877_v45  ;;  %v1882_v56 = vadd.f32 %v3231_v25, %v1878_v46 }
 0x6df   : > { %v1871_v31 = vmax.f32 %v1867_v30, 0.0  ;;  %v1872_v35 = vmax.f32 %v1868_v34, 0.0  ;;  %v1873_v39 = vmax.f32 %v1869_v37, 0.0  ;;  %v1874_v40 = vmax.f32 %v1870_v9, 0.0 }
 0x6e0   : > { %v1883_v42 = vmax.f32 %v1879_v11, 0.0  ;;  %v1884_v44 = vmax.f32 %v1880_v10, 0.0  ;;  %v1885_v48 = vmax.f32 %v1881_v12, 0.0  ;;  %v1886_v49 = vmax.f32 %v1882_v56, 0.0 }
 0x6e1   : > { %3102 = vmatmul.msk.f32.vlgmr.msra.gmra.mxu2 %vm831_vm0, %v1871_v31  ;;  %3110 = vmatmul.msk.f32.vlgmr.msrb.gmra.mxu3 %vm831_vm0, %v1871_v31  ;;  %v4036_v26 = vsel %vm1949_vm13, 1.0, %v3295_v7  ;;  %v1900_v27 = vadd.s32 56, %v3471_v4 }
 0x6e9   : > { %3103 = vmatmul.msk.f32.gmra.mxu2 %vm831_vm0, %v1872_v35  ;;  %3111 = vmatmul.msk.f32.gmra.mxu3 %vm831_vm0, %v1872_v35 }
 0x6f1   : > { %3104 = vmatmul.msk.f32.gmra.mxu2 %vm831_vm0, %v1873_v39  ;;  %3112 = vmatmul.msk.f32.gmra.mxu3 %vm831_vm0, %v1873_v39 }
 0x6f9   : > { %3105 = vmatmul.msk.f32.gmra.mxu2 %vm831_vm0, %v1874_v40  ;;  %3113 = vmatmul.msk.f32.gmra.mxu3 %vm831_vm0, %v1874_v40 }
 0x701   : > { %3106 = vmatmul.msk.f32.gmra.mxu2 %vm831_vm0, %v1883_v42  ;;  %3114 = vmatmul.msk.f32.gmra.mxu3 %vm831_vm0, %v1883_v42  ;;  %v4066_v42 = vsel %vm1950_vm14, 1.0, %v3295_v7 }
 0x709   : > { %3107 = vmatmul.msk.f32.gmra.mxu2 %vm831_vm0, %v1884_v44  ;;  %3115 = vmatmul.msk.f32.gmra.mxu3 %vm831_vm0, %v1884_v44  ;;  %v1926_v44 = vand.u32 7, %v1900_v27 }
 0x70b   : > { %vm1952_vm1 = vcmp.lt.s32.totalorder %v1926_v44, 2 }
 0x70c   : > { %v4098_v15 = vsel %vm1952_vm1, 1.0, %v3295_v7 }
 0x711   : > { %3108 = vmatmul.msk.f32.gmra.mxu2 %vm831_vm0, %v1885_v48  ;;  %3116 = vmatmul.msk.f32.gmra.mxu3 %vm831_vm0, %v1885_v48 }
 0x719   : > { %3109 = vmatmul.msk.f32.gmra.mxu2 %vm831_vm0, %v1886_v49  ;;  %3117 = vmatmul.msk.f32.gmra.mxu3 %vm831_vm0, %v1886_v49 }
 0x764   : > { %v2005_v13 = vpop.f32.mrf.mxu2  ;;  %v2046_v50 = vpop.f32.mrf.mxu3 }
 0x765   : > { %v3998_v60 = vadd.f32 %v3994_v58, %v2005_v13  ;;  %v4002_v63 = vadd.f32 %v3994_v58, %v2046_v50  ;;  %v4081_v13 = vsel %vm4049_vm15, 1.0, %v3295_v7 }
 0x767   : > { %v2070_v29 = vmul.f32 %v3478_v8, %v3998_v60  ;;  %v2100_v18 = vmul.f32 %v3478_v8, %v4002_v63 }
 0x769   : > { %v2078_v30 = vsel %vm831_vm0, %v2070_v29, 0.0  ;;  %v2108_v34 = vsel %vm831_vm0, %v2100_v18, 0.0 }
 0x76c   : > { %v2008_v51 = vpop.f32.mrf.mxu2  ;;  %v2049_v52 = vpop.f32.mrf.mxu3 }
 0x76d   : > { %v4005_v0 = vadd.f32 %v3994_v58, %v2008_v51  ;;  %v4008_v1 = vadd.f32 %v3994_v58, %v2049_v52 }
 0x76f   : > { %v2071_v16 = vmul.f32 %v3885_v17, %v4005_v0  ;;  %v2101_v19 = vmul.f32 %v3885_v17, %v4008_v1 }
 0x771   : > { %v2079_v35 = vsel %vm831_vm0, %v2071_v16, 0.0  ;;  %v2109_v36 = vsel %vm831_vm0, %v2101_v19, 0.0 }
 0x772   : > { %v2080_v56 = vadd.f32 %v2079_v35, %v2078_v30  ;;  %v2110_v49 = vadd.f32 %v2109_v36, %v2108_v34 }
 0x774   : > { %v2011_v53 = vpop.f32.mrf.mxu2  ;;  %v2052_v54 = vpop.f32.mrf.mxu3 }
 0x775   : > { %v4012_v38 = vadd.f32 %v3994_v58, %v2011_v53  ;;  %v4015_v3 = vadd.f32 %v3994_v58, %v2052_v54 }
 0x777   : > { %v2072_v24 = vmul.f32 %v3888_v23, %v4012_v38  ;;  %v2102_v25 = vmul.f32 %v3888_v23, %v4015_v3 }
 0x779   : > { %v2081_v41 = vsel %vm831_vm0, %v2072_v24, 0.0  ;;  %v2111_v11 = vsel %vm831_vm0, %v2102_v25, 0.0 }
 0x77a   : > { %v2082_v54 = vadd.f32 %v2081_v41, %v2080_v56 }
 0x77c   : > { %v2014_v55 = vpop.f32.mrf.mxu2  ;;  %v2055_v14 = vpop.f32.mrf.mxu3 }
 0x77d   : > { %v4026_v21 = vadd.f32 %v3994_v58, %v2014_v55  ;;  %v4029_v22 = vadd.f32 %v3994_v58, %v2055_v14  ;;  %v2112_v55 = vadd.f32 %v2111_v11, %v2110_v49 }
 0x77f   : > { %v2073_v39 = vmul.f32 %v3895_v33, %v4026_v21  ;;  %v2103_v6 = vmul.f32 %v3895_v33, %v4029_v22 }
 0x781   : > { %v2083_v50 = vsel %vm831_vm0, %v2073_v39, 0.0  ;;  %v2113_v51 = vsel %vm831_vm0, %v2103_v6, 0.0 }
 0x782   : > { %v2084_v61 = vadd.f32 %v2083_v50, %v2082_v54  ;;  %v2114_v62 = vadd.f32 %v2113_v51, %v2112_v55 }
 0x784   : > { %v2017_v57 = vpop.f32.mrf.mxu2  ;;  %v2058_v47 = vpop.f32.mrf.mxu3 }
 0x785   : > { %v4041_v31 = vadd.f32 %v3994_v58, %v2017_v57  ;;  %v4044_v32 = vadd.f32 %v3994_v58, %v2058_v47 }
 0x787   : > { %v2074_v45 = vmul.f32 %v4036_v26, %v4041_v31  ;;  %v2104_v12 = vmul.f32 %v4036_v26, %v4044_v32 }
 0x789   : > { %v2085_v14 = vsel %vm831_vm0, %v2074_v45, 0.0  ;;  %v2115_v57 = vsel %vm831_vm0, %v2104_v12, 0.0 }
 0x78a   : > { %v2116_v29 = vadd.f32 %v2115_v57, %v2114_v62 }
 0x78c   : > { %v2020_v28 = vpop.f32.mrf.mxu2  ;;  %v2061_v5 = vpop.f32.mrf.mxu3 }
 0x78d   : > { %v4058_v9 = vadd.f32 %v3994_v58, %v2020_v28  ;;  %v4061_v40 = vadd.f32 %v3994_v58, %v2061_v5  ;;  %v2086_v5 = vadd.f32 %v2085_v14, %v2084_v61 }
 0x78f   : > { %v2075_v52 = vmul.f32 %v4066_v42, %v4058_v9  ;;  %v2105_v53 = vmul.f32 %v4066_v42, %v4061_v40 }
 0x791   : > { %v2087_v2 = vsel %vm831_vm0, %v2075_v52, 0.0  ;;  %v2117_v28 = vsel %vm831_vm0, %v2105_v53, 0.0 }
 0x792   : > { %v2088_v27 = vadd.f32 %v2087_v2, %v2086_v5  ;;  %v2118_v30 = vadd.f32 %v2117_v28, %v2116_v29 }
 0x794   : > { %v2023_v43 = vpop.f32.mrf.mxu2  ;;  %v2064_v10 = vpop.f32.mrf.mxu3 }
 0x795   : > { %v4073_v46 = vadd.f32 %v3994_v58, %v2023_v43  ;;  %v4076_v48 = vadd.f32 %v3994_v58, %v2064_v10 }
 0x797   : > { %v2076_v47 = vmul.f32 %v4081_v13, %v4073_v46  ;;  %v2106_v59 = vmul.f32 %v4081_v13, %v4076_v48 }
 0x799   : > { %v2089_v19 = vsel %vm831_vm0, %v2076_v47, 0.0  ;;  %v2119_v20 = vsel %vm831_vm0, %v2106_v59, 0.0 }
 0x79a   : > { %v2090_v36 = vadd.f32 %v2089_v19, %v2088_v27  ;;  %v2120_v37 = vadd.f32 %v2119_v20, %v2118_v30 }
 0x79c   : > { %v2026_v18 = vpop.f32.mrf.mxu2  ;;  %v2067_v16 = vpop.f32.mrf.mxu3 }
 0x79d   : > { %v2027_v24 = vadd.f32 %v3994_v58, %v2026_v18  ;;  %v4104_v25 = vadd.f32 %v3994_v58, %v2067_v16 }
 0x79f   : > { %v2077_v34 = vmul.f32 %v4098_v15, %v2027_v24  ;;  %v2107_v35 = vmul.f32 %v4098_v15, %v4104_v25 }
 0x7a1   : > { %v2091_v39 = vsel %vm831_vm0, %v2077_v34, 0.0  ;;  %v2121_v6 = vsel %vm831_vm0, %v2107_v35, 0.0 }
 0x7a2   : > { %v2092_v41 = vadd.f32 %v2091_v39, %v2090_v36  ;;  %v2122_v11 = vadd.f32 %v2121_v6, %v2120_v37 }
 0x7a4   : > { %v2093_v43 = vrot.slane %v2092_v41, 4  ;;  %v2123_v10 = vrot.slane %v2122_v11, 4 }
 0x7a6   : > { %v2094_v44 = vadd.f32 %v2093_v43, %v2092_v41  ;;  %v2124_v58 = vadd.f32 %v2123_v10, %v2122_v11 }
 0x7a8   : > { %v2095_v45 = vrot.slane %v2094_v44, 2  ;;  %v2125_v12 = vrot.slane %v2124_v58, 2 }
 0x7aa   : > { %v2096_v56 = vadd.f32 %v2095_v45, %v2094_v44  ;;  %v2126_v49 = vadd.f32 %v2125_v12, %v2124_v58 }
 0x7ac   : > { %v2097_v50 = vrot.slane %v2096_v56, 1  ;;  %v2127_v51 = vrot.slane %v2126_v49, 1 }
 0x7ae   : > { %v2098_v52 = vadd.f32 %v2097_v50, %v2096_v56  ;;  %v2128_v53 = vadd.f32 %v2127_v51, %v2126_v49 }
 0x7b0   : > { %v2129_v54 = vadd.f32 %v2128_v53, %v2098_v52 }
 0x7b2   : > { %v2130_v55 = vmul.f32 0.03125, %v2129_v54 }
 0x7b4   : > { %v4112_v14 = vsub.f32 %v3998_v60, %v2130_v55  ;;  %v4115_v57 = vsub.f32 %v4005_v0, %v2130_v55  ;;  %v4118_v47 = vsub.f32 %v4012_v38, %v2130_v55  ;;  %v4121_v59 = vsub.f32 %v4026_v21, %v2130_v55 }
 0x7b5   : > { %v4124_v61 = vsub.f32 %v4041_v31, %v2130_v55  ;;  %v4127_v62 = vsub.f32 %v4058_v9, %v2130_v55  ;;  %v4138_v21 = vsub.f32 %v4073_v46, %v2130_v55  ;;  %v4141_v31 = vsub.f32 %v4002_v63, %v2130_v55 }
 0x7b6   : > { %v2147_v2 = vmul.f32 %v4112_v14, %v4112_v14  ;;  %v2148_v60 = vmul.f32 %v4115_v57, %v4115_v57  ;;  %v2149_v0 = vmul.f32 %v4118_v47, %v4118_v47  ;;  %v2150_v38 = vmul.f32 %v4121_v59, %v4121_v59 }
 0x7b7   : > { %v4144_v9 = vsub.f32 %v4008_v1, %v2130_v55  ;;  %v2151_v28 = vmul.f32 %v4124_v61, %v4124_v61  ;;  %v4149_v5 = vsub.f32 %v4015_v3, %v2130_v55  ;;  %v4154_v46 = vsub.f32 %v2027_v24, %v2130_v55 }
 0x7b8   : > { %v2155_v29 = vmul.f32 %v3478_v8, %v2147_v2  ;;  %v2156_v18 = vmul.f32 %v3885_v17, %v2148_v60  ;;  %v2157_v16 = vmul.f32 %v3888_v23, %v2149_v0  ;;  %v4157_v63 = vsub.f32 %v4029_v22, %v2130_v55 }
 0x7b9   : > { %v2152_v1 = vmul.f32 %v4127_v62, %v4127_v62  ;;  %v2158_v19 = vmul.f32 %v3895_v33, %v2150_v38  ;;  %v4165_v27 = vsub.f32 %v4044_v32, %v2130_v55  ;;  %v2153_v30 = vmul.f32 %v4138_v21, %v4138_v21 }
 0x7ba   : > { %v2163_v20 = vsel %vm831_vm0, %v2155_v29, 0.0  ;;  %v2164_v3 = vsel %vm831_vm0, %v2156_v18, 0.0  ;;  %v2159_v24 = vmul.f32 %v4036_v26, %v2151_v28  ;;  %v2166_v22 = vsel %vm831_vm0, %v2157_v16, 0.0 }
 0x7bb   : > { %v2165_v34 = vadd.f32 %v2164_v3, %v2163_v20  ;;  %v2185_v35 = vmul.f32 %v4141_v31, %v4141_v31  ;;  %v2186_v36 = vmul.f32 %v4144_v9, %v4144_v9  ;;  %v2187_v37 = vmul.f32 %v4149_v5, %v4149_v5 }
 0x7bc   : > { %v4178_v32 = vsub.f32 %v4061_v40, %v2130_v55  ;;  %v2154_v39 = vmul.f32 %v4154_v46, %v4154_v46  ;;  %v2188_v41 = vmul.f32 %v4157_v63, %v4157_v63  ;;  %v2160_v11 = vmul.f32 %v4066_v42, %v2152_v1 }
 0x7bd   : > { %v2167_v6 = vadd.f32 %v2166_v22, %v2165_v34  ;;  %v2168_v43 = vsel %vm831_vm0, %v2158_v19, 0.0  ;;  %v2193_v10 = vmul.f32 %v3478_v8, %v2185_v35  ;;  %v2194_v44 = vmul.f32 %v3885_v17, %v2186_v36 }
 0x7be   : > { %v4189_v58 = vsub.f32 %v4076_v48, %v2130_v55  ;;  %v2189_v45 = vmul.f32 %v4165_v27, %v4165_v27  ;;  %v2195_v12 = vmul.f32 %v3888_v23, %v2187_v37  ;;  %v4195_v56 = vsub.f32 %v4104_v25, %v2130_v55 }
 0x7bf   : > { %v2169_v40 = vadd.f32 %v2168_v43, %v2167_v6  ;;  %v2161_v49 = vmul.f32 %v4081_v13, %v2153_v30  ;;  %v2170_v50 = vsel %vm831_vm0, %v2159_v24, 0.0  ;;  %v2201_v51 = vsel %vm831_vm0, %v2193_v10, 0.0 }
 0x7c0   : > { %v2190_v48 = vmul.f32 %v4178_v32, %v4178_v32  ;;  %v2196_v53 = vmul.f32 %v3895_v33, %v2188_v41  ;;  %v2202_v54 = vsel %vm831_vm0, %v2194_v44, 0.0  ;;  %v2162_v2 = vmul.f32 %v4098_v15, %v2154_v39 }
 0x7c1   : > { %v2171_v52 = vadd.f32 %v2170_v50, %v2169_v40  ;;  %v2172_v60 = vsel %vm831_vm0, %v2160_v11, 0.0  ;;  %v2203_v25 = vadd.f32 %v2202_v54, %v2201_v51  ;;  %v2191_v0 = vmul.f32 %v4189_v58, %v4189_v58  ;;  %v2290_v54 = vld [vmem:[%s2288_s1 + $0x8] sm:$0xff] }
 0x7c2   : > { %v2197_v38 = vmul.f32 %v4036_v26, %v2189_v45  ;;  %v2204_v28 = vsel %vm831_vm0, %v2195_v12, 0.0  ;;  %v2174_v29 = vsel %vm831_vm0, %v2161_v49, 0.0  ;;  %v2192_v1 = vmul.f32 %v4195_v56, %v4195_v56  ;;  %2488 = vmatpush.msrb.mxu1 %v2290_v54 }
 0x7c3   : > { %v2173_v55 = vadd.f32 %v2172_v60, %v2171_v52  ;;  %v2205_v18 = vadd.f32 %v2204_v28, %v2203_v25  ;;  %v2198_v19 = vmul.f32 %v4066_v42, %v2190_v48  ;;  %v2206_v20 = vsel %vm831_vm0, %v2196_v53, 0.0 }
 0x7c4   : > { %v2176_v3 = vsel %vm831_vm0, %v2162_v2, 0.0  ;;  %v2199_v34 = vmul.f32 %v4081_v13, %v2191_v0  ;;  %v2208_v22 = vsel %vm831_vm0, %v2197_v38, 0.0  ;;  %v2200_v37 = vmul.f32 %v4098_v15, %v2192_v1  ;;  %v2289_v2 = vld [vmem:[%s2288_s1] sm:$0xff] }
 0x7c5   : > { %v2175_v16 = vadd.f32 %v2174_v29, %v2173_v55  ;;  %v2207_v30 = vadd.f32 %v2206_v20, %v2205_v18  ;;  %v2210_v39 = vsel %vm831_vm0, %v2198_v19, 0.0  ;;  %2489 = vmatpush.msrb.mxu1 %v2289_v2  ;;  %v1895_v1 = vld [vmem:[%s3913_s8 + $0x1] sm:$0x1] }
 0x7c6   : > { %v2212_v11 = vsel %vm831_vm0, %v2199_v34, 0.0  ;;  %v2214_v44 = vsel %vm831_vm0, %v2200_v37, 0.0 }
 0x7c7   : > { %v2177_v24 = vadd.f32 %v2176_v3, %v2175_v16  ;;  %v2209_v35 = vadd.f32 %v2208_v22, %v2207_v30  ;;  %v3233_v30 = vld [vmem:[%s3913_s8 + $0x2] ss:$0 sm:$0xff] }
 0x7c9   : > { %v2178_v36 = vrot.slane %v2177_v24, 4  ;;  %v2211_v6 = vadd.f32 %v2210_v39, %v2209_v35 }
 0x7cb   : > { %v2179_v41 = vadd.f32 %v2178_v36, %v2177_v24  ;;  %v2213_v43 = vadd.f32 %v2212_v11, %v2211_v6 }
 0x7cd   : > { %v2180_v10 = vrot.slane %v2179_v41, 2  ;;  %v2215_v40 = vadd.f32 %v2214_v44, %v2213_v43 }
 0x7cf   : > { %v2181_v45 = vadd.f32 %v2180_v10, %v2179_v41  ;;  %v2216_v12 = vrot.slane %v2215_v40, 4 }
 0x7d1   : > { %v2217_v49 = vadd.f32 %v2216_v12, %v2215_v40  ;;  %v2182_v50 = vrot.slane %v2181_v45, 1 }
 0x7d3   : > { %v2218_v51 = vrot.slane %v2217_v49, 2  ;;  %v2183_v48 = vadd.f32 %v2182_v50, %v2181_v45 }
 0x7d5   : > { %v2219_v52 = vadd.f32 %v2218_v51, %v2217_v49 }
 0x7d7   : > { %v2220_v53 = vrot.slane %v2219_v52, 1 }
 0x7d9   : > { %v2221_v60 = vadd.f32 %v2220_v53, %v2219_v52 }
 0x7db   : > { %v2222_v25 = vadd.f32 %v2221_v60, %v2183_v48 }
 0x7dd   : > { %v2223_v55 = vmul.f32 0.03125, %v2222_v25 }
 0x7df   : > { %v2224_v0 = vadd.f32 1e-05, %v2223_v55 }
 0x7e1   : > { %3251 = vrsqrt.f32 %v2224_v0  ;;  %vm2231_vm3 = vweird.f32 %v2224_v0 }
 0x7e7   : > { %v3252_v38 = vpop.eup %3251 }
 0x7e8   : > { %v2226_v28 = vmul.f32 %v3252_v38, %v2224_v0  ;;  %vm2232_vm2 = vweird.f32 %v3252_v38 }
 0x7e9   : > { %vm2233_vm4 = vmor %vm2231_vm3, %vm2232_vm2 }
 0x7ea   : > { %v2227_v29 = vmul.f32 %v3252_v38, %v2226_v28 }
 0x7ec   : > { %v2228_v18 = vmul.f32 0.5, %v2227_v29 }
 0x7ee   : > { %v2229_v16 = vsub.f32 1.5, %v2228_v18 }
 0x7f0   : > { %v2230_v19 = vmul.f32 %v3252_v38, %v2229_v16 }
 0x7f2   : > { %v2234_v20 = vsel %vm2233_vm4, %v3252_v38, %v2230_v19 }
 0x7f3   : > { %v2235_v3 = vmul.f32 %v2234_v20, %v1895_v1 }
 0x7f5   : > { %v2236_v24 = vperm.slane %v2235_v3, 0 }
 0x7f7   : > { %v2271_v34 = vmul.f32 %v2236_v24, %v4195_v56  ;;  %v2237_v22 = vmul.f32 %v2236_v24, %v4112_v14  ;;  %v2238_v36 = vmul.f32 %v2236_v24, %v4115_v57  ;;  %v2264_v6 = vmul.f32 %v2236_v24, %v4141_v31 }
 0x7f8   : > { %v2265_v41 = vmul.f32 %v2236_v24, %v4144_v9  ;;  %v2266_v11 = vmul.f32 %v2236_v24, %v4149_v5  ;;  %v2267_v43 = vmul.f32 %v2236_v24, %v4157_v63  ;;  %v2268_v10 = vmul.f32 %v2236_v24, %v4165_v27 }
 0x7f9   : > { %v2248_v35 = vadd.f32 %v3233_v30, %v2237_v22  ;;  %v2249_v39 = vadd.f32 %v3233_v30, %v2238_v36  ;;  %v2269_v56 = vmul.f32 %v2236_v24, %v4178_v32  ;;  %v2270_v14 = vmul.f32 %v2236_v24, %v4189_v58  ;;  %v4281_v36 = vld [vmem:[%s4727_s22 + $0x58] sm:$0xff] }
 0x7fa   : > { %v2272_v44 = vadd.f32 %v3233_v30, %v2264_v6  ;;  %v2273_v57 = vadd.f32 %v3233_v30, %v2265_v41  ;;  %v2274_v40 = vadd.f32 %v3233_v30, %v2266_v11  ;;  %v2279_v45 = vadd.f32 %v3233_v30, %v2271_v34  ;;  %v4270_v34 = vld [vmem:[%s4727_s22 + $0x68] sm:$0xff]  ;;  %v4300_v11 = vld [vmem:[%s4727_s22 + $0x40] sm:$0xff] }
 0x7fb   : > { %v2256_v37 = vmax.f32 %v2248_v35, 0.0  ;;  %v2275_v12 = vadd.f32 %v3233_v30, %v2267_v43  ;;  %v2276_v49 = vadd.f32 %v3233_v30, %v2268_v10  ;;  %v2277_v50 = vadd.f32 %v3233_v30, %v2269_v56  ;;  %2612 = vmatpush.msrb.mxu2 %v4270_v34  ;;  %v4276_v35 = vld [vmem:[%s4727_s22 + $0x60] sm:$0xff]  ;;  %v4293_v6 = vld [vmem:[%s4727_s22 + $0x48] sm:$0xff]  ;;  %v4306_v10 = vld [vmem:[%s4727_s22 + $0x38] sm:$0xff] }
 0x7fc   : > { %v2278_v31 = vadd.f32 %v3233_v30, %v2270_v14  ;;  %v2257_v51 = vmax.f32 %v2249_v39, 0.0  ;;  %v2239_v9 = vmul.f32 %v2236_v24, %v4118_v47  ;;  %v2240_v27 = vmul.f32 %v2236_v24, %v4121_v59  ;;  %v4288_v39 = vld [vmem:[%s4727_s22 + $0x50] sm:$0xff] }
 0x7fd   : > { %3126 = vmatmul.msk.f32.vlgmr.msrb.gmra.mxu1 %vm831_vm0, %v2256_v37  ;;  %v2241_v52 = vmul.f32 %v2236_v24, %v4124_v61  ;;  %v2242_v54 = vmul.f32 %v2236_v24, %v4127_v62  ;;  %v2243_v60 = vmul.f32 %v2236_v24, %v4138_v21  ;;  %v2244_v55 = vmul.f32 %v2236_v24, %v4154_v46  ;;  %v4311_v56 = vld [vmem:[%s4727_s22 + $0x30] sm:$0xff] }
 0x7fe   : > { %v2250_v5 = vadd.f32 %v3233_v30, %v2239_v9  ;;  %v2251_v32 = vadd.f32 %v3233_v30, %v2240_v27  ;;  %v2280_v38 = vmax.f32 %v2272_v44, 0.0  ;;  %v2281_v62 = vmax.f32 %v2273_v57, 0.0  ;;  %2613 = vmatpush.msrb.mxu2 %v4276_v35  ;;  %v4316_v44 = vld [vmem:[%s4233_s5] ss:$0 sm:$0xff]  ;;  %v4321_v57 = vld [vmem:[%s4727_s22 + $0x28] sm:$0xff] }
 0x7ff   : > { %v2252_v48 = vadd.f32 %v3233_v30, %v2241_v52  ;;  %v2253_v47 = vadd.f32 %v3233_v30, %v2242_v54  ;;  %v2254_v59 = vadd.f32 %v3233_v30, %v2243_v60  ;;  %v2255_v61 = vadd.f32 %v3233_v30, %v2244_v55 }
 0x800   : > { %v2258_v63 = vmax.f32 %v2250_v5, 0.0  ;;  %v2259_v58 = vmax.f32 %v2251_v32, 0.0  ;;  %v2282_v28 = vmax.f32 %v2274_v40, 0.0  ;;  %v2283_v21 = vmax.f32 %v2275_v12, 0.0  ;;  %2614 = vmatpush.msrb.mxu2 %v4281_v36  ;;  %v4326_v40 = vld [vmem:[%s4727_s22 + $0x20] sm:$0xff] }
 0x801   : > { %v2260_v53 = vmax.f32 %v2252_v48, 0.0  ;;  %v2261_v2 = vmax.f32 %v2253_v47, 0.0  ;;  %v2262_v25 = vmax.f32 %v2254_v59, 0.0  ;;  %v2263_v0 = vmax.f32 %v2255_v61, 0.0 }
 0x802   : > { %v2284_v29 = vmax.f32 %v2276_v49, 0.0  ;;  %v2285_v46 = vmax.f32 %v2277_v50, 0.0  ;;  %v2286_v18 = vmax.f32 %v2278_v31, 0.0  ;;  %v2287_v16 = vmax.f32 %v2279_v45, 0.0  ;;  %2615 = vmatpush.msrb.mxu2 %v4288_v39 }
 0x803   : > { %v2295_v31 = vadd.s32 64, %v3471_v4  ;;  %v2297_v54 = vadd.s32 80, %v3471_v4  ;;  %v2298_v61 = vadd.s32 88, %v3471_v4 }
 0x804   : > { %2616 = vmatpush.msrb.mxu2 %v4293_v6 }
 0x805   : > { %3127 = vmatmul.msk.f32.gmra.mxu1 %vm831_vm0, %v2257_v51  ;;  %v2307_v32 = vand.u32 7, %v2295_v31 }
 0x806   : > { %2617 = vmatpush.msrb.mxu2 %v4300_v11 }
 0x807   : > { %vm2399_vm5 = vcmp.lt.s32.totalorder %v2307_v32, 2 }
 0x808   : > { %2618 = vmatpush.msrb.mxu2 %v4306_v10 }
 0x80a   : > { %2619 = vmatpush.msrb.mxu2 %v4311_v56 }
 0x80c   : > { %2620 = vmatpush.msrb.mxu2 %v4321_v57 }
 0x80d   : > { %3128 = vmatmul.msk.f32.gmra.mxu1 %vm831_vm0, %v2258_v63 }
 0x80e   : > { %2621 = vmatpush.msrb.mxu2 %v4326_v40 }
 0x815   : > { %3129 = vmatmul.msk.f32.gmra.mxu1 %vm831_vm0, %v2259_v58  ;;  %v2296_v58 = vadd.s32 72, %v3471_v4 }
 0x817   : > { %v2314_v55 = vand.u32 7, %v2296_v58 }
 0x819   : > { %vm2400_vm6 = vcmp.lt.s32.totalorder %v2314_v55, 2 }
 0x81d   : > { %3130 = vmatmul.msk.f32.gmra.mxu1 %vm831_vm0, %v2260_v53 }
 0x825   : > { %3131 = vmatmul.msk.f32.gmra.mxu1 %vm831_vm0, %v2261_v2 }
 0x82d   : > { %3132 = vmatmul.msk.f32.gmra.mxu1 %vm831_vm0, %v2262_v25 }
 0x835   : > { %3133 = vmatmul.msk.f32.gmra.mxu1 %vm831_vm0, %v2263_v0 }
 0x83d   : > { %3134 = vmatmul.msk.f32.gmra.mxu1 %vm831_vm0, %v2280_v38 }
 0x845   : > { %3135 = vmatmul.msk.f32.gmra.mxu1 %vm831_vm0, %v2281_v62 }
 0x84d   : > { %3136 = vmatmul.msk.f32.gmra.mxu1 %vm831_vm0, %v2282_v28 }
 0x855   : > { %3137 = vmatmul.msk.f32.gmra.mxu1 %vm831_vm0, %v2283_v21  ;;  %v2321_v21 = vand.u32 7, %v2297_v54 }
 0x857   : > { %vm2401_vm7 = vcmp.lt.s32.totalorder %v2321_v21, 2  ;;  %v2540_v21 = vld [vmem:[%s4727_s22 + $0x8] sm:$0xff] }
 0x85d   : > { %3138 = vmatmul.msk.f32.gmra.mxu1 %vm831_vm0, %v2284_v29  ;;  %v2299_v29 = vadd.s32 96, %v3471_v4 }
 0x85f   : > { %v2335_v31 = vand.u32 7, %v2299_v29 }
 0x861   : > { %vm2403_vm9 = vcmp.lt.s32.totalorder %v2335_v31, 2 }
 0x865   : > { %3139 = vmatmul.msk.f32.gmra.mxu1 %vm831_vm0, %v2285_v46 }
 0x86d   : > { %3140 = vmatmul.msk.f32.gmra.mxu1 %vm831_vm0, %v2286_v18 }
 0x875   : > { %3141 = vmatmul.msk.f32.gmra.mxu1 %vm831_vm0, %v2287_v16  ;;  %vm2569_vm0 = vcmask 916480   ;;  %v4377_v16 = vsel %vm2399_vm5, 1.0, %v3295_v7 }
 0x87a   : > { %v2491_v1 = vpop.f32.mrf.mxu1 }
 0x87b   : > { %v4333_v12 = vadd.f32 %v4316_v44, %v2491_v1 }
 0x87d   : > { %v2553_v5 = vmul.f32 %v3478_v8, %v4333_v12 }
 0x87f   : > { %v2570_v47 = vsel %vm2569_vm0, %v2553_v5, 0.0 }
 0x882   : > { %v2494_v19 = vpop.f32.mrf.mxu1 }
 0x883   : > { %v4329_v45 = vadd.f32 %v4316_v44, %v2494_v19 }
 0x885   : > { %v2554_v51 = vmul.f32 %v3885_v17, %v4329_v45 }
 0x887   : > { %v2571_v48 = vsel %vm2569_vm0, %v2554_v51, 0.0 }
 0x888   : > { %v2572_v0 = vadd.f32 %v2571_v48, %v2570_v47  ;;  %v4403_v47 = vsel %vm2401_vm7, 1.0, %v3295_v7 }
 0x88a   : > { %v2497_v20 = vpop.f32.mrf.mxu1 }
 0x88b   : > { %v4336_v49 = vadd.f32 %v4316_v44, %v2497_v20  ;;  %v2328_v20 = vand.u32 7, %v2298_v61 }
 0x88d   : > { %v2555_v63 = vmul.f32 %v3888_v23, %v4336_v49  ;;  %vm2402_vm8 = vcmp.lt.s32.totalorder %v2328_v20, 2  ;;  %v2539_v20 = vld [vmem:[%s4727_s22] sm:$0xff] }
 0x88f   : > { %v2573_v2 = vsel %vm2569_vm0, %v2555_v63, 0.0  ;;  %v4395_v63 = vsel %vm2400_vm6, 1.0, %v3295_v7 }
 0x890   : > { %v2574_v46 = vadd.f32 %v2573_v2, %v2572_v0  ;;  %v4408_v2 = vld [vmem:[%s4727_s22 + $0x18] sm:$0xff] }
 0x891   : > { %2622 = vmatpush.msrb.mxu2 %v4408_v2 }
 0x892   : > { %v2500_v3 = vpop.f32.mrf.mxu1 }
 0x893   : > { %v4343_v9 = vadd.f32 %v4316_v44, %v2500_v3  ;;  %v2300_v3 = vadd.s32 104, %v3471_v4 }
 0x895   : > { %v2556_v53 = vmul.f32 %v3895_v33, %v4343_v9 }
 0x897   : > { %v2575_v28 = vsel %vm2569_vm0, %v2556_v53, 0.0 }
 0x89a   : > { %v2503_v30 = vpop.f32.mrf.mxu1 }
 0x89b   : > { %v4350_v27 = vadd.f32 %v4316_v44, %v2503_v30  ;;  %v2576_v30 = vadd.f32 %v2575_v28, %v2574_v46  ;;  %v4423_v28 = vsel %vm2402_vm8, 1.0, %v3295_v7  ;;  %v2302_v46 = vadd.s32 120, %v3471_v4 }
 0x89d   : > { %v2557_v60 = vmul.f32 %v4036_v26, %v4350_v27 }
 0x89f   : > { %v2577_v18 = vsel %vm2569_vm0, %v2557_v60, 0.0  ;;  %v4413_v60 = vld [vmem:[%s4727_s22 + $0x10] sm:$0xff] }
 0x8a0   : > { %v2578_v51 = vadd.f32 %v2577_v18, %v2576_v30  ;;  %2623 = vmatpush.msrb.mxu2 %v4413_v60 }
 0x8a2   : > { %v2506_v24 = vpop.f32.mrf.mxu1  ;;  %2624 = vmatpush.msrb.mxu2 %v2540_v21 }
 0x8a3   : > { %v4354_v52 = vadd.f32 %v4316_v44, %v2506_v24 }
 0x8a4   : > { %2625 = vmatpush.msrb.mxu2 %v2539_v20 }
 0x8a5   : > { %v2558_v38 = vmul.f32 %v4066_v42, %v4354_v52 }
 0x8a6   : > { %2722 = vmatpush.msra.mxu2 %v4270_v34 }
 0x8a7   : > { %v2579_v24 = vsel %vm2569_vm0, %v2558_v38, 0.0 }
 0x8a8   : > { %v2580_v53 = vadd.f32 %v2579_v24, %v2578_v51  ;;  %2723 = vmatpush.msra.mxu2 %v4276_v35 }
 0x8aa   : > { %v2509_v22 = vpop.f32.mrf.mxu1  ;;  %2724 = vmatpush.msra.mxu2 %v4281_v36 }
 0x8ab   : > { %v4365_v25 = vadd.f32 %v4316_v44, %v2509_v22 }
 0x8ac   : > { %2725 = vmatpush.msra.mxu2 %v4288_v39 }
 0x8ad   : > { %v2559_v19 = vmul.f32 %v4081_v13, %v4365_v25 }
 0x8ae   : > { %2726 = vmatpush.msra.mxu2 %v4293_v6 }
 0x8af   : > { %v2581_v58 = vsel %vm2569_vm0, %v2559_v19, 0.0  ;;  %v4436_v19 = vsel %vm2403_vm9, 1.0, %v3295_v7 }
 0x8b0   : > { %v2582_v0 = vadd.f32 %v2581_v58, %v2580_v53  ;;  %2727 = vmatpush.msra.mxu2 %v4300_v11 }
 0x8b2   : > { %v2512_v37 = vpop.f32.mrf.mxu1  ;;  %2728 = vmatpush.msra.mxu2 %v4306_v10 }
 0x8b3   : > { %v4371_v62 = vadd.f32 %v4316_v44, %v2512_v37 }
 0x8b4   : > { %2729 = vmatpush.msra.mxu2 %v4311_v56 }
 0x8b5   : > { %v2560_v22 = vmul.f32 %v4098_v15, %v4371_v62 }
 0x8b6   : > { %2730 = vmatpush.msra.mxu2 %v4321_v57 }
 0x8b7   : > { %v2583_v54 = vsel %vm2569_vm0, %v2560_v22, 0.0 }
 0x8b8   : > { %v2584_v18 = vadd.f32 %v2583_v54, %v2582_v0  ;;  %2731 = vmatpush.msra.mxu2 %v4326_v40 }
 0x8ba   : > { %v2515_v41 = vpop.f32.mrf.mxu1  ;;  %2732 = vmatpush.msra.mxu2 %v4408_v2 }
 0x8bb   : > { %v4380_v1 = vadd.f32 %v4316_v44, %v2515_v41  ;;  %v2301_v41 = vadd.s32 112, %v3471_v4 }
 0x8bc   : > { %2733 = vmatpush.msra.mxu2 %v4413_v60 }
 0x8bd   : > { %v2561_v5 = vmul.f32 %v4377_v16, %v4380_v1  ;;  %v2349_v61 = vand.u32 7, %v2301_v41 }
 0x8be   : > { %2734 = vmatpush.msra.mxu2 %v2540_v21 }
 0x8bf   : > { %v2585_v38 = vsel %vm2569_vm0, %v2561_v5, 0.0  ;;  %vm2405_vm11 = vcmp.lt.s32.totalorder %v2349_v61, 2  ;;  %v2356_v5 = vand.u32 7, %v2302_v46 }
 0x8c0   : > { %v2586_v4 = vadd.f32 %v2585_v38, %v2584_v18  ;;  %2735 = vmatpush.msra.mxu2 %v2539_v20 }
 0x8c1   : > { %vm2406_vm12 = vcmp.lt.s32.totalorder %v2356_v5, 2 }
 0x8c2   : > { %v2518_v43 = vpop.f32.mrf.mxu1 }
 0x8c3   : > { %v4389_v37 = vadd.f32 %v4316_v44, %v2518_v43  ;;  %v2342_v43 = vand.u32 7, %v2300_v3 }
 0x8c5   : > { %vm2404_vm10 = vcmp.lt.s32.totalorder %v2342_v43, 2 }
 0x8c6   : > { %v4448_v24 = vsel %vm2404_vm10, 1.0, %v3295_v7 }
 0x8ca   : > { %v2521_v14 = vpop.f32.mrf.mxu1 }
 0x8cb   : > { %v4399_v48 = vadd.f32 %v4316_v44, %v2521_v14  ;;  %v2562_v14 = vmul.f32 %v4395_v63, %v4389_v37 }
 0x8cd   : > { %v2563_v29 = vmul.f32 %v4403_v47, %v4399_v48  ;;  %v2587_v3 = vsel %vm2569_vm0, %v2562_v14, 0.0 }
 0x8ce   : > { %v2588_v58 = vadd.f32 %v2587_v3, %v2586_v4 }
 0x8cf   : > { %v2589_v31 = vsel %vm2569_vm0, %v2563_v29, 0.0  ;;  %v4470_v29 = vsel %vm2406_vm12, 1.0, %v3295_v7 }
 0x8d0   : > { %v2590_v54 = vadd.f32 %v2589_v31, %v2588_v58 }
 0x8d2   : > { %v2524_v50 = vpop.f32.mrf.mxu1 }
 0x8d3   : > { %v4418_v55 = vadd.f32 %v4316_v44, %v2524_v50 }
 0x8d5   : > { %v2564_v30 = vmul.f32 %v4423_v28, %v4418_v55 }
 0x8d7   : > { %v2591_v43 = vsel %vm2569_vm0, %v2564_v30, 0.0 }
 0x8d8   : > { %v2592_v0 = vadd.f32 %v2591_v43, %v2590_v54 }
 0x8da   : > { %v2527_v59 = vpop.f32.mrf.mxu1 }
 0x8db   : > { %v4431_v50 = vadd.f32 %v4316_v44, %v2527_v59 }
 0x8dd   : > { %v2565_v41 = vmul.f32 %v4436_v19, %v4431_v50 }
 0x8df   : > { %v2593_v14 = vsel %vm2569_vm0, %v2565_v41, 0.0 }
 0x8e0   : > { %v2594_v34 = vadd.f32 %v2593_v14, %v2592_v0 }
 0x8e2   : > { %v2530_v32 = vpop.f32.mrf.mxu1 }
 0x8e3   : > { %v4445_v59 = vadd.f32 %v4316_v44, %v2530_v32  ;;  %v4457_v32 = vsel %vm2405_vm11, 1.0, %v3295_v7 }
 0x8e5   : > { %v2566_v53 = vmul.f32 %v4448_v24, %v4445_v59 }
 0x8e7   : > { %v2595_v38 = vsel %vm2569_vm0, %v2566_v53, 0.0 }
 0x8e8   : > { %v2596_v3 = vadd.f32 %v2595_v38, %v2594_v34 }
 0x8ea   : > { %v2533_v22 = vpop.f32.mrf.mxu1 }
 0x8eb   : > { %v4454_v51 = vadd.f32 %v4316_v44, %v2533_v22 }
 0x8ed   : > { %v2567_v61 = vmul.f32 %v4457_v32, %v4454_v51 }
 0x8ef   : > { %v2597_v35 = vsel %vm2569_vm0, %v2567_v61, 0.0 }
 0x8f0   : > { %v2598_v30 = vadd.f32 %v2597_v35, %v2596_v3 }
 0x8f2   : > { %v2536_v46 = vpop.f32.mrf.mxu1 }
 0x8f3   : > { %v4475_v18 = vadd.f32 %v4316_v44, %v2536_v46 }
 0x8f5   : > { %v2568_v36 = vmul.f32 %v4470_v29, %v4475_v18 }
 0x8f7   : > { %v2599_v7 = vsel %vm2569_vm0, %v2568_v36, 0.0 }
 0x8f8   : > { %v2600_v4 = vadd.f32 %v2599_v7, %v2598_v30 }
 0x8fa   : > { %v2601_v39 = vrot.slane %v2600_v4, 4 }
 0x8fc   : > { %v2602_v22 = vadd.f32 %v2601_v39, %v2600_v4 }
 0x8fe   : > { %v2603_v44 = vrot.slane %v2602_v22, 2 }
 0x900   : > { %v2604_v6 = vadd.f32 %v2603_v44, %v2602_v22 }
 0x902   : > { %v2605_v31 = vrot.slane %v2604_v6, 1 }
 0x904   : > { %v2606_v11 = vadd.f32 %v2605_v31, %v2604_v6 }
 0x906   : > { %3142 = vmatmul.msk.f32.vlgmr.msrb.gmra.mxu2 %vm2569_vm0, %v2606_v11 }
 0x989   : > { %v2627_v10 = vpop.f32.mrf.mxu2 }
 0x98a   : > { %v2630_v41 = vmul.f32 0.004464286, %v2627_v10 }
 0x98c   : > { %v2631_v56 = vperm.slane %v2630_v41, 0 }
 0x98e   : > { %v4490_v5 = vsub.f32 %v4333_v12, %v2631_v56  ;;  %v4493_v57 = vsub.f32 %v4329_v45, %v2631_v56  ;;  %v4496_v40 = vsub.f32 %v4336_v49, %v2631_v56  ;;  %v4499_v2 = vsub.f32 %v4343_v9, %v2631_v56 }
 0x98f   : > { %v4506_v20 = vsub.f32 %v4350_v27, %v2631_v56  ;;  %v4511_v45 = vsub.f32 %v4354_v52, %v2631_v56  ;;  %v4518_v43 = vsub.f32 %v4365_v25, %v2631_v56  ;;  %v4524_v54 = vsub.f32 %v4371_v62, %v2631_v56 }
 0x990   : > { %v2648_v60 = vmul.f32 %v4490_v5, %v4490_v5  ;;  %v2649_v21 = vmul.f32 %v4493_v57, %v4493_v57  ;;  %v2650_v12 = vmul.f32 %v4496_v40, %v4496_v40  ;;  %v2651_v49 = vmul.f32 %v4499_v2, %v4499_v2 }
 0x991   : > { %v2652_v27 = vmul.f32 %v4506_v20, %v4506_v20  ;;  %v2653_v52 = vmul.f32 %v4511_v45, %v4511_v45  ;;  %v4532_v25 = vsub.f32 %v4380_v1, %v2631_v56  ;;  %v2654_v0 = vmul.f32 %v4518_v43, %v4518_v43 }
 0x992   : > { %v2664_v9 = vmul.f32 %v3478_v8, %v2648_v60  ;;  %v2665_v58 = vmul.f32 %v3885_v17, %v2649_v21  ;;  %v2666_v53 = vmul.f32 %v3888_v23, %v2650_v12  ;;  %v2667_v14 = vmul.f32 %v3895_v33, %v2651_v49 }
 0x993   : > { %v2668_v23 = vmul.f32 %v4036_v26, %v2652_v27  ;;  %v4539_v34 = vsub.f32 %v4389_v37, %v2631_v56  ;;  %v2655_v33 = vmul.f32 %v4524_v54, %v4524_v54  ;;  %v2669_v46 = vmul.f32 %v4066_v42, %v2653_v52 }
 0x994   : > { %v2680_v8 = vsel %vm2569_vm0, %v2664_v9, 0.0  ;;  %v2681_v17 = vsel %vm2569_vm0, %v2665_v58, 0.0  ;;  %v2683_v62 = vsel %vm2569_vm0, %v2666_v53, 0.0  ;;  %v2685_v35 = vsel %vm2569_vm0, %v2667_v14, 0.0 }
 0x995   : > { %v2682_v61 = vadd.f32 %v2681_v17, %v2680_v8  ;;  %v4546_v3 = vsub.f32 %v4399_v48, %v2631_v56  ;;  %v2656_v26 = vmul.f32 %v4532_v25, %v4532_v25  ;;  %v2670_v36 = vmul.f32 %v4081_v13, %v2654_v0 }
 0x996   : > { %v2687_v30 = vsel %vm2569_vm0, %v2668_v23, 0.0  ;;  %v4553_v7 = vsub.f32 %v4418_v55, %v2631_v56  ;;  %v2657_v42 = vmul.f32 %v4539_v34, %v4539_v34  ;;  %v2671_v4 = vmul.f32 %v4098_v15, %v2655_v33 }
 0x997   : > { %v2684_v38 = vadd.f32 %v2683_v62, %v2682_v61  ;;  %v2689_v39 = vsel %vm2569_vm0, %v2669_v46, 0.0  ;;  %v4560_v22 = vsub.f32 %v4431_v50, %v2631_v56  ;;  %v2658_v13 = vmul.f32 %v4546_v3, %v4546_v3 }
 0x998   : > { %v2672_v44 = vmul.f32 %v4377_v16, %v2656_v26  ;;  %v2691_v6 = vsel %vm2569_vm0, %v2670_v36, 0.0  ;;  %v4567_v31 = vsub.f32 %v4445_v59, %v2631_v56  ;;  %v2659_v15 = vmul.f32 %v4553_v7, %v4553_v7  ;;  %v2819_v36 = vld [vmem:[%s4606_s27 + $0x60] sm:$0xff] }
 0x999   : > { %v2686_v1 = vadd.f32 %v2685_v35, %v2684_v38  ;;  %v2673_v11 = vmul.f32 %v4395_v63, %v2657_v42  ;;  %v2693_v10 = vsel %vm2569_vm0, %v2671_v4, 0.0  ;;  %v4574_v41 = vsub.f32 %v4454_v51, %v2631_v56  ;;  %v2816_v42 = vld [vmem:[%s4606_s27 + $0x48] sm:$0xff]  ;;  %v2815_v4 = vld [vmem:[%s4606_s27 + $0x40] sm:$0xff] }
 0x99a   : > { %v2660_v16 = vmul.f32 %v4560_v22, %v4560_v22  ;;  %v2674_v60 = vmul.f32 %v4403_v47, %v2658_v13  ;;  %v2695_v21 = vsel %vm2569_vm0, %v2672_v44, 0.0  ;;  %v4581_v12 = vsub.f32 %v4475_v18, %v2631_v56  ;;  %v2812_v13 = vld [vmem:[%s4606_s27 + $0x28] sm:$0xff]  ;;  %v2811_v44 = vld [vmem:[%s4606_s27 + $0x20] sm:$0xff] }
 0x99b   : > { %v2688_v37 = vadd.f32 %v2687_v30, %v2686_v1  ;;  %v2661_v63 = vmul.f32 %v4567_v31, %v4567_v31  ;;  %v2675_v49 = vmul.f32 %v4423_v28, %v2659_v15  ;;  %v2697_v9 = vsel %vm2569_vm0, %v2673_v11, 0.0  ;;  %v2818_v30 = vld [vmem:[%s4606_s27 + $0x58] sm:$0xff]  ;;  %v2808_v15 = vld [vmem:[%s4606_s27 + $0x8] sm:$0xff] }
 0x99c   : > { %v2662_v58 = vmul.f32 %v4574_v41, %v4574_v41  ;;  %v2676_v27 = vmul.f32 %v4436_v19, %v2660_v16  ;;  %v2699_v47 = vsel %vm2569_vm0, %v2674_v60, 0.0  ;;  %v2663_v18 = vmul.f32 %v4581_v12, %v4581_v12 }
 0x99d   : > { %v2690_v48 = vadd.f32 %v2689_v39, %v2688_v37  ;;  %v2677_v56 = vmul.f32 %v4448_v24, %v2661_v63  ;;  %v2701_v52 = vsel %vm2569_vm0, %v2675_v49, 0.0  ;;  %v2817_v37 = vld [vmem:[%s4606_s27 + $0x50] sm:$0xff]  ;;  %v2814_v39 = vld [vmem:[%s4606_s27 + $0x38] sm:$0xff] }
 0x99e   : > { %v2678_v28 = vmul.f32 %v4457_v32, %v2662_v58  ;;  %v2703_v8 = vsel %vm2569_vm0, %v2676_v27, 0.0  ;;  %v2679_v61 = vmul.f32 %v4470_v29, %v2663_v18  ;;  %v2820_v29 = vld [vmem:[%s4606_s27 + $0x68] sm:$0xff] }
 0x99f   : > { %v2692_v55 = vadd.f32 %v2691_v6, %v2690_v48  ;;  %v2705_v19 = vsel %vm2569_vm0, %v2677_v56, 0.0  ;;  %2876 = vmatpush.msra.mxu0 %v2820_v29  ;;  %3162 = vmatpush.msra.mxu3 %v2820_v29  ;;  %v2813_v48 = vld [vmem:[%s4606_s27 + $0x30] sm:$0xff]  ;;  %v2810_v6 = vld [vmem:[%s4606_s27 + $0x18] sm:$0xff] }
 0x9a0   : > { %v2707_v23 = vsel %vm2569_vm0, %v2678_v28, 0.0  ;;  %v2709_v38 = vsel %vm2569_vm0, %v2679_v61, 0.0 }
 0x9a1   : > { %v2694_v50 = vadd.f32 %v2693_v10, %v2692_v55  ;;  %2877 = vmatpush.msra.mxu0 %v2819_v36  ;;  %3163 = vmatpush.msra.mxu3 %v2819_v36  ;;  %v2809_v55 = vld [vmem:[%s4606_s27 + $0x10] sm:$0xff] }
 0x9a3   : > { %v2696_v59 = vadd.f32 %v2695_v21, %v2694_v50  ;;  %2878 = vmatpush.msra.mxu0 %v2818_v30  ;;  %3164 = vmatpush.msra.mxu3 %v2818_v30  ;;  %v2807_v50 = vld [vmem:[%s4606_s27] sm:$0xff]  ;;  %s4777_s27 = sld [smem:[#allocation17_spill]] }
 0x9a5   : > { %v2698_v51 = vadd.f32 %v2697_v9, %v2696_v59  ;;  %2879 = vmatpush.msra.mxu0 %v2817_v37  ;;  %3165 = vmatpush.msra.mxu3 %v2817_v37  ;;  %v2293_v9 = vld [vmem:[%s4233_s5 + $0x1] sm:$0x1] }
 0x9a7   : > { %v2700_v53 = vadd.f32 %v2699_v47, %v2698_v51  ;;  %2880 = vmatpush.msra.mxu0 %v2816_v42  ;;  %3166 = vmatpush.msra.mxu3 %v2816_v42  ;;  %v3235_v47 = vld [vmem:[%s4233_s5 + $0x2] ss:$0 sm:$0xff]  ;;  %s759_s5 = scalar_select %p758_p6, %s3281_s2, 3 }
 0x9a9   : > { %v2702_v14 = vadd.f32 %v2701_v52, %v2700_v53  ;;  %2881 = vmatpush.msra.mxu0 %v2815_v4  ;;  %3167 = vmatpush.msra.mxu3 %v2815_v4  ;;  %s3069_s4 = sshll.u32 %s759_s5, 5 }
 0x9aa   : > { %s764_s8 = sadd.s32 %s3069_s4, %s3068_s9 }
 0x9ab   : > { %v2704_v17 = vadd.f32 %v2703_v8, %v2702_v14  ;;  %2882 = vmatpush.msra.mxu0 %v2814_v39  ;;  %3168 = vmatpush.msra.mxu3 %v2814_v39  ;;  %s3070_s28 = sshll.u32 %s764_s8, 3 }
 0x9ac   : > { %s4672_s30 = scalar_lea.vmem %s4777_s27, %s3070_s28 }
 0x9ad   : > { %v2706_v0 = vadd.f32 %v2705_v19, %v2704_v17  ;;  %2883 = vmatpush.msra.mxu0 %v2813_v48  ;;  %3169 = vmatpush.msra.mxu3 %v2813_v48 }
 0x9af   : > { %v2708_v62 = vadd.f32 %v2707_v23, %v2706_v0  ;;  %2884 = vmatpush.msra.mxu0 %v2812_v13  ;;  %3170 = vmatpush.msra.mxu3 %v2812_v13 }
 0x9b1   : > { %v2710_v24 = vadd.f32 %v2709_v38, %v2708_v62  ;;  %2885 = vmatpush.msra.mxu0 %v2811_v44  ;;  %3171 = vmatpush.msra.mxu3 %v2811_v44 }
 0x9b3   : > { %v2711_v33 = vrot.slane %v2710_v24, 4  ;;  %2886 = vmatpush.msra.mxu0 %v2810_v6  ;;  %3172 = vmatpush.msra.mxu3 %v2810_v6 }
 0x9b5   : > { %v2712_v46 = vadd.f32 %v2711_v33, %v2710_v24  ;;  %2887 = vmatpush.msra.mxu0 %v2809_v55  ;;  %3173 = vmatpush.msra.mxu3 %v2809_v55 }
 0x9b7   : > { %v2713_v35 = vrot.slane %v2712_v46, 2  ;;  %2888 = vmatpush.msra.mxu0 %v2808_v15  ;;  %3174 = vmatpush.msra.mxu3 %v2808_v15  ;;  %v3236_v15 = vld [vmem:[%s2821_s6] ss:$0 sm:$0xff] }
 0x9b9   : > { %v2714_v1 = vadd.f32 %v2713_v35, %v2712_v46  ;;  %2889 = vmatpush.msra.mxu0 %v2807_v50  ;;  %3175 = vmatpush.msra.mxu3 %v2807_v50 }
 0x9bb   : > { %v2715_v32 = vrot.slane %v2714_v1, 1 }
 0x9bd   : > { %v2716_v26 = vadd.f32 %v2715_v32, %v2714_v1 }
 0x9bf   : > { %3143 = vmatmul.msk.f32.vlgmr.msra.gmra.mxu2 %vm2569_vm0, %v2716_v26 }
 0xa42   : > { %v2737_v11 = vpop.f32.mrf.mxu2 }
 0xa43   : > { %v2740_v10 = vmul.f32 0.004464286, %v2737_v11 }
 0xa45   : > { %v2741_v16 = vadd.f32 1e-05, %v2740_v10 }
 0xa47   : > { %3253 = vrsqrt.f32 %v2741_v16  ;;  %vm2748_vm14 = vweird.f32 %v2741_v16 }
 0xa4d   : > { %v3254_v60 = vpop.eup %3253 }
 0xa4e   : > { %v2743_v21 = vmul.f32 %v3254_v60, %v2741_v16  ;;  %vm2749_vm13 = vweird.f32 %v3254_v60 }
 0xa4f   : > { %vm2750_vm15 = vmor %vm2748_vm14, %vm2749_vm13 }
 0xa50   : > { %v2744_v59 = vmul.f32 %v3254_v60, %v2743_v21 }
 0xa52   : > { %v2745_v63 = vmul.f32 0.5, %v2744_v59 }
 0xa54   : > { %v2746_v49 = vsub.f32 1.5, %v2745_v63 }
 0xa56   : > { %v2747_v51 = vmul.f32 %v3254_v60, %v2746_v49 }
 0xa58   : > { %v2751_v58 = vsel %vm2750_vm15, %v3254_v60, %v2747_v51 }
 0xa59   : > { %v2752_v27 = vmul.f32 %v2751_v58, %v2293_v9 }
 0xa5b   : > { %v2753_v53 = vperm.slane %v2752_v27, 0 }
 0xa5d   : > { %v2754_v18 = vmul.f32 %v2753_v53, %v4490_v5  ;;  %v2767_v56 = vmul.f32 %v2753_v53, %v4567_v31  ;;  %v2755_v17 = vmul.f32 %v2753_v53, %v4493_v57  ;;  %v2768_v61 = vmul.f32 %v2753_v53, %v4574_v41 }
 0xa5e   : > { %v2762_v19 = vmul.f32 %v2753_v53, %v4532_v25  ;;  %v2763_v0 = vmul.f32 %v2753_v53, %v4539_v34  ;;  %v2764_v5 = vmul.f32 %v2753_v53, %v4546_v3  ;;  %v2765_v31 = vmul.f32 %v2753_v53, %v4553_v7 }
 0xa5f   : > { %v2773_v52 = vadd.f32 %v3235_v47, %v2754_v18  ;;  %v2786_v14 = vadd.f32 %v3235_v47, %v2767_v56  ;;  %v2774_v23 = vadd.f32 %v3235_v47, %v2755_v17  ;;  %v2787_v62 = vadd.f32 %v3235_v47, %v2768_v61 }
 0xa60   : > { %v2766_v38 = vmul.f32 %v2753_v53, %v4560_v22  ;;  %v2781_v24 = vadd.f32 %v3235_v47, %v2762_v19  ;;  %v2782_v57 = vadd.f32 %v3235_v47, %v2763_v0  ;;  %v2783_v33 = vadd.f32 %v3235_v47, %v2764_v5 }
 0xa61   : > { %v2789_v28 = vmax.f32 %v2773_v52, 0.0  ;;  %v2802_v8 = vmax.f32 %v2786_v14, 0.0  ;;  %v2784_v41 = vadd.f32 %v3235_v47, %v2765_v31  ;;  %v2790_v35 = vmax.f32 %v2774_v23, 0.0 }
 0xa62   : > { %v2785_v46 = vadd.f32 %v3235_v47, %v2766_v38  ;;  %v2803_v1 = vmax.f32 %v2787_v62, 0.0  ;;  %v2756_v32 = vmul.f32 %v2753_v53, %v4496_v40  ;;  %v2769_v25 = vmul.f32 %v2753_v53, %v4581_v12 }
 0xa63   : > { %3144 = vmatmul.msk.f32.vlgmr.msra.gmra.mxu0 %vm2569_vm0, %v2789_v28  ;;  %3157 = vmatmul.msk.f32.vlgmr.msra.gmra.mxu3 %vm2569_vm0, %v2802_v8  ;;  %v2757_v22 = vmul.f32 %v2753_v53, %v4499_v2  ;;  %v2758_v40 = vmul.f32 %v2753_v53, %v4506_v20  ;;  %v2759_v37 = vmul.f32 %v2753_v53, %v4511_v45  ;;  %v2797_v44 = vmax.f32 %v2781_v24, 0.0 }
 0xa64   : > { %v2775_v34 = vadd.f32 %v3235_v47, %v2756_v32  ;;  %v2788_v3 = vadd.f32 %v3235_v47, %v2769_v25  ;;  %v2760_v2 = vmul.f32 %v2753_v53, %v4518_v43  ;;  %v2761_v13 = vmul.f32 %v2753_v53, %v4524_v54 }
 0xa65   : > { %v2776_v29 = vadd.f32 %v3235_v47, %v2757_v22  ;;  %v2777_v12 = vadd.f32 %v3235_v47, %v2758_v40  ;;  %v2778_v42 = vadd.f32 %v3235_v47, %v2759_v37  ;;  %v2798_v43 = vmax.f32 %v2782_v57, 0.0 }
 0xa66   : > { %v2791_v7 = vmax.f32 %v2775_v34, 0.0  ;;  %v2804_v26 = vmax.f32 %v2788_v3, 0.0  ;;  %v2779_v39 = vadd.f32 %v3235_v47, %v2760_v2  ;;  %v2780_v20 = vadd.f32 %v3235_v47, %v2761_v13 }
 0xa67   : > { %v2792_v36 = vmax.f32 %v2776_v29, 0.0  ;;  %v2793_v30 = vmax.f32 %v2777_v12, 0.0  ;;  %v2794_v4 = vmax.f32 %v2778_v42, 0.0  ;;  %v2799_v6 = vmax.f32 %v2783_v33, 0.0 }
 0xa68   : > { %v2795_v48 = vmax.f32 %v2779_v39, 0.0  ;;  %v2796_v45 = vmax.f32 %v2780_v20, 0.0  ;;  %v2800_v54 = vmax.f32 %v2784_v41, 0.0  ;;  %v2801_v55 = vmax.f32 %v2785_v46, 0.0 }
 0xa6b   : > { %3145 = vmatmul.msk.f32.gmra.mxu0 %vm2569_vm0, %v2790_v35  ;;  %3158 = vmatmul.msk.f32.gmra.mxu3 %vm2569_vm0, %v2803_v1 }
 0xa73   : > { %3146 = vmatmul.msk.f32.gmra.mxu0 %vm2569_vm0, %v2791_v7  ;;  %3159 = vmatmul.msk.f32.gmra.mxu3 %vm2569_vm0, %v2804_v26 }
 0xa7b   : > { %3147 = vmatmul.msk.f32.gmra.mxu0 %vm2569_vm0, %v2792_v36 }
 0xa83   : > { %3148 = vmatmul.msk.f32.gmra.mxu0 %vm2569_vm0, %v2793_v30 }
 0xa8b   : > { %3149 = vmatmul.msk.f32.gmra.mxu0 %vm2569_vm0, %v2794_v4 }
 0xa93   : > { %3150 = vmatmul.msk.f32.gmra.mxu0 %vm2569_vm0, %v2795_v48 }
 0xa9b   : > { %3151 = vmatmul.msk.f32.gmra.mxu0 %vm2569_vm0, %v2796_v45 }
 0xaa3   : > { %3152 = vmatmul.msk.f32.gmra.mxu0 %vm2569_vm0, %v2797_v44 }
 0xaab   : > { %3153 = vmatmul.msk.f32.gmra.mxu0 %vm2569_vm0, %v2798_v43 }
 0xab3   : > { %3154 = vmatmul.msk.f32.gmra.mxu0 %vm2569_vm0, %v2799_v6 }
 0xabb   : > { %3155 = vmatmul.msk.f32.gmra.mxu0 %vm2569_vm0, %v2800_v54 }
 0xac3   : > { %3156 = vmatmul.msk.f32.gmra.mxu0 %vm2569_vm0, %v2801_v55 }
 0xae0   : > { %v2891_v11 = vpop.f32.mrf.mxu0 }
 0xae1   : > { %v2892_v10 = vadd.f32 %v3236_v15, %v2891_v11 }
 0xae3   : > { %2939 = vst [vmem:[%s4672_s30] sm:$0xff] %v2892_v10 }
 0xae6   : > { %v2930_v50 = vpop.f32.mrf.mxu3 }
 0xae7   : > { %v2931_v16 = vadd.f32 %v3236_v15, %v2930_v50 }
 0xae8   : > { %v2894_v60 = vpop.f32.mrf.mxu0 }
 0xae9   : > { %2952 = vst [vmem:[%s4672_s30 + $0x68] sm:$0xff] %v2931_v16  ;;  %v2895_v21 = vadd.f32 %v3236_v15, %v2894_v60 }
 0xaeb   : > { %2940 = vst [vmem:[%s4672_s30 + $0x8] sm:$0xff] %v2895_v21 }
 0xaee   : > { %v2933_v59 = vpop.f32.mrf.mxu3 }
 0xaef   : > { %v2934_v63 = vadd.f32 %v3236_v15, %v2933_v59 }
 0xaf0   : > { %v2897_v49 = vpop.f32.mrf.mxu0 }
 0xaf1   : > { %2953 = vst [vmem:[%s4672_s30 + $0x70] sm:$0xff] %v2934_v63  ;;  %v2898_v9 = vadd.f32 %v3236_v15, %v2897_v49 }
 0xaf3   : > { %2941 = vst [vmem:[%s4672_s30 + $0x10] sm:$0xff] %v2898_v9 }
 0xaf6   : > { %v2936_v51 = vpop.f32.mrf.mxu3 }
 0xaf7   : > { %v2937_v58 = vadd.f32 %v3236_v15, %v2936_v51 }
 0xaf8   : > { %v2900_v27 = vpop.f32.mrf.mxu0 }
 0xaf9   : > { %2954 = vst [vmem:[%s4672_s30 + $0x78] sm:$0xff] %v2937_v58  ;;  %v2901_v47 = vadd.f32 %v3236_v15, %v2900_v27 }
 0xafb   : > { %2942 = vst [vmem:[%s4672_s30 + $0x18] sm:$0xff] %v2901_v47 }
 0xb00   : > { %v2903_v53 = vpop.f32.mrf.mxu0 }
 0xb01   : > { %v2904_v18 = vadd.f32 %v3236_v15, %v2903_v53 }
 0xb03   : > { %2943 = vst [vmem:[%s4672_s30 + $0x20] sm:$0xff] %v2904_v18 }
 0xb08   : > { %v2906_v56 = vpop.f32.mrf.mxu0 }
 0xb09   : > { %v2907_v52 = vadd.f32 %v3236_v15, %v2906_v56 }
 0xb0b   : > { %2944 = vst [vmem:[%s4672_s30 + $0x28] sm:$0xff] %v2907_v52 }
 0xb10   : > { %v2909_v14 = vpop.f32.mrf.mxu0 }
 0xb11   : > { %v2910_v28 = vadd.f32 %v3236_v15, %v2909_v14 }
 0xb13   : > { %2945 = vst [vmem:[%s4672_s30 + $0x30] sm:$0xff] %v2910_v28 }
 0xb18   : > { %v2912_v8 = vpop.f32.mrf.mxu0 }
 0xb19   : > { %v2913_v17 = vadd.f32 %v3236_v15, %v2912_v8 }
 0xb1b   : > { %2946 = vst [vmem:[%s4672_s30 + $0x38] sm:$0xff] %v2913_v17 }
 0xb20   : > { %v2915_v61 = vpop.f32.mrf.mxu0 }
 0xb21   : > { %v2916_v19 = vadd.f32 %v3236_v15, %v2915_v61 }
 0xb23   : > { %2947 = vst [vmem:[%s4672_s30 + $0x40] sm:$0xff] %v2916_v19 }
 0xb28   : > { %v2918_v0 = vpop.f32.mrf.mxu0 }
 0xb29   : > { %v2919_v5 = vadd.f32 %v3236_v15, %v2918_v0 }
 0xb2b   : > { %2948 = vst [vmem:[%s4672_s30 + $0x48] sm:$0xff] %v2919_v5 }
 0xb30   : > { %v2921_v31 = vpop.f32.mrf.mxu0 }
 0xb31   : > { %v2922_v23 = vadd.f32 %v3236_v15, %v2921_v31 }
 0xb33   : > { %2949 = vst [vmem:[%s4672_s30 + $0x50] sm:$0xff] %v2922_v23 }
 0xb38   : > { %v2924_v62 = vpop.f32.mrf.mxu0 }
 0xb39   : > { %v2925_v38 = vadd.f32 %v3236_v15, %v2924_v62 }
 0xb3b   : > { %2950 = vst [vmem:[%s4672_s30 + $0x58] sm:$0xff] %v2925_v38 }
 0xb40   : > { %v2927_v24 = vpop.f32.mrf.mxu0 }
 0xb41   : > { %v2928_v57 = vadd.f32 %v3236_v15, %v2927_v24 }
 0xb43   : > { %2951 = vst [vmem:[%s4672_s30 + $0x60] sm:$0xff] %v2928_v57 }
 0xb44 PF: > { %s4778_s29 = sld [smem:[#allocation4_spill]] }
 0xb45   : > { %s4780_s2 = sld [smem:[#allocation3_spill]] }
 0xb46   : > { %s4781_s6 = sld [smem:[#allocation5_spill]] }
 0xb47   : > { %s4782_s30 = sld [smem:[#allocation6_spill]] }
 0xb4a   : > { %s35_s7 = sadd.s32 1, %s4778_s29   ;;  %s4779_s29 = sld [smem:[#allocation2_spill]] }
 0xb4b   : > { %p32_p8 = scmp.ge.s32.totalorder %s35_s7, 10  }
 0xb4d   :  { %34 = sbr.rel (!%p32_p8) target bundleno = 12 (0xc), region = 165 }

</bundles_post_ra>
